<compile_context>
chip_gen: v7x
topology: tpu7x:2x2x1
jax: 0.10.0
libtpu: 0.0.40
codegen_flags: <defaults>
</compile_context>

<pallas_src>
import math
import functools

import jax
import jax.numpy as jnp
from jax import lax
from jax.experimental import pallas as pl
from jax.experimental.pallas import tpu as pltpu


def _round_up(x, m):
    return ((x + m - 1) // m) * m


def _cross_attention_kernel(x_ref, wq_ref, bq_ref, wk_ref, bk_ref,
                            wv_ref, bv_ref, wo_ref, bo_ref, o_ref,
                            k_scratch, v_scratch, m_scratch, l_scratch,
                            acc_scratch,
                            *, n_heads, d_head, tq, tk, num_kv, scale):
    # x_ref:  (1, S, D)  bf16, full sequence of this batch element
    # w*_ref: (H, d_head, D) bf16 head-major weights (PyTorch [out, in] split)
    # bq/bv:  (H, 1, d_head) f32, bk: (H, d_head, 1) f32, bo: (1, D) f32
    # o_ref:  (1, tq, D)  one query tile of the output
    # k_scratch: (H, d_head, S) bf16 (K^T, lane-dense on S), persistent per batch
    # v_scratch: (H, S, d_head) bf16,                       persistent per batch
    # m/l_scratch: (H, tq, 1) f32, acc_scratch: (H, tq, d_head) f32
    qi = pl.program_id(1)

    # ---- K / V projections: once per batch element, reused by every q tile.
    #      (Relies on the q axis being the inner, sequential ('arbitrary') axis.)
    @pl.when(qi == 0)
    def _():
        x_all = x_ref[0]                                          # (S, D) bf16
        for h in range(n_heads):                                  # static unroll
            # K stored transposed: (d_head, S) -> native (K, N) RHS for Q@K^T.
            k_h = lax.dot_general(wk_ref[h], x_all, (((1,), (1,)), ((), ())),
                                  preferred_element_type=jnp.float32)
            k_scratch[h] = (k_h + bk_ref[h]).astype(k_scratch.dtype)
            # V stored (S, d_head) -> native (K, N) RHS for P@V.
            v_h = lax.dot_general(x_all, wv_ref[h], (((1,), (1,)), ((), ())),
                                  preferred_element_type=jnp.float32)
            v_scratch[h] = (v_h + bv_ref[h]).astype(v_scratch.dtype)

    # ---- Q projection for this query tile, produced directly head-split;
    #      1/sqrt(d_head) folded into Q before the bf16 cast.
    q_start = pl.multiple_of(qi * tq, tq)
    x_q = x_ref[0, pl.ds(q_start, tq), :]                         # (tq, D) bf16
    q_heads = []
    for h in range(n_heads):
        q_h = lax.dot_general(x_q, wq_ref[h], (((1,), (1,)), ((), ())),
                              preferred_element_type=jnp.float32)  # (tq, dh) f32
        q_heads.append(((q_h + bq_ref[h]) * scale).astype(jnp.bfloat16))
    q = jnp.stack(q_heads, axis=0)                                # (H, tq, dh)

    # ---- flash-style online softmax over KV chunks (VMEM ~ O(tq*tk), not S).
    m_scratch[...] = jnp.full((n_heads, tq, 1), -jnp.inf, dtype=jnp.float32)
    l_scratch[...] = jnp.zeros((n_heads, tq, 1), dtype=jnp.float32)
    acc_scratch[...] = jnp.zeros((n_heads, tq, d_head), dtype=jnp.float32)

    for c in range(num_kv):                                       # static unroll
        lo = c * tk
        k_chunk = k_scratch[:, :, lo:lo + tk]                     # (H, dh, tk)
        v_chunk = v_scratch[:, lo:lo + tk, :]                     # (H, tk, dh)
        s = jnp.einsum('hqd,hdk->hqk', q, k_chunk,
                       preferred_element_type=jnp.float32)        # (H, tq, tk) f32
        m_prev = m_scratch[...]
        m_new = jnp.maximum(m_prev, jnp.max(s, axis=-1, keepdims=True))
        alpha = jnp.exp(m_prev - m_new)
        p = jnp.exp(s - m_new)
        l_scratch[...] = alpha * l_scratch[...] + jnp.sum(p, axis=-1, keepdims=True)
        acc_scratch[...] = alpha * acc_scratch[...] + jnp.einsum(
            'hqk,hkd->hqd', p.astype(jnp.bfloat16), v_chunk,
            preferred_element_type=jnp.float32)
        m_scratch[...] = m_new

    # ---- normalize + output projection straight from head-major o_h
    #      (no head concat: per-head accumulating matmuls against wo[h]).
    inv_l = pl.reciprocal(l_scratch[...], approx=True)            # (H, tq, 1)
    o_heads = (acc_scratch[...] * inv_l).astype(jnp.bfloat16)     # (H, tq, dh)
    out = lax.dot_general(o_heads[0], wo_ref[0], (((1,), (0,)), ((), ())),
                          preferred_element_type=jnp.float32)     # (tq, D)
    for h in range(1, n_heads):
        out = out + lax.dot_general(o_heads[h], wo_ref[h],
                                    (((1,), (0,)), ((), ())),
                                    preferred_element_type=jnp.float32)
    o_ref[0] = (out + bo_ref[...]).astype(o_ref.dtype)


def _pick_tiles(seq_len, d_embd, n_heads, d_head, vmem_limit):
    """Pick (tq, tk): query tile and KV chunk, VMEM-aware."""
    # KV chunk: lane-aligned divisor of S when possible.
    tk = next((t for t in (512, 256, 128) if seq_len % t == 0), seq_len)

    # Fixed VMEM (independent of tq): bf16 weights (single-buffered), x block
    # (double-buffered), K^T / V scratch (V lane-pads d_head to 128).
    fixed = (4 * n_heads * d_head * d_embd * 2
             + 2 * seq_len * d_embd * 2
             + n_heads * _round_up(d_head, 16) * seq_len * 2
             + n_heads * seq_len * _round_up(d_head, 128) * 2)
    budget = max(vmem_limit - fixed - (8 << 20), 4 << 20)   # 8 MiB headroom

    candidates = [t for t in (512, 256, 128, 64, 32, 16) if seq_len % t == 0]
    if not candidates:
        return seq_len, tk                                   # tiny sequences
    for tq in candidates:
        per_tile = (n_heads * tq * tk * 6                    # s (f32) + p (bf16)
                    + n_heads * tq * _round_up(d_head, 128) * 4   # acc scratch
                    + 3 * tq * d_embd * 4)                   # q + out + out block
        if per_tile <= budget:
            return tq, tk
    return candidates[-1], tk


def cross_attention(x, y, params, *, n_heads):
    """Pallas implementation of CrossAttention.forward(x, y).

    x: (B, S, D).  y is accepted but unused -- the reference module's forward
    projects x for q, k AND v, which also implies d_cross == d_embd.
    """
    del y  # unused by the reference forward pass
    B, S, D = x.shape
    if D % n_heads != 0:
        raise ValueError(f"d_embd={D} not divisible by n_heads={n_heads}")
    d_head = D // n_heads
    if params["k_w"].shape[1] != D or params["v_w"].shape[1] != D:
        raise ValueError(
            "CrossAttention.forward projects k/v from x, which requires "
            f"d_cross == d_embd; got d_cross={params['k_w'].shape[1]}, d_embd={D}")

    # Per-chip VMEM budget: 64 MiB on v7x, 128 MiB on v5e/v6e; leave headroom.
    try:
        vmem_cap = int(pltpu.get_tpu_info().vmem_capacity_bytes)
    except Exception:
        vmem_cap = 64 * 1024 * 1024
    vmem_limit = int(min(max(vmem_cap - (16 << 20), 32 << 20), 112 << 20))

    tq, tk = _pick_tiles(S, D, n_heads, d_head, vmem_limit)
    num_q_tiles = S // tq
    num_kv = S // tk

    bf16, f32 = jnp.bfloat16, jnp.float32
    x_bf = x.astype(bf16)
    # Head-major weights (H, d_head, D); PyTorch [out, in] split along "out".
    wq = params["q_w"].reshape(n_heads, d_head, D).astype(bf16)
    wk = params["k_w"].reshape(n_heads, d_head, D).astype(bf16)
    wv = params["v_w"].reshape(n_heads, d_head, D).astype(bf16)
    wo = params["o_w"].T.reshape(n_heads, d_head, D).astype(bf16)
    bq = params["q_b"].reshape(n_heads, 1, d_head).astype(f32)
    bk = params["k_b"].reshape(n_heads, d_head, 1).astype(f32)
    bv = params["v_b"].reshape(n_heads, 1, d_head).astype(f32)
    bo = params["o_b"].reshape(1, D).astype(f32)

    kernel = functools.partial(
        _cross_attention_kernel, n_heads=n_heads, d_head=d_head,
        tq=tq, tk=tk, num_kv=num_kv, scale=1.0 / math.sqrt(d_head))

    def build(single_buffer_weights):
        # Constant index maps -> resident weights; single-buffer them to save VMEM.
        res = {"pipeline_mode": pl.Buffered(1)} if single_buffer_weights else {}
        w_spec = pl.BlockSpec((n_heads, d_head, D), lambda b, q: (0, 0, 0), **res)
        bq_spec = pl.BlockSpec((n_heads, 1, d_head), lambda b, q: (0, 0, 0), **res)
        bk_spec = pl.BlockSpec((n_heads, d_head, 1), lambda b, q: (0, 0, 0), **res)
        bv_spec = pl.BlockSpec((n_heads, 1, d_head), lambda b, q: (0, 0, 0), **res)
        bo_spec = pl.BlockSpec((1, D), lambda b, q: (0, 0), **res)
        return pl.pallas_call(
            kernel,
            out_shape=jax.ShapeDtypeStruct((B, S, D), x.dtype),
            grid_spec=pltpu.PrefetchScalarGridSpec(
                num_scalar_prefetch=0,
                grid=(B, num_q_tiles),
                in_specs=[
                    pl.BlockSpec((1, S, D), lambda b, q: (b, 0, 0)),  # x (full seq)
                    w_spec, bq_spec,                                  # q_proj
                    w_spec, bk_spec,                                  # k_proj
                    w_spec, bv_spec,                                  # v_proj
                    w_spec, bo_spec,                                  # out_proj
                ],
                out_specs=pl.BlockSpec((1, tq, D), lambda b, q: (b, q, 0)),
                scratch_shapes=[
                    pltpu.VMEM((n_heads, d_head, S), bf16),       # K^T scratch
                    pltpu.VMEM((n_heads, S, d_head), bf16),       # V scratch
                    pltpu.VMEM((n_heads, tq, 1), f32),            # running max
                    pltpu.VMEM((n_heads, tq, 1), f32),            # running sum
                    pltpu.VMEM((n_heads, tq, d_head), f32),       # output acc
                ]),
            compiler_params=pltpu.CompilerParams(
                # q-tile axis must stay 'arbitrary' (sequential, inner): the
                # per-batch K/V scratch is filled at qi == 0 and reused.
                dimension_semantics=("parallel", "arbitrary"),
                vmem_limit_bytes=vmem_limit),
        )

    args = (x_bf, wq, bq, wk, bk, wv, bv, wo, bo)
    try:
        return jax.block_until_ready(build(True)(*args))
    except Exception:
        # TODO(synk): pl.Buffered(1) (single-buffered resident weights) not
        # accepted on this JAX build; fall back to default double-buffering.
        return build(False)(*args)


def _reference(x, params, n_heads):
    """Pure-JAX f32 reference mirroring the PyTorch forward (sanity check)."""
    B, S, D = x.shape
    d_head = D // n_heads

    def lin(a, w, b):
        return a @ w.T + b

    q = lin(x, params["q_w"], params["q_b"])
    k = lin(x, params["k_w"], params["k_b"])
    v = lin(x, params["v_w"], params["v_b"])

    def split(t):
        return t.reshape(B, S, n_heads, d_head).transpose(0, 2, 1, 3)

    q, k, v = split(q), split(k), split(v)
    w = (q @ k.transpose(0, 1, 3, 2)) / math.sqrt(d_head)
    w = jax.nn.softmax(w, axis=-1)
    out = (w @ v).transpose(0, 2, 1, 3).reshape(B, S, D)
    return lin(out, params["o_w"], params["o_b"])


def init_params(key, d_embd, d_cross):
    # Deterministic synthetic parameters (PyTorch Linear layout: [out, in]).
    keys = jax.random.split(key, 8)
    s_e = 1.0 / math.sqrt(d_embd)
    s_c = 1.0 / math.sqrt(d_cross)
    return {
        "q_w": jax.random.normal(keys[0], (d_embd, d_embd), jnp.float32) * s_e,
        "q_b": jax.random.normal(keys[1], (d_embd,), jnp.float32) * 0.02,
        "k_w": jax.random.normal(keys[2], (d_embd, d_cross), jnp.float32) * s_c,
        "k_b": jax.random.normal(keys[3], (d_embd,), jnp.float32) * 0.02,
        "v_w": jax.random.normal(keys[4], (d_embd, d_cross), jnp.float32) * s_c,
        "v_b": jax.random.normal(keys[5], (d_embd,), jnp.float32) * 0.02,
        "o_w": jax.random.normal(keys[6], (d_embd, d_embd), jnp.float32) * s_e,
        "o_b": jax.random.normal(keys[7], (d_embd,), jnp.float32) * 0.02,
    }


if __name__ == "__main__":
    def check(batch, seq, d_embd, n_heads, seed):
        key = jax.random.PRNGKey(seed)
        kx, ky, kp = jax.random.split(key, 3)
        x = jax.random.normal(kx, (batch, seq, d_embd), jnp.float32)
        # y is unused by the reference forward (it projects k/v from x).
        y = jax.random.normal(ky, (batch, max(seq // 2, 4), d_embd), jnp.float32)
        params = init_params(kp, d_embd, d_embd)
        out = jax.block_until_ready(
            cross_attention(x, y, params, n_heads=n_heads))
        ref = _reference(x, params, n_heads)
        assert out.shape == (batch, seq, d_embd)
        max_err = jnp.max(jnp.abs(out - ref))
        # bf16 matmul inputs + approx reciprocal => loose tolerance.
        assert jnp.allclose(out, ref, atol=5e-2, rtol=5e-2), (
            f"mismatch (B={batch}, S={seq}, D={d_embd}, H={n_heads}): "
            f"max abs err {max_err}")

    # Small shape consistent with the module (batch=2, seq=8, hidden=32).
    check(2, 8, 32, 4, seed=0)
    # Larger shape exercising multiple query tiles and KV chunks.
    check(1, 1024, 128, 8, seed=1)

    print("KERNEL_OK")
</pallas_src>

<mosaic_0001>
module attributes {stable_mosaic.version = 11 : i64} {
  func.func @_cross_attention_kernel(%arg0: i32, %arg1: i32, %arg2: memref<1x8x32xbf16, #tpu.memory_space<vmem>>, %arg3: memref<4x8x32xbf16, #tpu.memory_space<vmem>>, %arg4: memref<4x1x8xf32, #tpu.memory_space<vmem>>, %arg5: memref<4x8x32xbf16, #tpu.memory_space<vmem>>, %arg6: memref<4x8x1xf32, #tpu.memory_space<vmem>>, %arg7: memref<4x8x32xbf16, #tpu.memory_space<vmem>>, %arg8: memref<4x1x8xf32, #tpu.memory_space<vmem>>, %arg9: memref<4x8x32xbf16, #tpu.memory_space<vmem>>, %arg10: memref<1x32xf32, #tpu.memory_space<vmem>>, %arg11: memref<1x8x32xf32, #tpu.memory_space<vmem>>, %arg12: memref<4x8x8xbf16, #tpu.memory_space<vmem>>, %arg13: memref<4x8x8xbf16, #tpu.memory_space<vmem>>, %arg14: memref<4x8x1xf32, #tpu.memory_space<vmem>>, %arg15: memref<4x8x1xf32, #tpu.memory_space<vmem>>, %arg16: memref<4x8x8xf32, #tpu.memory_space<vmem>>) attributes {dimension_semantics = [#tpu.dimension_semantics<parallel>, #tpu.dimension_semantics<arbitrary>], iteration_bounds = array<i64: 2, 1>, scalar_prefetch = 0 : i64, scratch_operands = 5 : i64, tpu.core_type = #tpu.core_type<tc>, window_params = [{transform_indices = @transform_0, window_bounds = array<i64: 1, 8, 32>}, {pipeline_mode = #tpu.pipeline_mode<synchronous>, transform_indices = @transform_1, window_bounds = array<i64: 4, 8, 32>}, {pipeline_mode = #tpu.pipeline_mode<synchronous>, transform_indices = @transform_2, window_bounds = array<i64: 4, 1, 8>}, {pipeline_mode = #tpu.pipeline_mode<synchronous>, transform_indices = @transform_3, window_bounds = array<i64: 4, 8, 32>}, {pipeline_mode = #tpu.pipeline_mode<synchronous>, transform_indices = @transform_4, window_bounds = array<i64: 4, 8, 1>}, {pipeline_mode = #tpu.pipeline_mode<synchronous>, transform_indices = @transform_5, window_bounds = array<i64: 4, 8, 32>}, {pipeline_mode = #tpu.pipeline_mode<synchronous>, transform_indices = @transform_6, window_bounds = array<i64: 4, 1, 8>}, {pipeline_mode = #tpu.pipeline_mode<synchronous>, transform_indices = @transform_7, window_bounds = array<i64: 4, 8, 32>}, {pipeline_mode = #tpu.pipeline_mode<synchronous>, transform_indices = @transform_8, window_bounds = array<i64: 1, 32>}, {transform_indices = @transform_9, window_bounds = array<i64: 1, 8, 32>}]} {
    %c0_i32 = arith.constant 0 : i32
    %0 = arith.cmpi eq, %arg1, %c0_i32 : i32
    %1 = arith.extui %0 : i1 to i32
    %c0_i32_0 = arith.constant 0 : i32
    %2 = arith.cmpi ne, %1, %c0_i32_0 : i32
    scf.if %2 {
      %c0_97 = arith.constant 0 : index
      %c0_98 = arith.constant 0 : index
      %c0_99 = arith.constant 0 : index
      %120 = vector.load %arg2[%c0_97, %c0_98, %c0_99] : memref<1x8x32xbf16, #tpu.memory_space<vmem>>, vector<1x8x32xbf16>
      %121 = vector.shape_cast %120 : vector<1x8x32xbf16> to vector<8x32xbf16>
      %c0_100 = arith.constant 0 : index
      %c0_101 = arith.constant 0 : index
      %c0_102 = arith.constant 0 : index
      %122 = vector.load %arg5[%c0_100, %c0_101, %c0_102] : memref<4x8x32xbf16, #tpu.memory_space<vmem>>, vector<1x8x32xbf16>
      %123 = vector.shape_cast %122 : vector<1x8x32xbf16> to vector<8x32xbf16>
      %cst_103 = arith.constant dense<0.000000e+00> : vector<8x8xf32>
      %124 = tpu.matmul %123, %121, %cst_103 {dimension_numbers = #tpu.dot_dimension_numbers<[1], [1], [0], [0], [0, 0, 1, 0], [], []>} : vector<8x32xbf16>, vector<8x32xbf16>, vector<8x8xf32> -> vector<8x8xf32>
      %c0_104 = arith.constant 0 : index
      %c0_105 = arith.constant 0 : index
      %c0_106 = arith.constant 0 : index
      %125 = vector.load %arg6[%c0_104, %c0_105, %c0_106] : memref<4x8x1xf32, #tpu.memory_space<vmem>>, vector<1x8x1xf32>
      %126 = vector.shape_cast %125 : vector<1x8x1xf32> to vector<8x1xf32>
      %127 = vector.broadcast %126 : vector<8x1xf32> to vector<8x8xf32>
      %128 = arith.addf %124, %127 : vector<8x8xf32>
      %129 = arith.truncf %128 : vector<8x8xf32> to vector<8x8xbf16>
      %c0_107 = arith.constant 0 : index
      %c0_108 = arith.constant 0 : index
      %c0_109 = arith.constant 0 : index
      %130 = vector.load %arg12[%c0_107, %c0_108, %c0_109] : memref<4x8x8xbf16, #tpu.memory_space<vmem>>, vector<1x8x8xbf16>
      %131 = vector.shape_cast %130 : vector<1x8x8xbf16> to vector<8x8xbf16>
      %132 = vector.shape_cast %129 : vector<8x8xbf16> to vector<1x8x8xbf16>
      tpu.vector_store %arg12[%c0_107, %c0_108, %c0_109], %132 {strides = array<i32>} : memref<4x8x8xbf16, #tpu.memory_space<vmem>>, vector<1x8x8xbf16>,
      %c0_110 = arith.constant 0 : index
      %c0_111 = arith.constant 0 : index
      %c0_112 = arith.constant 0 : index
      %133 = vector.load %arg7[%c0_110, %c0_111, %c0_112] : memref<4x8x32xbf16, #tpu.memory_space<vmem>>, vector<1x8x32xbf16>
      %134 = vector.shape_cast %133 : vector<1x8x32xbf16> to vector<8x32xbf16>
      %cst_113 = arith.constant dense<0.000000e+00> : vector<8x8xf32>
      %135 = tpu.matmul %121, %134, %cst_113 {dimension_numbers = #tpu.dot_dimension_numbers<[1], [1], [0], [0], [0, 0, 1, 0], [], []>} : vector<8x32xbf16>, vector<8x32xbf16>, vector<8x8xf32> -> vector<8x8xf32>
      %c0_114 = arith.constant 0 : index
      %c0_115 = arith.constant 0 : index
      %c0_116 = arith.constant 0 : index
      %136 = vector.load %arg8[%c0_114, %c0_115, %c0_116] : memref<4x1x8xf32, #tpu.memory_space<vmem>>, vector<1x1x8xf32>
      %137 = vector.shape_cast %136 : vector<1x1x8xf32> to vector<1x8xf32>
      %138 = vector.broadcast %137 : vector<1x8xf32> to vector<8x8xf32>
      %139 = arith.addf %135, %138 : vector<8x8xf32>
      %140 = arith.truncf %139 : vector<8x8xf32> to vector<8x8xbf16>
      %c0_117 = arith.constant 0 : index
      %c0_118 = arith.constant 0 : index
      %c0_119 = arith.constant 0 : index
      %141 = vector.load %arg13[%c0_117, %c0_118, %c0_119] : memref<4x8x8xbf16, #tpu.memory_space<vmem>>, vector<1x8x8xbf16>
      %142 = vector.shape_cast %141 : vector<1x8x8xbf16> to vector<8x8xbf16>
      %143 = vector.shape_cast %140 : vector<8x8xbf16> to vector<1x8x8xbf16>
      tpu.vector_store %arg13[%c0_117, %c0_118, %c0_119], %143 {strides = array<i32>} : memref<4x8x8xbf16, #tpu.memory_space<vmem>>, vector<1x8x8xbf16>,
      %c1_120 = arith.constant 1 : index
      %c0_121 = arith.constant 0 : index
      %c0_122 = arith.constant 0 : index
      %144 = vector.load %arg5[%c1_120, %c0_121, %c0_122] : memref<4x8x32xbf16, #tpu.memory_space<vmem>>, vector<1x8x32xbf16>
      %145 = vector.shape_cast %144 : vector<1x8x32xbf16> to vector<8x32xbf16>
      %cst_123 = arith.constant dense<0.000000e+00> : vector<8x8xf32>
      %146 = tpu.matmul %145, %121, %cst_123 {dimension_numbers = #tpu.dot_dimension_numbers<[1], [1], [0], [0], [0, 0, 1, 0], [], []>} : vector<8x32xbf16>, vector<8x32xbf16>, vector<8x8xf32> -> vector<8x8xf32>
      %c1_124 = arith.constant 1 : index
      %c0_125 = arith.constant 0 : index
      %c0_126 = arith.constant 0 : index
      %147 = vector.load %arg6[%c1_124, %c0_125, %c0_126] : memref<4x8x1xf32, #tpu.memory_space<vmem>>, vector<1x8x1xf32>
      %148 = vector.shape_cast %147 : vector<1x8x1xf32> to vector<8x1xf32>
      %149 = vector.broadcast %148 : vector<8x1xf32> to vector<8x8xf32>
      %150 = arith.addf %146, %149 : vector<8x8xf32>
      %151 = arith.truncf %150 : vector<8x8xf32> to vector<8x8xbf16>
      %c1_127 = arith.constant 1 : index
      %c0_128 = arith.constant 0 : index
      %c0_129 = arith.constant 0 : index
      %152 = vector.load %arg12[%c1_127, %c0_128, %c0_129] : memref<4x8x8xbf16, #tpu.memory_space<vmem>>, vector<1x8x8xbf16>
      %153 = vector.shape_cast %152 : vector<1x8x8xbf16> to vector<8x8xbf16>
      %154 = vector.shape_cast %151 : vector<8x8xbf16> to vector<1x8x8xbf16>
      tpu.vector_store %arg12[%c1_127, %c0_128, %c0_129], %154 {strides = array<i32>} : memref<4x8x8xbf16, #tpu.memory_space<vmem>>, vector<1x8x8xbf16>,
      %c1_130 = arith.constant 1 : index
      %c0_131 = arith.constant 0 : index
      %c0_132 = arith.constant 0 : index
      %155 = vector.load %arg7[%c1_130, %c0_131, %c0_132] : memref<4x8x32xbf16, #tpu.memory_space<vmem>>, vector<1x8x32xbf16>
      %156 = vector.shape_cast %155 : vector<1x8x32xbf16> to vector<8x32xbf16>
      %cst_133 = arith.constant dense<0.000000e+00> : vector<8x8xf32>
      %157 = tpu.matmul %121, %156, %cst_133 {dimension_numbers = #tpu.dot_dimension_numbers<[1], [1], [0], [0], [0, 0, 1, 0], [], []>} : vector<8x32xbf16>, vector<8x32xbf16>, vector<8x8xf32> -> vector<8x8xf32>
      %c1_134 = arith.constant 1 : index
      %c0_135 = arith.constant 0 : index
      %c0_136 = arith.constant 0 : index
      %158 = vector.load %arg8[%c1_134, %c0_135, %c0_136] : memref<4x1x8xf32, #tpu.memory_space<vmem>>, vector<1x1x8xf32>
      %159 = vector.shape_cast %158 : vector<1x1x8xf32> to vector<1x8xf32>
      %160 = vector.broadcast %159 : vector<1x8xf32> to vector<8x8xf32>
      %161 = arith.addf %157, %160 : vector<8x8xf32>
      %162 = arith.truncf %161 : vector<8x8xf32> to vector<8x8xbf16>
      %c1_137 = arith.constant 1 : index
      %c0_138 = arith.constant 0 : index
      %c0_139 = arith.constant 0 : index
      %163 = vector.load %arg13[%c1_137, %c0_138, %c0_139] : memref<4x8x8xbf16, #tpu.memory_space<vmem>>, vector<1x8x8xbf16>
      %164 = vector.shape_cast %163 : vector<1x8x8xbf16> to vector<8x8xbf16>
      %165 = vector.shape_cast %162 : vector<8x8xbf16> to vector<1x8x8xbf16>
      tpu.vector_store %arg13[%c1_137, %c0_138, %c0_139], %165 {strides = array<i32>} : memref<4x8x8xbf16, #tpu.memory_space<vmem>>, vector<1x8x8xbf16>,
      %c2_140 = arith.constant 2 : index
      %c0_141 = arith.constant 0 : index
      %c0_142 = arith.constant 0 : index
      %166 = vector.load %arg5[%c2_140, %c0_141, %c0_142] : memref<4x8x32xbf16, #tpu.memory_space<vmem>>, vector<1x8x32xbf16>
      %167 = vector.shape_cast %166 : vector<1x8x32xbf16> to vector<8x32xbf16>
      %cst_143 = arith.constant dense<0.000000e+00> : vector<8x8xf32>
      %168 = tpu.matmul %167, %121, %cst_143 {dimension_numbers = #tpu.dot_dimension_numbers<[1], [1], [0], [0], [0, 0, 1, 0], [], []>} : vector<8x32xbf16>, vector<8x32xbf16>, vector<8x8xf32> -> vector<8x8xf32>
      %c2_144 = arith.constant 2 : index
      %c0_145 = arith.constant 0 : index
      %c0_146 = arith.constant 0 : index
      %169 = vector.load %arg6[%c2_144, %c0_145, %c0_146] : memref<4x8x1xf32, #tpu.memory_space<vmem>>, vector<1x8x1xf32>
      %170 = vector.shape_cast %169 : vector<1x8x1xf32> to vector<8x1xf32>
      %171 = vector.broadcast %170 : vector<8x1xf32> to vector<8x8xf32>
      %172 = arith.addf %168, %171 : vector<8x8xf32>
      %173 = arith.truncf %172 : vector<8x8xf32> to vector<8x8xbf16>
      %c2_147 = arith.constant 2 : index
      %c0_148 = arith.constant 0 : index
      %c0_149 = arith.constant 0 : index
      %174 = vector.load %arg12[%c2_147, %c0_148, %c0_149] : memref<4x8x8xbf16, #tpu.memory_space<vmem>>, vector<1x8x8xbf16>
      %175 = vector.shape_cast %174 : vector<1x8x8xbf16> to vector<8x8xbf16>
      %176 = vector.shape_cast %173 : vector<8x8xbf16> to vector<1x8x8xbf16>
      tpu.vector_store %arg12[%c2_147, %c0_148, %c0_149], %176 {strides = array<i32>} : memref<4x8x8xbf16, #tpu.memory_space<vmem>>, vector<1x8x8xbf16>,
      %c2_150 = arith.constant 2 : index
      %c0_151 = arith.constant 0 : index
      %c0_152 = arith.constant 0 : index
      %177 = vector.load %arg7[%c2_150, %c0_151, %c0_152] : memref<4x8x32xbf16, #tpu.memory_space<vmem>>, vector<1x8x32xbf16>
      %178 = vector.shape_cast %177 : vector<1x8x32xbf16> to vector<8x32xbf16>
      %cst_153 = arith.constant dense<0.000000e+00> : vector<8x8xf32>
      %179 = tpu.matmul %121, %178, %cst_153 {dimension_numbers = #tpu.dot_dimension_numbers<[1], [1], [0], [0], [0, 0, 1, 0], [], []>} : vector<8x32xbf16>, vector<8x32xbf16>, vector<8x8xf32> -> vector<8x8xf32>
      %c2_154 = arith.constant 2 : index
      %c0_155 = arith.constant 0 : index
      %c0_156 = arith.constant 0 : index
      %180 = vector.load %arg8[%c2_154, %c0_155, %c0_156] : memref<4x1x8xf32, #tpu.memory_space<vmem>>, vector<1x1x8xf32>
      %181 = vector.shape_cast %180 : vector<1x1x8xf32> to vector<1x8xf32>
      %182 = vector.broadcast %181 : vector<1x8xf32> to vector<8x8xf32>
      %183 = arith.addf %179, %182 : vector<8x8xf32>
      %184 = arith.truncf %183 : vector<8x8xf32> to vector<8x8xbf16>
      %c2_157 = arith.constant 2 : index
      %c0_158 = arith.constant 0 : index
      %c0_159 = arith.constant 0 : index
      %185 = vector.load %arg13[%c2_157, %c0_158, %c0_159] : memref<4x8x8xbf16, #tpu.memory_space<vmem>>, vector<1x8x8xbf16>
      %186 = vector.shape_cast %185 : vector<1x8x8xbf16> to vector<8x8xbf16>
      %187 = vector.shape_cast %184 : vector<8x8xbf16> to vector<1x8x8xbf16>
      tpu.vector_store %arg13[%c2_157, %c0_158, %c0_159], %187 {strides = array<i32>} : memref<4x8x8xbf16, #tpu.memory_space<vmem>>, vector<1x8x8xbf16>,
      %c3_160 = arith.constant 3 : index
      %c0_161 = arith.constant 0 : index
      %c0_162 = arith.constant 0 : index
      %188 = vector.load %arg5[%c3_160, %c0_161, %c0_162] : memref<4x8x32xbf16, #tpu.memory_space<vmem>>, vector<1x8x32xbf16>
      %189 = vector.shape_cast %188 : vector<1x8x32xbf16> to vector<8x32xbf16>
      %cst_163 = arith.constant dense<0.000000e+00> : vector<8x8xf32>
      %190 = tpu.matmul %189, %121, %cst_163 {dimension_numbers = #tpu.dot_dimension_numbers<[1], [1], [0], [0], [0, 0, 1, 0], [], []>} : vector<8x32xbf16>, vector<8x32xbf16>, vector<8x8xf32> -> vector<8x8xf32>
      %c3_164 = arith.constant 3 : index
      %c0_165 = arith.constant 0 : index
      %c0_166 = arith.constant 0 : index
      %191 = vector.load %arg6[%c3_164, %c0_165, %c0_166] : memref<4x8x1xf32, #tpu.memory_space<vmem>>, vector<1x8x1xf32>
      %192 = vector.shape_cast %191 : vector<1x8x1xf32> to vector<8x1xf32>
      %193 = vector.broadcast %192 : vector<8x1xf32> to vector<8x8xf32>
      %194 = arith.addf %190, %193 : vector<8x8xf32>
      %195 = arith.truncf %194 : vector<8x8xf32> to vector<8x8xbf16>
      %c3_167 = arith.constant 3 : index
      %c0_168 = arith.constant 0 : index
      %c0_169 = arith.constant 0 : index
      %196 = vector.load %arg12[%c3_167, %c0_168, %c0_169] : memref<4x8x8xbf16, #tpu.memory_space<vmem>>, vector<1x8x8xbf16>
      %197 = vector.shape_cast %196 : vector<1x8x8xbf16> to vector<8x8xbf16>
      %198 = vector.shape_cast %195 : vector<8x8xbf16> to vector<1x8x8xbf16>
      tpu.vector_store %arg12[%c3_167, %c0_168, %c0_169], %198 {strides = array<i32>} : memref<4x8x8xbf16, #tpu.memory_space<vmem>>, vector<1x8x8xbf16>,
      %c3_170 = arith.constant 3 : index
      %c0_171 = arith.constant 0 : index
      %c0_172 = arith.constant 0 : index
      %199 = vector.load %arg7[%c3_170, %c0_171, %c0_172] : memref<4x8x32xbf16, #tpu.memory_space<vmem>>, vector<1x8x32xbf16>
      %200 = vector.shape_cast %199 : vector<1x8x32xbf16> to vector<8x32xbf16>
      %cst_173 = arith.constant dense<0.000000e+00> : vector<8x8xf32>
      %201 = tpu.matmul %121, %200, %cst_173 {dimension_numbers = #tpu.dot_dimension_numbers<[1], [1], [0], [0], [0, 0, 1, 0], [], []>} : vector<8x32xbf16>, vector<8x32xbf16>, vector<8x8xf32> -> vector<8x8xf32>
      %c3_174 = arith.constant 3 : index
      %c0_175 = arith.constant 0 : index
      %c0_176 = arith.constant 0 : index
      %202 = vector.load %arg8[%c3_174, %c0_175, %c0_176] : memref<4x1x8xf32, #tpu.memory_space<vmem>>, vector<1x1x8xf32>
      %203 = vector.shape_cast %202 : vector<1x1x8xf32> to vector<1x8xf32>
      %204 = vector.broadcast %203 : vector<1x8xf32> to vector<8x8xf32>
      %205 = arith.addf %201, %204 : vector<8x8xf32>
      %206 = arith.truncf %205 : vector<8x8xf32> to vector<8x8xbf16>
      %c3_177 = arith.constant 3 : index
      %c0_178 = arith.constant 0 : index
      %c0_179 = arith.constant 0 : index
      %207 = vector.load %arg13[%c3_177, %c0_178, %c0_179] : memref<4x8x8xbf16, #tpu.memory_space<vmem>>, vector<1x8x8xbf16>
      %208 = vector.shape_cast %207 : vector<1x8x8xbf16> to vector<8x8xbf16>
      %209 = vector.shape_cast %206 : vector<8x8xbf16> to vector<1x8x8xbf16>
      tpu.vector_store %arg13[%c3_177, %c0_178, %c0_179], %209 {strides = array<i32>} : memref<4x8x8xbf16, #tpu.memory_space<vmem>>, vector<1x8x8xbf16>,
    } else {
    }
    %c8_i32 = arith.constant 8 : i32
    %3 = arith.muli %arg1, %c8_i32 : i32
    %4 = tpu.assume_multiple %3, 8 : i32
    %c0 = arith.constant 0 : index
    %5 = arith.index_cast %4 : i32 to index
    %c0_1 = arith.constant 0 : index
    %6 = vector.load %arg2[%c0, %5, %c0_1] : memref<1x8x32xbf16, #tpu.memory_space<vmem>>, vector<1x8x32xbf16>
    %7 = vector.shape_cast %6 : vector<1x8x32xbf16> to vector<8x32xbf16>
    %c0_2 = arith.constant 0 : index
    %c0_3 = arith.constant 0 : index
    %c0_4 = arith.constant 0 : index
    %8 = vector.load %arg3[%c0_2, %c0_3, %c0_4] : memref<4x8x32xbf16, #tpu.memory_space<vmem>>, vector<1x8x32xbf16>
    %9 = vector.shape_cast %8 : vector<1x8x32xbf16> to vector<8x32xbf16>
    %cst = arith.constant dense<0.000000e+00> : vector<8x8xf32>
    %10 = tpu.matmul %7, %9, %cst {dimension_numbers = #tpu.dot_dimension_numbers<[1], [1], [0], [0], [0, 0, 1, 0], [], []>} : vector<8x32xbf16>, vector<8x32xbf16>, vector<8x8xf32> -> vector<8x8xf32>
    %c0_5 = arith.constant 0 : index
    %c0_6 = arith.constant 0 : index
    %c0_7 = arith.constant 0 : index
    %11 = vector.load %arg4[%c0_5, %c0_6, %c0_7] : memref<4x1x8xf32, #tpu.memory_space<vmem>>, vector<1x1x8xf32>
    %12 = vector.shape_cast %11 : vector<1x1x8xf32> to vector<1x8xf32>
    %13 = vector.broadcast %12 : vector<1x8xf32> to vector<8x8xf32>
    %14 = arith.addf %10, %13 : vector<8x8xf32>
    %cst_8 = arith.constant 0.353553385 : f32
    %15 = vector.broadcast %cst_8 : f32 to vector<8x8xf32>
    %16 = arith.mulf %14, %15 : vector<8x8xf32>
    %17 = arith.truncf %16 : vector<8x8xf32> to vector<8x8xbf16>
    %c1 = arith.constant 1 : index
    %c0_9 = arith.constant 0 : index
    %c0_10 = arith.constant 0 : index
    %18 = vector.load %arg3[%c1, %c0_9, %c0_10] : memref<4x8x32xbf16, #tpu.memory_space<vmem>>, vector<1x8x32xbf16>
    %19 = vector.shape_cast %18 : vector<1x8x32xbf16> to vector<8x32xbf16>
    %cst_11 = arith.constant dense<0.000000e+00> : vector<8x8xf32>
    %20 = tpu.matmul %7, %19, %cst_11 {dimension_numbers = #tpu.dot_dimension_numbers<[1], [1], [0], [0], [0, 0, 1, 0], [], []>} : vector<8x32xbf16>, vector<8x32xbf16>, vector<8x8xf32> -> vector<8x8xf32>
    %c1_12 = arith.constant 1 : index
    %c0_13 = arith.constant 0 : index
    %c0_14 = arith.constant 0 : index
    %21 = vector.load %arg4[%c1_12, %c0_13, %c0_14] : memref<4x1x8xf32, #tpu.memory_space<vmem>>, vector<1x1x8xf32>
    %22 = vector.shape_cast %21 : vector<1x1x8xf32> to vector<1x8xf32>
    %23 = vector.broadcast %22 : vector<1x8xf32> to vector<8x8xf32>
    %24 = arith.addf %20, %23 : vector<8x8xf32>
    %cst_15 = arith.constant 0.353553385 : f32
    %25 = vector.broadcast %cst_15 : f32 to vector<8x8xf32>
    %26 = arith.mulf %24, %25 : vector<8x8xf32>
    %27 = arith.truncf %26 : vector<8x8xf32> to vector<8x8xbf16>
    %c2 = arith.constant 2 : index
    %c0_16 = arith.constant 0 : index
    %c0_17 = arith.constant 0 : index
    %28 = vector.load %arg3[%c2, %c0_16, %c0_17] : memref<4x8x32xbf16, #tpu.memory_space<vmem>>, vector<1x8x32xbf16>
    %29 = vector.shape_cast %28 : vector<1x8x32xbf16> to vector<8x32xbf16>
    %cst_18 = arith.constant dense<0.000000e+00> : vector<8x8xf32>
    %30 = tpu.matmul %7, %29, %cst_18 {dimension_numbers = #tpu.dot_dimension_numbers<[1], [1], [0], [0], [0, 0, 1, 0], [], []>} : vector<8x32xbf16>, vector<8x32xbf16>, vector<8x8xf32> -> vector<8x8xf32>
    %c2_19 = arith.constant 2 : index
    %c0_20 = arith.constant 0 : index
    %c0_21 = arith.constant 0 : index
    %31 = vector.load %arg4[%c2_19, %c0_20, %c0_21] : memref<4x1x8xf32, #tpu.memory_space<vmem>>, vector<1x1x8xf32>
    %32 = vector.shape_cast %31 : vector<1x1x8xf32> to vector<1x8xf32>
    %33 = vector.broadcast %32 : vector<1x8xf32> to vector<8x8xf32>
    %34 = arith.addf %30, %33 : vector<8x8xf32>
    %cst_22 = arith.constant 0.353553385 : f32
    %35 = vector.broadcast %cst_22 : f32 to vector<8x8xf32>
    %36 = arith.mulf %34, %35 : vector<8x8xf32>
    %37 = arith.truncf %36 : vector<8x8xf32> to vector<8x8xbf16>
    %c3 = arith.constant 3 : index
    %c0_23 = arith.constant 0 : index
    %c0_24 = arith.constant 0 : index
    %38 = vector.load %arg3[%c3, %c0_23, %c0_24] : memref<4x8x32xbf16, #tpu.memory_space<vmem>>, vector<1x8x32xbf16>
    %39 = vector.shape_cast %38 : vector<1x8x32xbf16> to vector<8x32xbf16>
    %cst_25 = arith.constant dense<0.000000e+00> : vector<8x8xf32>
    %40 = tpu.matmul %7, %39, %cst_25 {dimension_numbers = #tpu.dot_dimension_numbers<[1], [1], [0], [0], [0, 0, 1, 0], [], []>} : vector<8x32xbf16>, vector<8x32xbf16>, vector<8x8xf32> -> vector<8x8xf32>
    %c3_26 = arith.constant 3 : index
    %c0_27 = arith.constant 0 : index
    %c0_28 = arith.constant 0 : index
    %41 = vector.load %arg4[%c3_26, %c0_27, %c0_28] : memref<4x1x8xf32, #tpu.memory_space<vmem>>, vector<1x1x8xf32>
    %42 = vector.shape_cast %41 : vector<1x1x8xf32> to vector<1x8xf32>
    %43 = vector.broadcast %42 : vector<1x8xf32> to vector<8x8xf32>
    %44 = arith.addf %40, %43 : vector<8x8xf32>
    %cst_29 = arith.constant 0.353553385 : f32
    %45 = vector.broadcast %cst_29 : f32 to vector<8x8xf32>
    %46 = arith.mulf %44, %45 : vector<8x8xf32>
    %47 = arith.truncf %46 : vector<8x8xf32> to vector<8x8xbf16>
    %48 = vector.shape_cast %17 : vector<8x8xbf16> to vector<1x8x8xbf16>
    %49 = vector.shape_cast %27 : vector<8x8xbf16> to vector<1x8x8xbf16>
    %50 = vector.shape_cast %37 : vector<8x8xbf16> to vector<1x8x8xbf16>
    %51 = vector.shape_cast %47 : vector<8x8xbf16> to vector<1x8x8xbf16>
    %52 = tpu.concatenate %48, %49, %50, %51 in 0 : vector<1x8x8xbf16>, vector<1x8x8xbf16>, vector<1x8x8xbf16>, vector<1x8x8xbf16> -> vector<4x8x8xbf16>
    %cst_30 = arith.constant 0xFF800000 : f32
    %53 = vector.broadcast %cst_30 : f32 to vector<4x8x1xf32>
    %c0_31 = arith.constant 0 : index
    %c0_32 = arith.constant 0 : index
    %c0_33 = arith.constant 0 : index
    %54 = vector.load %arg14[%c0_31, %c0_32, %c0_33] : memref<4x8x1xf32, #tpu.memory_space<vmem>>, vector<4x8x1xf32>
    tpu.vector_store %arg14[%c0_31, %c0_32, %c0_33], %53 {strides = array<i32>} : memref<4x8x1xf32, #tpu.memory_space<vmem>>, vector<4x8x1xf32>,
    %cst_34 = arith.constant 0.000000e+00 : f32
    %55 = vector.broadcast %cst_34 : f32 to vector<4x8x1xf32>
    %c0_35 = arith.constant 0 : index
    %c0_36 = arith.constant 0 : index
    %c0_37 = arith.constant 0 : index
    %56 = vector.load %arg15[%c0_35, %c0_36, %c0_37] : memref<4x8x1xf32, #tpu.memory_space<vmem>>, vector<4x8x1xf32>
    tpu.vector_store %arg15[%c0_35, %c0_36, %c0_37], %55 {strides = array<i32>} : memref<4x8x1xf32, #tpu.memory_space<vmem>>, vector<4x8x1xf32>,
    %cst_38 = arith.constant 0.000000e+00 : f32
    %57 = vector.broadcast %cst_38 : f32 to vector<4x8x8xf32>
    %c0_39 = arith.constant 0 : index
    %c0_40 = arith.constant 0 : index
    %c0_41 = arith.constant 0 : index
    %58 = vector.load %arg16[%c0_39, %c0_40, %c0_41] : memref<4x8x8xf32, #tpu.memory_space<vmem>>, vector<4x8x8xf32>
    tpu.vector_store %arg16[%c0_39, %c0_40, %c0_41], %57 {strides = array<i32>} : memref<4x8x8xf32, #tpu.memory_space<vmem>>, vector<4x8x8xf32>,
    %c0_42 = arith.constant 0 : index
    %c0_43 = arith.constant 0 : index
    %c0_44 = arith.constant 0 : index
    %59 = vector.load %arg12[%c0_42, %c0_43, %c0_44] : memref<4x8x8xbf16, #tpu.memory_space<vmem>>, vector<4x8x8xbf16>
    %c0_45 = arith.constant 0 : index
    %c0_46 = arith.constant 0 : index
    %c0_47 = arith.constant 0 : index
    %60 = vector.load %arg13[%c0_45, %c0_46, %c0_47] : memref<4x8x8xbf16, #tpu.memory_space<vmem>>, vector<4x8x8xbf16>
    "tpu.trace_start"() <{level = 10 : i32, message = "hqd,hdk->hqk"}> : () -> ()
    %cst_48 = arith.constant dense<0.000000e+00> : vector<4x8x8xf32>
    %61 = tpu.matmul %52, %59, %cst_48 {dimension_numbers = #tpu.dot_dimension_numbers<[2], [1], [1], [2], [0, 0, 0, 1, 1, 2], [0], [0]>} : vector<4x8x8xbf16>, vector<4x8x8xbf16>, vector<4x8x8xf32> -> vector<4x8x8xf32>
    "tpu.trace_stop"() : () -> ()
    %c0_49 = arith.constant 0 : index
    %c0_50 = arith.constant 0 : index
    %c0_51 = arith.constant 0 : index
    %62 = vector.load %arg14[%c0_49, %c0_50, %c0_51] : memref<4x8x1xf32, #tpu.memory_space<vmem>>, vector<4x8x1xf32>
    %cst_52 = arith.constant dense<0xFF800000> : vector<4x8xf32>
    %63 = vector.multi_reduction <maximumf>, %61, %cst_52 [2] : vector<4x8x8xf32> to vector<4x8xf32>
    %64 = vector.shape_cast %63 : vector<4x8xf32> to vector<4x8x1xf32>
    %65 = arith.maximumf %62, %64 : vector<4x8x1xf32>
    %66 = arith.subf %62, %65 : vector<4x8x1xf32>
    %67 = math.exp %66 : vector<4x8x1xf32>
    %68 = vector.broadcast %65 : vector<4x8x1xf32> to vector<4x8x8xf32>
    %69 = arith.subf %61, %68 : vector<4x8x8xf32>
    %70 = math.exp %69 : vector<4x8x8xf32>
    %c0_53 = arith.constant 0 : index
    %c0_54 = arith.constant 0 : index
    %c0_55 = arith.constant 0 : index
    %71 = vector.load %arg15[%c0_53, %c0_54, %c0_55] : memref<4x8x1xf32, #tpu.memory_space<vmem>>, vector<4x8x1xf32>
    %72 = arith.mulf %67, %71 : vector<4x8x1xf32>
    %cst_56 = arith.constant dense<0.000000e+00> : vector<4x8xf32>
    %73 = vector.multi_reduction <add>, %70, %cst_56 [2] : vector<4x8x8xf32> to vector<4x8xf32>
    %74 = vector.shape_cast %73 : vector<4x8xf32> to vector<4x8x1xf32>
    %75 = arith.addf %72, %74 : vector<4x8x1xf32>
    %c0_57 = arith.constant 0 : index
    %c0_58 = arith.constant 0 : index
    %c0_59 = arith.constant 0 : index
    %76 = vector.load %arg15[%c0_57, %c0_58, %c0_59] : memref<4x8x1xf32, #tpu.memory_space<vmem>>, vector<4x8x1xf32>
    tpu.vector_store %arg15[%c0_57, %c0_58, %c0_59], %75 {strides = array<i32>} : memref<4x8x1xf32, #tpu.memory_space<vmem>>, vector<4x8x1xf32>,
    %c0_60 = arith.constant 0 : index
    %c0_61 = arith.constant 0 : index
    %c0_62 = arith.constant 0 : index
    %77 = vector.load %arg16[%c0_60, %c0_61, %c0_62] : memref<4x8x8xf32, #tpu.memory_space<vmem>>, vector<4x8x8xf32>
    %78 = vector.broadcast %67 : vector<4x8x1xf32> to vector<4x8x8xf32>
    %79 = arith.mulf %78, %77 : vector<4x8x8xf32>
    %80 = arith.truncf %70 : vector<4x8x8xf32> to vector<4x8x8xbf16>
    "tpu.trace_start"() <{level = 10 : i32, message = "hqk,hkd->hqd"}> : () -> ()
    %cst_63 = arith.constant dense<0.000000e+00> : vector<4x8x8xf32>
    %81 = tpu.matmul %80, %60, %cst_63 {dimension_numbers = #tpu.dot_dimension_numbers<[2], [1], [1], [2], [0, 0, 0, 1, 1, 2], [0], [0]>} : vector<4x8x8xbf16>, vector<4x8x8xbf16>, vector<4x8x8xf32> -> vector<4x8x8xf32>
    "tpu.trace_stop"() : () -> ()
    %82 = arith.addf %79, %81 : vector<4x8x8xf32>
    %c0_64 = arith.constant 0 : index
    %c0_65 = arith.constant 0 : index
    %c0_66 = arith.constant 0 : index
    %83 = vector.load %arg16[%c0_64, %c0_65, %c0_66] : memref<4x8x8xf32, #tpu.memory_space<vmem>>, vector<4x8x8xf32>
    tpu.vector_store %arg16[%c0_64, %c0_65, %c0_66], %82 {strides = array<i32>} : memref<4x8x8xf32, #tpu.memory_space<vmem>>, vector<4x8x8xf32>,
    %c0_67 = arith.constant 0 : index
    %c0_68 = arith.constant 0 : index
    %c0_69 = arith.constant 0 : index
    %84 = vector.load %arg14[%c0_67, %c0_68, %c0_69] : memref<4x8x1xf32, #tpu.memory_space<vmem>>, vector<4x8x1xf32>
    tpu.vector_store %arg14[%c0_67, %c0_68, %c0_69], %65 {strides = array<i32>} : memref<4x8x1xf32, #tpu.memory_space<vmem>>, vector<4x8x1xf32>,
    %c0_70 = arith.constant 0 : index
    %c0_71 = arith.constant 0 : index
    %c0_72 = arith.constant 0 : index
    %85 = vector.load %arg15[%c0_70, %c0_71, %c0_72] : memref<4x8x1xf32, #tpu.memory_space<vmem>>, vector<4x8x1xf32>
    %86 = tpu.reciprocal %85 {approx = true} : vector<4x8x1xf32> -> vector<4x8x1xf32>
    %c0_73 = arith.constant 0 : index
    %c0_74 = arith.constant 0 : index
    %c0_75 = arith.constant 0 : index
    %87 = vector.load %arg16[%c0_73, %c0_74, %c0_75] : memref<4x8x8xf32, #tpu.memory_space<vmem>>, vector<4x8x8xf32>
    %88 = vector.broadcast %86 : vector<4x8x1xf32> to vector<4x8x8xf32>
    %89 = arith.mulf %87, %88 : vector<4x8x8xf32>
    %90 = arith.truncf %89 : vector<4x8x8xf32> to vector<4x8x8xbf16>
    %91 = vector.extract_strided_slice %90 {offsets = [0, 0, 0], sizes = [1, 8, 8], strides = [1, 1, 1]} : vector<4x8x8xbf16> to vector<1x8x8xbf16>
    %92 = vector.shape_cast %91 : vector<1x8x8xbf16> to vector<8x8xbf16>
    %c0_76 = arith.constant 0 : index
    %c0_77 = arith.constant 0 : index
    %c0_78 = arith.constant 0 : index
    %93 = vector.load %arg9[%c0_76, %c0_77, %c0_78] : memref<4x8x32xbf16, #tpu.memory_space<vmem>>, vector<1x8x32xbf16>
    %94 = vector.shape_cast %93 : vector<1x8x32xbf16> to vector<8x32xbf16>
    %cst_79 = arith.constant dense<0.000000e+00> : vector<8x32xf32>
    %95 = tpu.matmul %92, %94, %cst_79 {dimension_numbers = #tpu.dot_dimension_numbers<[1], [0], [0], [1], [0, 0, 1, 1], [], []>} : vector<8x8xbf16>, vector<8x32xbf16>, vector<8x32xf32> -> vector<8x32xf32>
    %96 = vector.extract_strided_slice %90 {offsets = [1, 0, 0], sizes = [1, 8, 8], strides = [1, 1, 1]} : vector<4x8x8xbf16> to vector<1x8x8xbf16>
    %97 = vector.shape_cast %96 : vector<1x8x8xbf16> to vector<8x8xbf16>
    %c1_80 = arith.constant 1 : index
    %c0_81 = arith.constant 0 : index
    %c0_82 = arith.constant 0 : index
    %98 = vector.load %arg9[%c1_80, %c0_81, %c0_82] : memref<4x8x32xbf16, #tpu.memory_space<vmem>>, vector<1x8x32xbf16>
    %99 = vector.shape_cast %98 : vector<1x8x32xbf16> to vector<8x32xbf16>
    %cst_83 = arith.constant dense<0.000000e+00> : vector<8x32xf32>
    %100 = tpu.matmul %97, %99, %cst_83 {dimension_numbers = #tpu.dot_dimension_numbers<[1], [0], [0], [1], [0, 0, 1, 1], [], []>} : vector<8x8xbf16>, vector<8x32xbf16>, vector<8x32xf32> -> vector<8x32xf32>
    %101 = arith.addf %95, %100 : vector<8x32xf32>
    %102 = vector.extract_strided_slice %90 {offsets = [2, 0, 0], sizes = [1, 8, 8], strides = [1, 1, 1]} : vector<4x8x8xbf16> to vector<1x8x8xbf16>
    %103 = vector.shape_cast %102 : vector<1x8x8xbf16> to vector<8x8xbf16>
    %c2_84 = arith.constant 2 : index
    %c0_85 = arith.constant 0 : index
    %c0_86 = arith.constant 0 : index
    %104 = vector.load %arg9[%c2_84, %c0_85, %c0_86] : memref<4x8x32xbf16, #tpu.memory_space<vmem>>, vector<1x8x32xbf16>
    %105 = vector.shape_cast %104 : vector<1x8x32xbf16> to vector<8x32xbf16>
    %cst_87 = arith.constant dense<0.000000e+00> : vector<8x32xf32>
    %106 = tpu.matmul %103, %105, %cst_87 {dimension_numbers = #tpu.dot_dimension_numbers<[1], [0], [0], [1], [0, 0, 1, 1], [], []>} : vector<8x8xbf16>, vector<8x32xbf16>, vector<8x32xf32> -> vector<8x32xf32>
    %107 = arith.addf %101, %106 : vector<8x32xf32>
    %108 = vector.extract_strided_slice %90 {offsets = [3, 0, 0], sizes = [1, 8, 8], strides = [1, 1, 1]} : vector<4x8x8xbf16> to vector<1x8x8xbf16>
    %109 = vector.shape_cast %108 : vector<1x8x8xbf16> to vector<8x8xbf16>
    %c3_88 = arith.constant 3 : index
    %c0_89 = arith.constant 0 : index
    %c0_90 = arith.constant 0 : index
    %110 = vector.load %arg9[%c3_88, %c0_89, %c0_90] : memref<4x8x32xbf16, #tpu.memory_space<vmem>>, vector<1x8x32xbf16>
    %111 = vector.shape_cast %110 : vector<1x8x32xbf16> to vector<8x32xbf16>
    %cst_91 = arith.constant dense<0.000000e+00> : vector<8x32xf32>
    %112 = tpu.matmul %109, %111, %cst_91 {dimension_numbers = #tpu.dot_dimension_numbers<[1], [0], [0], [1], [0, 0, 1, 1], [], []>} : vector<8x8xbf16>, vector<8x32xbf16>, vector<8x32xf32> -> vector<8x32xf32>
    %113 = arith.addf %107, %112 : vector<8x32xf32>
    %c0_92 = arith.constant 0 : index
    %c0_93 = arith.constant 0 : index
    %114 = vector.load %arg10[%c0_92, %c0_93] : memref<1x32xf32, #tpu.memory_space<vmem>>, vector<1x32xf32>
    %115 = vector.broadcast %114 : vector<1x32xf32> to vector<8x32xf32>
    %116 = arith.addf %113, %115 : vector<8x32xf32>
    %c0_94 = arith.constant 0 : index
    %c0_95 = arith.constant 0 : index
    %c0_96 = arith.constant 0 : index
    %117 = vector.load %arg11[%c0_94, %c0_95, %c0_96] : memref<1x8x32xf32, #tpu.memory_space<vmem>>, vector<1x8x32xf32>
    %118 = vector.shape_cast %117 : vector<1x8x32xf32> to vector<8x32xf32>
    %119 = vector.shape_cast %116 : vector<8x32xf32> to vector<1x8x32xf32>
    tpu.vector_store %arg11[%c0_94, %c0_95, %c0_96], %119 {strides = array<i32>} : memref<1x8x32xf32, #tpu.memory_space<vmem>>, vector<1x8x32xf32>,
    return
  }
  func.func @transform_0(%arg0: i32, %arg1: i32) -> (i32, i32, i32) {
    %c0_i32 = arith.constant 0 : i32
    %c0_i32_0 = arith.constant 0 : i32
    %c0_i32_1 = arith.constant 0 : i32
    return %arg0, %c0_i32, %c0_i32_0 : i32, i32, i32
  }
  func.func @transform_1(%arg0: i32, %arg1: i32) -> (i32, i32, i32) {
    %c0_i32 = arith.constant 0 : i32
    %c0_i32_0 = arith.constant 0 : i32
    %c0_i32_1 = arith.constant 0 : i32
    %c0_i32_2 = arith.constant 0 : i32
    return %c0_i32, %c0_i32_0, %c0_i32_1 : i32, i32, i32
  }
  func.func @transform_2(%arg0: i32, %arg1: i32) -> (i32, i32, i32) {
    %c0_i32 = arith.constant 0 : i32
    %c0_i32_0 = arith.constant 0 : i32
    %c0_i32_1 = arith.constant 0 : i32
    %c0_i32_2 = arith.constant 0 : i32
    return %c0_i32, %c0_i32_0, %c0_i32_1 : i32, i32, i32
  }
  func.func @transform_3(%arg0: i32, %arg1: i32) -> (i32, i32, i32) {
    %c0_i32 = arith.constant 0 : i32
    %c0_i32_0 = arith.constant 0 : i32
    %c0_i32_1 = arith.constant 0 : i32
    %c0_i32_2 = arith.constant 0 : i32
    return %c0_i32, %c0_i32_0, %c0_i32_1 : i32, i32, i32
  }
  func.func @transform_4(%arg0: i32, %arg1: i32) -> (i32, i32, i32) {
    %c0_i32 = arith.constant 0 : i32
    %c0_i32_0 = arith.constant 0 : i32
    %c0_i32_1 = arith.constant 0 : i32
    %c0_i32_2 = arith.constant 0 : i32
    return %c0_i32, %c0_i32_0, %c0_i32_1 : i32, i32, i32
  }
  func.func @transform_5(%arg0: i32, %arg1: i32) -> (i32, i32, i32) {
    %c0_i32 = arith.constant 0 : i32
    %c0_i32_0 = arith.constant 0 : i32
    %c0_i32_1 = arith.constant 0 : i32
    %c0_i32_2 = arith.constant 0 : i32
    return %c0_i32, %c0_i32_0, %c0_i32_1 : i32, i32, i32
  }
  func.func @transform_6(%arg0: i32, %arg1: i32) -> (i32, i32, i32) {
    %c0_i32 = arith.constant 0 : i32
    %c0_i32_0 = arith.constant 0 : i32
    %c0_i32_1 = arith.constant 0 : i32
    %c0_i32_2 = arith.constant 0 : i32
    return %c0_i32, %c0_i32_0, %c0_i32_1 : i32, i32, i32
  }
  func.func @transform_7(%arg0: i32, %arg1: i32) -> (i32, i32, i32) {
    %c0_i32 = arith.constant 0 : i32
    %c0_i32_0 = arith.constant 0 : i32
    %c0_i32_1 = arith.constant 0 : i32
    %c0_i32_2 = arith.constant 0 : i32
    return %c0_i32, %c0_i32_0, %c0_i32_1 : i32, i32, i32
  }
  func.func @transform_8(%arg0: i32, %arg1: i32) -> (i32, i32) {
    %c0_i32 = arith.constant 0 : i32
    %c0_i32_0 = arith.constant 0 : i32
    %c0_i32_1 = arith.constant 0 : i32
    return %c0_i32, %c0_i32_0 : i32, i32
  }
  func.func @transform_9(%arg0: i32, %arg1: i32) -> (i32, i32, i32) {
    %c0_i32 = arith.constant 0 : i32
    %c0_i32_0 = arith.constant 0 : i32
    return %arg0, %arg1, %c0_i32 : i32, i32, i32
  }
}

module attributes {stable_mosaic.version = 11 : i64} {
  func.func @_cross_attention_kernel(%arg0: i32, %arg1: i32, %arg2: memref<1x8x32xbf16, #tpu.memory_space<vmem>>, %arg3: memref<4x8x32xbf16, #tpu.memory_space<vmem>>, %arg4: memref<4x1x8xf32, #tpu.memory_space<vmem>>, %arg5: memref<4x8x32xbf16, #tpu.memory_space<vmem>>, %arg6: memref<4x8x1xf32, #tpu.memory_space<vmem>>, %arg7: memref<4x8x32xbf16, #tpu.memory_space<vmem>>, %arg8: memref<4x1x8xf32, #tpu.memory_space<vmem>>, %arg9: memref<4x8x32xbf16, #tpu.memory_space<vmem>>, %arg10: memref<1x32xf32, #tpu.memory_space<vmem>>, %arg11: memref<1x8x32xf32, #tpu.memory_space<vmem>>, %arg12: memref<4x8x8xbf16, #tpu.memory_space<vmem>>, %arg13: memref<4x8x8xbf16, #tpu.memory_space<vmem>>, %arg14: memref<4x8x1xf32, #tpu.memory_space<vmem>>, %arg15: memref<4x8x1xf32, #tpu.memory_space<vmem>>, %arg16: memref<4x8x8xf32, #tpu.memory_space<vmem>>) attributes {dimension_semantics = [#tpu.dimension_semantics<parallel>, #tpu.dimension_semantics<arbitrary>], iteration_bounds = array<i64: 2, 1>, scalar_prefetch = 0 : i64, scratch_operands = 5 : i64, tpu.core_type = #tpu.core_type<tc>, window_params = [{transform_indices = @transform_0, window_bounds = array<i64: 1, 8, 32>}, {pipeline_mode = #tpu.pipeline_mode<synchronous>, transform_indices = @transform_1, window_bounds = array<i64: 4, 8, 32>}, {pipeline_mode = #tpu.pipeline_mode<synchronous>, transform_indices = @transform_2, window_bounds = array<i64: 4, 1, 8>}, {pipeline_mode = #tpu.pipeline_mode<synchronous>, transform_indices = @transform_3, window_bounds = array<i64: 4, 8, 32>}, {pipeline_mode = #tpu.pipeline_mode<synchronous>, transform_indices = @transform_4, window_bounds = array<i64: 4, 8, 1>}, {pipeline_mode = #tpu.pipeline_mode<synchronous>, transform_indices = @transform_5, window_bounds = array<i64: 4, 8, 32>}, {pipeline_mode = #tpu.pipeline_mode<synchronous>, transform_indices = @transform_6, window_bounds = array<i64: 4, 1, 8>}, {pipeline_mode = #tpu.pipeline_mode<synchronous>, transform_indices = @transform_7, window_bounds = array<i64: 4, 8, 32>}, {pipeline_mode = #tpu.pipeline_mode<synchronous>, transform_indices = @transform_8, window_bounds = array<i64: 1, 32>}, {transform_indices = @transform_9, window_bounds = array<i64: 1, 8, 32>}]} {
    %c0_i32 = arith.constant 0 : i32
    %0 = arith.cmpi eq, %arg1, %c0_i32 : i32
    %1 = arith.extui %0 : i1 to i32
    %c0_i32_0 = arith.constant 0 : i32
    %2 = arith.cmpi ne, %1, %c0_i32_0 : i32
    scf.if %2 {
      %c0_97 = arith.constant 0 : index
      %c0_98 = arith.constant 0 : index
      %c0_99 = arith.constant 0 : index
      %120 = vector.load %arg2[%c0_97, %c0_98, %c0_99] : memref<1x8x32xbf16, #tpu.memory_space<vmem>>, vector<1x8x32xbf16>
      %121 = vector.shape_cast %120 : vector<1x8x32xbf16> to vector<8x32xbf16>
      %c0_100 = arith.constant 0 : index
      %c0_101 = arith.constant 0 : index
      %c0_102 = arith.constant 0 : index
      %122 = vector.load %arg5[%c0_100, %c0_101, %c0_102] : memref<4x8x32xbf16, #tpu.memory_space<vmem>>, vector<1x8x32xbf16>
      %123 = vector.shape_cast %122 : vector<1x8x32xbf16> to vector<8x32xbf16>
      %cst_103 = arith.constant dense<0.000000e+00> : vector<8x8xf32>
      %124 = tpu.matmul %123, %121, %cst_103 {dimension_numbers = #tpu.dot_dimension_numbers<[1], [1], [0], [0], [0, 0, 1, 0], [], []>} : vector<8x32xbf16>, vector<8x32xbf16>, vector<8x8xf32> -> vector<8x8xf32>
      %c0_104 = arith.constant 0 : index
      %c0_105 = arith.constant 0 : index
      %c0_106 = arith.constant 0 : index
      %125 = vector.load %arg6[%c0_104, %c0_105, %c0_106] : memref<4x8x1xf32, #tpu.memory_space<vmem>>, vector<1x8x1xf32>
      %126 = vector.shape_cast %125 : vector<1x8x1xf32> to vector<8x1xf32>
      %127 = vector.broadcast %126 : vector<8x1xf32> to vector<8x8xf32>
      %128 = arith.addf %124, %127 : vector<8x8xf32>
      %129 = arith.truncf %128 : vector<8x8xf32> to vector<8x8xbf16>
      %c0_107 = arith.constant 0 : index
      %c0_108 = arith.constant 0 : index
      %c0_109 = arith.constant 0 : index
      %130 = vector.load %arg12[%c0_107, %c0_108, %c0_109] : memref<4x8x8xbf16, #tpu.memory_space<vmem>>, vector<1x8x8xbf16>
      %131 = vector.shape_cast %130 : vector<1x8x8xbf16> to vector<8x8xbf16>
      %132 = vector.shape_cast %129 : vector<8x8xbf16> to vector<1x8x8xbf16>
      tpu.vector_store %arg12[%c0_107, %c0_108, %c0_109], %132 {strides = array<i32>} : memref<4x8x8xbf16, #tpu.memory_space<vmem>>, vector<1x8x8xbf16>,
      %c0_110 = arith.constant 0 : index
      %c0_111 = arith.constant 0 : index
      %c0_112 = arith.constant 0 : index
      %133 = vector.load %arg7[%c0_110, %c0_111, %c0_112] : memref<4x8x32xbf16, #tpu.memory_space<vmem>>, vector<1x8x32xbf16>
      %134 = vector.shape_cast %133 : vector<1x8x32xbf16> to vector<8x32xbf16>
      %cst_113 = arith.constant dense<0.000000e+00> : vector<8x8xf32>
      %135 = tpu.matmul %121, %134, %cst_113 {dimension_numbers = #tpu.dot_dimension_numbers<[1], [1], [0], [0], [0, 0, 1, 0], [], []>} : vector<8x32xbf16>, vector<8x32xbf16>, vector<8x8xf32> -> vector<8x8xf32>
      %c0_114 = arith.constant 0 : index
      %c0_115 = arith.constant 0 : index
      %c0_116 = arith.constant 0 : index
      %136 = vector.load %arg8[%c0_114, %c0_115, %c0_116] : memref<4x1x8xf32, #tpu.memory_space<vmem>>, vector<1x1x8xf32>
      %137 = vector.shape_cast %136 : vector<1x1x8xf32> to vector<1x8xf32>
      %138 = vector.broadcast %137 : vector<1x8xf32> to vector<8x8xf32>
      %139 = arith.addf %135, %138 : vector<8x8xf32>
      %140 = arith.truncf %139 : vector<8x8xf32> to vector<8x8xbf16>
      %c0_117 = arith.constant 0 : index
      %c0_118 = arith.constant 0 : index
      %c0_119 = arith.constant 0 : index
      %141 = vector.load %arg13[%c0_117, %c0_118, %c0_119] : memref<4x8x8xbf16, #tpu.memory_space<vmem>>, vector<1x8x8xbf16>
      %142 = vector.shape_cast %141 : vector<1x8x8xbf16> to vector<8x8xbf16>
      %143 = vector.shape_cast %140 : vector<8x8xbf16> to vector<1x8x8xbf16>
      tpu.vector_store %arg13[%c0_117, %c0_118, %c0_119], %143 {strides = array<i32>} : memref<4x8x8xbf16, #tpu.memory_space<vmem>>, vector<1x8x8xbf16>,
      %c1_120 = arith.constant 1 : index
      %c0_121 = arith.constant 0 : index
      %c0_122 = arith.constant 0 : index
      %144 = vector.load %arg5[%c1_120, %c0_121, %c0_122] : memref<4x8x32xbf16, #tpu.memory_space<vmem>>, vector<1x8x32xbf16>
      %145 = vector.shape_cast %144 : vector<1x8x32xbf16> to vector<8x32xbf16>
      %cst_123 = arith.constant dense<0.000000e+00> : vector<8x8xf32>
      %146 = tpu.matmul %145, %121, %cst_123 {dimension_numbers = #tpu.dot_dimension_numbers<[1], [1], [0], [0], [0, 0, 1, 0], [], []>} : vector<8x32xbf16>, vector<8x32xbf16>, vector<8x8xf32> -> vector<8x8xf32>
      %c1_124 = arith.constant 1 : index
      %c0_125 = arith.constant 0 : index
      %c0_126 = arith.constant 0 : index
      %147 = vector.load %arg6[%c1_124, %c0_125, %c0_126] : memref<4x8x1xf32, #tpu.memory_space<vmem>>, vector<1x8x1xf32>
      %148 = vector.shape_cast %147 : vector<1x8x1xf32> to vector<8x1xf32>
      %149 = vector.broadcast %148 : vector<8x1xf32> to vector<8x8xf32>
      %150 = arith.addf %146, %149 : vector<8x8xf32>
      %151 = arith.truncf %150 : vector<8x8xf32> to vector<8x8xbf16>
      %c1_127 = arith.constant 1 : index
      %c0_128 = arith.constant 0 : index
      %c0_129 = arith.constant 0 : index
      %152 = vector.load %arg12[%c1_127, %c0_128, %c0_129] : memref<4x8x8xbf16, #tpu.memory_space<vmem>>, vector<1x8x8xbf16>
      %153 = vector.shape_cast %152 : vector<1x8x8xbf16> to vector<8x8xbf16>
      %154 = vector.shape_cast %151 : vector<8x8xbf16> to vector<1x8x8xbf16>
      tpu.vector_store %arg12[%c1_127, %c0_128, %c0_129], %154 {strides = array<i32>} : memref<4x8x8xbf16, #tpu.memory_space<vmem>>, vector<1x8x8xbf16>,
      %c1_130 = arith.constant 1 : index
      %c0_131 = arith.constant 0 : index
      %c0_132 = arith.constant 0 : index
      %155 = vector.load %arg7[%c1_130, %c0_131, %c0_132] : memref<4x8x32xbf16, #tpu.memory_space<vmem>>, vector<1x8x32xbf16>
      %156 = vector.shape_cast %155 : vector<1x8x32xbf16> to vector<8x32xbf16>
      %cst_133 = arith.constant dense<0.000000e+00> : vector<8x8xf32>
      %157 = tpu.matmul %121, %156, %cst_133 {dimension_numbers = #tpu.dot_dimension_numbers<[1], [1], [0], [0], [0, 0, 1, 0], [], []>} : vector<8x32xbf16>, vector<8x32xbf16>, vector<8x8xf32> -> vector<8x8xf32>
      %c1_134 = arith.constant 1 : index
      %c0_135 = arith.constant 0 : index
      %c0_136 = arith.constant 0 : index
      %158 = vector.load %arg8[%c1_134, %c0_135, %c0_136] : memref<4x1x8xf32, #tpu.memory_space<vmem>>, vector<1x1x8xf32>
      %159 = vector.shape_cast %158 : vector<1x1x8xf32> to vector<1x8xf32>
      %160 = vector.broadcast %159 : vector<1x8xf32> to vector<8x8xf32>
      %161 = arith.addf %157, %160 : vector<8x8xf32>
      %162 = arith.truncf %161 : vector<8x8xf32> to vector<8x8xbf16>
      %c1_137 = arith.constant 1 : index
      %c0_138 = arith.constant 0 : index
      %c0_139 = arith.constant 0 : index
      %163 = vector.load %arg13[%c1_137, %c0_138, %c0_139] : memref<4x8x8xbf16, #tpu.memory_space<vmem>>, vector<1x8x8xbf16>
      %164 = vector.shape_cast %163 : vector<1x8x8xbf16> to vector<8x8xbf16>
      %165 = vector.shape_cast %162 : vector<8x8xbf16> to vector<1x8x8xbf16>
      tpu.vector_store %arg13[%c1_137, %c0_138, %c0_139], %165 {strides = array<i32>} : memref<4x8x8xbf16, #tpu.memory_space<vmem>>, vector<1x8x8xbf16>,
      %c2_140 = arith.constant 2 : index
      %c0_141 = arith.constant 0 : index
      %c0_142 = arith.constant 0 : index
      %166 = vector.load %arg5[%c2_140, %c0_141, %c0_142] : memref<4x8x32xbf16, #tpu.memory_space<vmem>>, vector<1x8x32xbf16>
      %167 = vector.shape_cast %166 : vector<1x8x32xbf16> to vector<8x32xbf16>
      %cst_143 = arith.constant dense<0.000000e+00> : vector<8x8xf32>
      %168 = tpu.matmul %167, %121, %cst_143 {dimension_numbers = #tpu.dot_dimension_numbers<[1], [1], [0], [0], [0, 0, 1, 0], [], []>} : vector<8x32xbf16>, vector<8x32xbf16>, vector<8x8xf32> -> vector<8x8xf32>
      %c2_144 = arith.constant 2 : index
      %c0_145 = arith.constant 0 : index
      %c0_146 = arith.constant 0 : index
      %169 = vector.load %arg6[%c2_144, %c0_145, %c0_146] : memref<4x8x1xf32, #tpu.memory_space<vmem>>, vector<1x8x1xf32>
      %170 = vector.shape_cast %169 : vector<1x8x1xf32> to vector<8x1xf32>
      %171 = vector.broadcast %170 : vector<8x1xf32> to vector<8x8xf32>
      %172 = arith.addf %168, %171 : vector<8x8xf32>
      %173 = arith.truncf %172 : vector<8x8xf32> to vector<8x8xbf16>
      %c2_147 = arith.constant 2 : index
      %c0_148 = arith.constant 0 : index
      %c0_149 = arith.constant 0 : index
      %174 = vector.load %arg12[%c2_147, %c0_148, %c0_149] : memref<4x8x8xbf16, #tpu.memory_space<vmem>>, vector<1x8x8xbf16>
      %175 = vector.shape_cast %174 : vector<1x8x8xbf16> to vector<8x8xbf16>
      %176 = vector.shape_cast %173 : vector<8x8xbf16> to vector<1x8x8xbf16>
      tpu.vector_store %arg12[%c2_147, %c0_148, %c0_149], %176 {strides = array<i32>} : memref<4x8x8xbf16, #tpu.memory_space<vmem>>, vector<1x8x8xbf16>,
      %c2_150 = arith.constant 2 : index
      %c0_151 = arith.constant 0 : index
      %c0_152 = arith.constant 0 : index
      %177 = vector.load %arg7[%c2_150, %c0_151, %c0_152] : memref<4x8x32xbf16, #tpu.memory_space<vmem>>, vector<1x8x32xbf16>
      %178 = vector.shape_cast %177 : vector<1x8x32xbf16> to vector<8x32xbf16>
      %cst_153 = arith.constant dense<0.000000e+00> : vector<8x8xf32>
      %179 = tpu.matmul %121, %178, %cst_153 {dimension_numbers = #tpu.dot_dimension_numbers<[1], [1], [0], [0], [0, 0, 1, 0], [], []>} : vector<8x32xbf16>, vector<8x32xbf16>, vector<8x8xf32> -> vector<8x8xf32>
      %c2_154 = arith.constant 2 : index
      %c0_155 = arith.constant 0 : index
      %c0_156 = arith.constant 0 : index
      %180 = vector.load %arg8[%c2_154, %c0_155, %c0_156] : memref<4x1x8xf32, #tpu.memory_space<vmem>>, vector<1x1x8xf32>
      %181 = vector.shape_cast %180 : vector<1x1x8xf32> to vector<1x8xf32>
      %182 = vector.broadcast %181 : vector<1x8xf32> to vector<8x8xf32>
      %183 = arith.addf %179, %182 : vector<8x8xf32>
      %184 = arith.truncf %183 : vector<8x8xf32> to vector<8x8xbf16>
      %c2_157 = arith.constant 2 : index
      %c0_158 = arith.constant 0 : index
      %c0_159 = arith.constant 0 : index
      %185 = vector.load %arg13[%c2_157, %c0_158, %c0_159] : memref<4x8x8xbf16, #tpu.memory_space<vmem>>, vector<1x8x8xbf16>
      %186 = vector.shape_cast %185 : vector<1x8x8xbf16> to vector<8x8xbf16>
      %187 = vector.shape_cast %184 : vector<8x8xbf16> to vector<1x8x8xbf16>
      tpu.vector_store %arg13[%c2_157, %c0_158, %c0_159], %187 {strides = array<i32>} : memref<4x8x8xbf16, #tpu.memory_space<vmem>>, vector<1x8x8xbf16>,
      %c3_160 = arith.constant 3 : index
      %c0_161 = arith.constant 0 : index
      %c0_162 = arith.constant 0 : index
      %188 = vector.load %arg5[%c3_160, %c0_161, %c0_162] : memref<4x8x32xbf16, #tpu.memory_space<vmem>>, vector<1x8x32xbf16>
      %189 = vector.shape_cast %188 : vector<1x8x32xbf16> to vector<8x32xbf16>
      %cst_163 = arith.constant dense<0.000000e+00> : vector<8x8xf32>
      %190 = tpu.matmul %189, %121, %cst_163 {dimension_numbers = #tpu.dot_dimension_numbers<[1], [1], [0], [0], [0, 0, 1, 0], [], []>} : vector<8x32xbf16>, vector<8x32xbf16>, vector<8x8xf32> -> vector<8x8xf32>
      %c3_164 = arith.constant 3 : index
      %c0_165 = arith.constant 0 : index
      %c0_166 = arith.constant 0 : index
      %191 = vector.load %arg6[%c3_164, %c0_165, %c0_166] : memref<4x8x1xf32, #tpu.memory_space<vmem>>, vector<1x8x1xf32>
      %192 = vector.shape_cast %191 : vector<1x8x1xf32> to vector<8x1xf32>
      %193 = vector.broadcast %192 : vector<8x1xf32> to vector<8x8xf32>
      %194 = arith.addf %190, %193 : vector<8x8xf32>
      %195 = arith.truncf %194 : vector<8x8xf32> to vector<8x8xbf16>
      %c3_167 = arith.constant 3 : index
      %c0_168 = arith.constant 0 : index
      %c0_169 = arith.constant 0 : index
      %196 = vector.load %arg12[%c3_167, %c0_168, %c0_169] : memref<4x8x8xbf16, #tpu.memory_space<vmem>>, vector<1x8x8xbf16>
      %197 = vector.shape_cast %196 : vector<1x8x8xbf16> to vector<8x8xbf16>
      %198 = vector.shape_cast %195 : vector<8x8xbf16> to vector<1x8x8xbf16>
      tpu.vector_store %arg12[%c3_167, %c0_168, %c0_169], %198 {strides = array<i32>} : memref<4x8x8xbf16, #tpu.memory_space<vmem>>, vector<1x8x8xbf16>,
      %c3_170 = arith.constant 3 : index
      %c0_171 = arith.constant 0 : index
      %c0_172 = arith.constant 0 : index
      %199 = vector.load %arg7[%c3_170, %c0_171, %c0_172] : memref<4x8x32xbf16, #tpu.memory_space<vmem>>, vector<1x8x32xbf16>
      %200 = vector.shape_cast %199 : vector<1x8x32xbf16> to vector<8x32xbf16>
      %cst_173 = arith.constant dense<0.000000e+00> : vector<8x8xf32>
      %201 = tpu.matmul %121, %200, %cst_173 {dimension_numbers = #tpu.dot_dimension_numbers<[1], [1], [0], [0], [0, 0, 1, 0], [], []>} : vector<8x32xbf16>, vector<8x32xbf16>, vector<8x8xf32> -> vector<8x8xf32>
      %c3_174 = arith.constant 3 : index
      %c0_175 = arith.constant 0 : index
      %c0_176 = arith.constant 0 : index
      %202 = vector.load %arg8[%c3_174, %c0_175, %c0_176] : memref<4x1x8xf32, #tpu.memory_space<vmem>>, vector<1x1x8xf32>
      %203 = vector.shape_cast %202 : vector<1x1x8xf32> to vector<1x8xf32>
      %204 = vector.broadcast %203 : vector<1x8xf32> to vector<8x8xf32>
      %205 = arith.addf %201, %204 : vector<8x8xf32>
      %206 = arith.truncf %205 : vector<8x8xf32> to vector<8x8xbf16>
      %c3_177 = arith.constant 3 : index
      %c0_178 = arith.constant 0 : index
      %c0_179 = arith.constant 0 : index
      %207 = vector.load %arg13[%c3_177, %c0_178, %c0_179] : memref<4x8x8xbf16, #tpu.memory_space<vmem>>, vector<1x8x8xbf16>
      %208 = vector.shape_cast %207 : vector<1x8x8xbf16> to vector<8x8xbf16>
      %209 = vector.shape_cast %206 : vector<8x8xbf16> to vector<1x8x8xbf16>
      tpu.vector_store %arg13[%c3_177, %c0_178, %c0_179], %209 {strides = array<i32>} : memref<4x8x8xbf16, #tpu.memory_space<vmem>>, vector<1x8x8xbf16>,
    } else {
    }
    %c8_i32 = arith.constant 8 : i32
    %3 = arith.muli %arg1, %c8_i32 : i32
    %4 = tpu.assume_multiple %3, 8 : i32
    %c0 = arith.constant 0 : index
    %5 = arith.index_cast %4 : i32 to index
    %c0_1 = arith.constant 0 : index
    %6 = vector.load %arg2[%c0, %5, %c0_1] : memref<1x8x32xbf16, #tpu.memory_space<vmem>>, vector<1x8x32xbf16>
    %7 = vector.shape_cast %6 : vector<1x8x32xbf16> to vector<8x32xbf16>
    %c0_2 = arith.constant 0 : index
    %c0_3 = arith.constant 0 : index
    %c0_4 = arith.constant 0 : index
    %8 = vector.load %arg3[%c0_2, %c0_3, %c0_4] : memref<4x8x32xbf16, #tpu.memory_space<vmem>>, vector<1x8x32xbf16>
    %9 = vector.shape_cast %8 : vector<1x8x32xbf16> to vector<8x32xbf16>
    %cst = arith.constant dense<0.000000e+00> : vector<8x8xf32>
    %10 = tpu.matmul %7, %9, %cst {dimension_numbers = #tpu.dot_dimension_numbers<[1], [1], [0], [0], [0, 0, 1, 0], [], []>} : vector<8x32xbf16>, vector<8x32xbf16>, vector<8x8xf32> -> vector<8x8xf32>
    %c0_5 = arith.constant 0 : index
    %c0_6 = arith.constant 0 : index
    %c0_7 = arith.constant 0 : index
    %11 = vector.load %arg4[%c0_5, %c0_6, %c0_7] : memref<4x1x8xf32, #tpu.memory_space<vmem>>, vector<1x1x8xf32>
    %12 = vector.shape_cast %11 : vector<1x1x8xf32> to vector<1x8xf32>
    %13 = vector.broadcast %12 : vector<1x8xf32> to vector<8x8xf32>
    %14 = arith.addf %10, %13 : vector<8x8xf32>
    %cst_8 = arith.constant 0.353553385 : f32
    %15 = vector.broadcast %cst_8 : f32 to vector<8x8xf32>
    %16 = arith.mulf %14, %15 : vector<8x8xf32>
    %17 = arith.truncf %16 : vector<8x8xf32> to vector<8x8xbf16>
    %c1 = arith.constant 1 : index
    %c0_9 = arith.constant 0 : index
    %c0_10 = arith.constant 0 : index
    %18 = vector.load %arg3[%c1, %c0_9, %c0_10] : memref<4x8x32xbf16, #tpu.memory_space<vmem>>, vector<1x8x32xbf16>
    %19 = vector.shape_cast %18 : vector<1x8x32xbf16> to vector<8x32xbf16>
    %cst_11 = arith.constant dense<0.000000e+00> : vector<8x8xf32>
    %20 = tpu.matmul %7, %19, %cst_11 {dimension_numbers = #tpu.dot_dimension_numbers<[1], [1], [0], [0], [0, 0, 1, 0], [], []>} : vector<8x32xbf16>, vector<8x32xbf16>, vector<8x8xf32> -> vector<8x8xf32>
    %c1_12 = arith.constant 1 : index
    %c0_13 = arith.constant 0 : index
    %c0_14 = arith.constant 0 : index
    %21 = vector.load %arg4[%c1_12, %c0_13, %c0_14] : memref<4x1x8xf32, #tpu.memory_space<vmem>>, vector<1x1x8xf32>
    %22 = vector.shape_cast %21 : vector<1x1x8xf32> to vector<1x8xf32>
    %23 = vector.broadcast %22 : vector<1x8xf32> to vector<8x8xf32>
    %24 = arith.addf %20, %23 : vector<8x8xf32>
    %cst_15 = arith.constant 0.353553385 : f32
    %25 = vector.broadcast %cst_15 : f32 to vector<8x8xf32>
    %26 = arith.mulf %24, %25 : vector<8x8xf32>
    %27 = arith.truncf %26 : vector<8x8xf32> to vector<8x8xbf16>
    %c2 = arith.constant 2 : index
    %c0_16 = arith.constant 0 : index
    %c0_17 = arith.constant 0 : index
    %28 = vector.load %arg3[%c2, %c0_16, %c0_17] : memref<4x8x32xbf16, #tpu.memory_space<vmem>>, vector<1x8x32xbf16>
    %29 = vector.shape_cast %28 : vector<1x8x32xbf16> to vector<8x32xbf16>
    %cst_18 = arith.constant dense<0.000000e+00> : vector<8x8xf32>
    %30 = tpu.matmul %7, %29, %cst_18 {dimension_numbers = #tpu.dot_dimension_numbers<[1], [1], [0], [0], [0, 0, 1, 0], [], []>} : vector<8x32xbf16>, vector<8x32xbf16>, vector<8x8xf32> -> vector<8x8xf32>
    %c2_19 = arith.constant 2 : index
    %c0_20 = arith.constant 0 : index
    %c0_21 = arith.constant 0 : index
    %31 = vector.load %arg4[%c2_19, %c0_20, %c0_21] : memref<4x1x8xf32, #tpu.memory_space<vmem>>, vector<1x1x8xf32>
    %32 = vector.shape_cast %31 : vector<1x1x8xf32> to vector<1x8xf32>
    %33 = vector.broadcast %32 : vector<1x8xf32> to vector<8x8xf32>
    %34 = arith.addf %30, %33 : vector<8x8xf32>
    %cst_22 = arith.constant 0.353553385 : f32
    %35 = vector.broadcast %cst_22 : f32 to vector<8x8xf32>
    %36 = arith.mulf %34, %35 : vector<8x8xf32>
    %37 = arith.truncf %36 : vector<8x8xf32> to vector<8x8xbf16>
    %c3 = arith.constant 3 : index
    %c0_23 = arith.constant 0 : index
    %c0_24 = arith.constant 0 : index
    %38 = vector.load %arg3[%c3, %c0_23, %c0_24] : memref<4x8x32xbf16, #tpu.memory_space<vmem>>, vector<1x8x32xbf16>
    %39 = vector.shape_cast %38 : vector<1x8x32xbf16> to vector<8x32xbf16>
    %cst_25 = arith.constant dense<0.000000e+00> : vector<8x8xf32>
    %40 = tpu.matmul %7, %39, %cst_25 {dimension_numbers = #tpu.dot_dimension_numbers<[1], [1], [0], [0], [0, 0, 1, 0], [], []>} : vector<8x32xbf16>, vector<8x32xbf16>, vector<8x8xf32> -> vector<8x8xf32>
    %c3_26 = arith.constant 3 : index
    %c0_27 = arith.constant 0 : index
    %c0_28 = arith.constant 0 : index
    %41 = vector.load %arg4[%c3_26, %c0_27, %c0_28] : memref<4x1x8xf32, #tpu.memory_space<vmem>>, vector<1x1x8xf32>
    %42 = vector.shape_cast %41 : vector<1x1x8xf32> to vector<1x8xf32>
    %43 = vector.broadcast %42 : vector<1x8xf32> to vector<8x8xf32>
    %44 = arith.addf %40, %43 : vector<8x8xf32>
    %cst_29 = arith.constant 0.353553385 : f32
    %45 = vector.broadcast %cst_29 : f32 to vector<8x8xf32>
    %46 = arith.mulf %44, %45 : vector<8x8xf32>
    %47 = arith.truncf %46 : vector<8x8xf32> to vector<8x8xbf16>
    %48 = vector.shape_cast %17 : vector<8x8xbf16> to vector<1x8x8xbf16>
    %49 = vector.shape_cast %27 : vector<8x8xbf16> to vector<1x8x8xbf16>
    %50 = vector.shape_cast %37 : vector<8x8xbf16> to vector<1x8x8xbf16>
    %51 = vector.shape_cast %47 : vector<8x8xbf16> to vector<1x8x8xbf16>
    %52 = tpu.concatenate %48, %49, %50, %51 in 0 : vector<1x8x8xbf16>, vector<1x8x8xbf16>, vector<1x8x8xbf16>, vector<1x8x8xbf16> -> vector<4x8x8xbf16>
    %cst_30 = arith.constant 0xFF800000 : f32
    %53 = vector.broadcast %cst_30 : f32 to vector<4x8x1xf32>
    %c0_31 = arith.constant 0 : index
    %c0_32 = arith.constant 0 : index
    %c0_33 = arith.constant 0 : index
    %54 = vector.load %arg14[%c0_31, %c0_32, %c0_33] : memref<4x8x1xf32, #tpu.memory_space<vmem>>, vector<4x8x1xf32>
    tpu.vector_store %arg14[%c0_31, %c0_32, %c0_33], %53 {strides = array<i32>} : memref<4x8x1xf32, #tpu.memory_space<vmem>>, vector<4x8x1xf32>,
    %cst_34 = arith.constant 0.000000e+00 : f32
    %55 = vector.broadcast %cst_34 : f32 to vector<4x8x1xf32>
    %c0_35 = arith.constant 0 : index
    %c0_36 = arith.constant 0 : index
    %c0_37 = arith.constant 0 : index
    %56 = vector.load %arg15[%c0_35, %c0_36, %c0_37] : memref<4x8x1xf32, #tpu.memory_space<vmem>>, vector<4x8x1xf32>
    tpu.vector_store %arg15[%c0_35, %c0_36, %c0_37], %55 {strides = array<i32>} : memref<4x8x1xf32, #tpu.memory_space<vmem>>, vector<4x8x1xf32>,
    %cst_38 = arith.constant 0.000000e+00 : f32
    %57 = vector.broadcast %cst_38 : f32 to vector<4x8x8xf32>
    %c0_39 = arith.constant 0 : index
    %c0_40 = arith.constant 0 : index
    %c0_41 = arith.constant 0 : index
    %58 = vector.load %arg16[%c0_39, %c0_40, %c0_41] : memref<4x8x8xf32, #tpu.memory_space<vmem>>, vector<4x8x8xf32>
    tpu.vector_store %arg16[%c0_39, %c0_40, %c0_41], %57 {strides = array<i32>} : memref<4x8x8xf32, #tpu.memory_space<vmem>>, vector<4x8x8xf32>,
    %c0_42 = arith.constant 0 : index
    %c0_43 = arith.constant 0 : index
    %c0_44 = arith.constant 0 : index
    %59 = vector.load %arg12[%c0_42, %c0_43, %c0_44] : memref<4x8x8xbf16, #tpu.memory_space<vmem>>, vector<4x8x8xbf16>
    %c0_45 = arith.constant 0 : index
    %c0_46 = arith.constant 0 : index
    %c0_47 = arith.constant 0 : index
    %60 = vector.load %arg13[%c0_45, %c0_46, %c0_47] : memref<4x8x8xbf16, #tpu.memory_space<vmem>>, vector<4x8x8xbf16>
    "tpu.trace_start"() <{level = 10 : i32, message = "hqd,hdk->hqk"}> : () -> ()
    %cst_48 = arith.constant dense<0.000000e+00> : vector<4x8x8xf32>
    %61 = tpu.matmul %52, %59, %cst_48 {dimension_numbers = #tpu.dot_dimension_numbers<[2], [1], [1], [2], [0, 0, 0, 1, 1, 2], [0], [0]>} : vector<4x8x8xbf16>, vector<4x8x8xbf16>, vector<4x8x8xf32> -> vector<4x8x8xf32>
    "tpu.trace_stop"() : () -> ()
    %c0_49 = arith.constant 0 : index
    %c0_50 = arith.constant 0 : index
    %c0_51 = arith.constant 0 : index
    %62 = vector.load %arg14[%c0_49, %c0_50, %c0_51] : memref<4x8x1xf32, #tpu.memory_space<vmem>>, vector<4x8x1xf32>
    %cst_52 = arith.constant dense<0xFF800000> : vector<4x8xf32>
    %63 = vector.multi_reduction <maximumf>, %61, %cst_52 [2] : vector<4x8x8xf32> to vector<4x8xf32>
    %64 = vector.shape_cast %63 : vector<4x8xf32> to vector<4x8x1xf32>
    %65 = arith.maximumf %62, %64 : vector<4x8x1xf32>
    %66 = arith.subf %62, %65 : vector<4x8x1xf32>
    %67 = math.exp %66 : vector<4x8x1xf32>
    %68 = vector.broadcast %65 : vector<4x8x1xf32> to vector<4x8x8xf32>
    %69 = arith.subf %61, %68 : vector<4x8x8xf32>
    %70 = math.exp %69 : vector<4x8x8xf32>
    %c0_53 = arith.constant 0 : index
    %c0_54 = arith.constant 0 : index
    %c0_55 = arith.constant 0 : index
    %71 = vector.load %arg15[%c0_53, %c0_54, %c0_55] : memref<4x8x1xf32, #tpu.memory_space<vmem>>, vector<4x8x1xf32>
    %72 = arith.mulf %67, %71 : vector<4x8x1xf32>
    %cst_56 = arith.constant dense<0.000000e+00> : vector<4x8xf32>
    %73 = vector.multi_reduction <add>, %70, %cst_56 [2] : vector<4x8x8xf32> to vector<4x8xf32>
    %74 = vector.shape_cast %73 : vector<4x8xf32> to vector<4x8x1xf32>
    %75 = arith.addf %72, %74 : vector<4x8x1xf32>
    %c0_57 = arith.constant 0 : index
    %c0_58 = arith.constant 0 : index
    %c0_59 = arith.constant 0 : index
    %76 = vector.load %arg15[%c0_57, %c0_58, %c0_59] : memref<4x8x1xf32, #tpu.memory_space<vmem>>, vector<4x8x1xf32>
    tpu.vector_store %arg15[%c0_57, %c0_58, %c0_59], %75 {strides = array<i32>} : memref<4x8x1xf32, #tpu.memory_space<vmem>>, vector<4x8x1xf32>,
    %c0_60 = arith.constant 0 : index
    %c0_61 = arith.constant 0 : index
    %c0_62 = arith.constant 0 : index
    %77 = vector.load %arg16[%c0_60, %c0_61, %c0_62] : memref<4x8x8xf32, #tpu.memory_space<vmem>>, vector<4x8x8xf32>
    %78 = vector.broadcast %67 : vector<4x8x1xf32> to vector<4x8x8xf32>
    %79 = arith.mulf %78, %77 : vector<4x8x8xf32>
    %80 = arith.truncf %70 : vector<4x8x8xf32> to vector<4x8x8xbf16>
    "tpu.trace_start"() <{level = 10 : i32, message = "hqk,hkd->hqd"}> : () -> ()
    %cst_63 = arith.constant dense<0.000000e+00> : vector<4x8x8xf32>
    %81 = tpu.matmul %80, %60, %cst_63 {dimension_numbers = #tpu.dot_dimension_numbers<[2], [1], [1], [2], [0, 0, 0, 1, 1, 2], [0], [0]>} : vector<4x8x8xbf16>, vector<4x8x8xbf16>, vector<4x8x8xf32> -> vector<4x8x8xf32>
    "tpu.trace_stop"() : () -> ()
    %82 = arith.addf %79, %81 : vector<4x8x8xf32>
    %c0_64 = arith.constant 0 : index
    %c0_65 = arith.constant 0 : index
    %c0_66 = arith.constant 0 : index
    %83 = vector.load %arg16[%c0_64, %c0_65, %c0_66] : memref<4x8x8xf32, #tpu.memory_space<vmem>>, vector<4x8x8xf32>
    tpu.vector_store %arg16[%c0_64, %c0_65, %c0_66], %82 {strides = array<i32>} : memref<4x8x8xf32, #tpu.memory_space<vmem>>, vector<4x8x8xf32>,
    %c0_67 = arith.constant 0 : index
    %c0_68 = arith.constant 0 : index
    %c0_69 = arith.constant 0 : index
    %84 = vector.load %arg14[%c0_67, %c0_68, %c0_69] : memref<4x8x1xf32, #tpu.memory_space<vmem>>, vector<4x8x1xf32>
    tpu.vector_store %arg14[%c0_67, %c0_68, %c0_69], %65 {strides = array<i32>} : memref<4x8x1xf32, #tpu.memory_space<vmem>>, vector<4x8x1xf32>,
    %c0_70 = arith.constant 0 : index
    %c0_71 = arith.constant 0 : index
    %c0_72 = arith.constant 0 : index
    %85 = vector.load %arg15[%c0_70, %c0_71, %c0_72] : memref<4x8x1xf32, #tpu.memory_space<vmem>>, vector<4x8x1xf32>
    %86 = tpu.reciprocal %85 {approx = true} : vector<4x8x1xf32> -> vector<4x8x1xf32>
    %c0_73 = arith.constant 0 : index
    %c0_74 = arith.constant 0 : index
    %c0_75 = arith.constant 0 : index
    %87 = vector.load %arg16[%c0_73, %c0_74, %c0_75] : memref<4x8x8xf32, #tpu.memory_space<vmem>>, vector<4x8x8xf32>
    %88 = vector.broadcast %86 : vector<4x8x1xf32> to vector<4x8x8xf32>
    %89 = arith.mulf %87, %88 : vector<4x8x8xf32>
    %90 = arith.truncf %89 : vector<4x8x8xf32> to vector<4x8x8xbf16>
    %91 = vector.extract_strided_slice %90 {offsets = [0, 0, 0], sizes = [1, 8, 8], strides = [1, 1, 1]} : vector<4x8x8xbf16> to vector<1x8x8xbf16>
    %92 = vector.shape_cast %91 : vector<1x8x8xbf16> to vector<8x8xbf16>
    %c0_76 = arith.constant 0 : index
    %c0_77 = arith.constant 0 : index
    %c0_78 = arith.constant 0 : index
    %93 = vector.load %arg9[%c0_76, %c0_77, %c0_78] : memref<4x8x32xbf16, #tpu.memory_space<vmem>>, vector<1x8x32xbf16>
    %94 = vector.shape_cast %93 : vector<1x8x32xbf16> to vector<8x32xbf16>
    %cst_79 = arith.constant dense<0.000000e+00> : vector<8x32xf32>
    %95 = tpu.matmul %92, %94, %cst_79 {dimension_numbers = #tpu.dot_dimension_numbers<[1], [0], [0], [1], [0, 0, 1, 1], [], []>} : vector<8x8xbf16>, vector<8x32xbf16>, vector<8x32xf32> -> vector<8x32xf32>
    %96 = vector.extract_strided_slice %90 {offsets = [1, 0, 0], sizes = [1, 8, 8], strides = [1, 1, 1]} : vector<4x8x8xbf16> to vector<1x8x8xbf16>
    %97 = vector.shape_cast %96 : vector<1x8x8xbf16> to vector<8x8xbf16>
    %c1_80 = arith.constant 1 : index
    %c0_81 = arith.constant 0 : index
    %c0_82 = arith.constant 0 : index
    %98 = vector.load %arg9[%c1_80, %c0_81, %c0_82] : memref<4x8x32xbf16, #tpu.memory_space<vmem>>, vector<1x8x32xbf16>
    %99 = vector.shape_cast %98 : vector<1x8x32xbf16> to vector<8x32xbf16>
    %cst_83 = arith.constant dense<0.000000e+00> : vector<8x32xf32>
    %100 = tpu.matmul %97, %99, %cst_83 {dimension_numbers = #tpu.dot_dimension_numbers<[1], [0], [0], [1], [0, 0, 1, 1], [], []>} : vector<8x8xbf16>, vector<8x32xbf16>, vector<8x32xf32> -> vector<8x32xf32>
    %101 = arith.addf %95, %100 : vector<8x32xf32>
    %102 = vector.extract_strided_slice %90 {offsets = [2, 0, 0], sizes = [1, 8, 8], strides = [1, 1, 1]} : vector<4x8x8xbf16> to vector<1x8x8xbf16>
    %103 = vector.shape_cast %102 : vector<1x8x8xbf16> to vector<8x8xbf16>
    %c2_84 = arith.constant 2 : index
    %c0_85 = arith.constant 0 : index
    %c0_86 = arith.constant 0 : index
    %104 = vector.load %arg9[%c2_84, %c0_85, %c0_86] : memref<4x8x32xbf16, #tpu.memory_space<vmem>>, vector<1x8x32xbf16>
    %105 = vector.shape_cast %104 : vector<1x8x32xbf16> to vector<8x32xbf16>
    %cst_87 = arith.constant dense<0.000000e+00> : vector<8x32xf32>
    %106 = tpu.matmul %103, %105, %cst_87 {dimension_numbers = #tpu.dot_dimension_numbers<[1], [0], [0], [1], [0, 0, 1, 1], [], []>} : vector<8x8xbf16>, vector<8x32xbf16>, vector<8x32xf32> -> vector<8x32xf32>
    %107 = arith.addf %101, %106 : vector<8x32xf32>
    %108 = vector.extract_strided_slice %90 {offsets = [3, 0, 0], sizes = [1, 8, 8], strides = [1, 1, 1]} : vector<4x8x8xbf16> to vector<1x8x8xbf16>
    %109 = vector.shape_cast %108 : vector<1x8x8xbf16> to vector<8x8xbf16>
    %c3_88 = arith.constant 3 : index
    %c0_89 = arith.constant 0 : index
    %c0_90 = arith.constant 0 : index
    %110 = vector.load %arg9[%c3_88, %c0_89, %c0_90] : memref<4x8x32xbf16, #tpu.memory_space<vmem>>, vector<1x8x32xbf16>
    %111 = vector.shape_cast %110 : vector<1x8x32xbf16> to vector<8x32xbf16>
    %cst_91 = arith.constant dense<0.000000e+00> : vector<8x32xf32>
    %112 = tpu.matmul %109, %111, %cst_91 {dimension_numbers = #tpu.dot_dimension_numbers<[1], [0], [0], [1], [0, 0, 1, 1], [], []>} : vector<8x8xbf16>, vector<8x32xbf16>, vector<8x32xf32> -> vector<8x32xf32>
    %113 = arith.addf %107, %112 : vector<8x32xf32>
    %c0_92 = arith.constant 0 : index
    %c0_93 = arith.constant 0 : index
    %114 = vector.load %arg10[%c0_92, %c0_93] : memref<1x32xf32, #tpu.memory_space<vmem>>, vector<1x32xf32>
    %115 = vector.broadcast %114 : vector<1x32xf32> to vector<8x32xf32>
    %116 = arith.addf %113, %115 : vector<8x32xf32>
    %c0_94 = arith.constant 0 : index
    %c0_95 = arith.constant 0 : index
    %c0_96 = arith.constant 0 : index
    %117 = vector.load %arg11[%c0_94, %c0_95, %c0_96] : memref<1x8x32xf32, #tpu.memory_space<vmem>>, vector<1x8x32xf32>
    %118 = vector.shape_cast %117 : vector<1x8x32xf32> to vector<8x32xf32>
    %119 = vector.shape_cast %116 : vector<8x32xf32> to vector<1x8x32xf32>
    tpu.vector_store %arg11[%c0_94, %c0_95, %c0_96], %119 {strides = array<i32>} : memref<1x8x32xf32, #tpu.memory_space<vmem>>, vector<1x8x32xf32>,
    return
  }
  func.func @transform_0(%arg0: i32, %arg1: i32) -> (i32, i32, i32) {
    %c0_i32 = arith.constant 0 : i32
    %c0_i32_0 = arith.constant 0 : i32
    %c0_i32_1 = arith.constant 0 : i32
    return %arg0, %c0_i32, %c0_i32_0 : i32, i32, i32
  }
  func.func @transform_1(%arg0: i32, %arg1: i32) -> (i32, i32, i32) {
    %c0_i32 = arith.constant 0 : i32
    %c0_i32_0 = arith.constant 0 : i32
    %c0_i32_1 = arith.constant 0 : i32
    %c0_i32_2 = arith.constant 0 : i32
    return %c0_i32, %c0_i32_0, %c0_i32_1 : i32, i32, i32
  }
  func.func @transform_2(%arg0: i32, %arg1: i32) -> (i32, i32, i32) {
    %c0_i32 = arith.constant 0 : i32
    %c0_i32_0 = arith.constant 0 : i32
    %c0_i32_1 = arith.constant 0 : i32
    %c0_i32_2 = arith.constant 0 : i32
    return %c0_i32, %c0_i32_0, %c0_i32_1 : i32, i32, i32
  }
  func.func @transform_3(%arg0: i32, %arg1: i32) -> (i32, i32, i32) {
    %c0_i32 = arith.constant 0 : i32
    %c0_i32_0 = arith.constant 0 : i32
    %c0_i32_1 = arith.constant 0 : i32
    %c0_i32_2 = arith.constant 0 : i32
    return %c0_i32, %c0_i32_0, %c0_i32_1 : i32, i32, i32
  }
  func.func @transform_4(%arg0: i32, %arg1: i32) -> (i32, i32, i32) {
    %c0_i32 = arith.constant 0 : i32
    %c0_i32_0 = arith.constant 0 : i32
    %c0_i32_1 = arith.constant 0 : i32
    %c0_i32_2 = arith.constant 0 : i32
    return %c0_i32, %c0_i32_0, %c0_i32_1 : i32, i32, i32
  }
  func.func @transform_5(%arg0: i32, %arg1: i32) -> (i32, i32, i32) {
    %c0_i32 = arith.constant 0 : i32
    %c0_i32_0 = arith.constant 0 : i32
    %c0_i32_1 = arith.constant 0 : i32
    %c0_i32_2 = arith.constant 0 : i32
    return %c0_i32, %c0_i32_0, %c0_i32_1 : i32, i32, i32
  }
  func.func @transform_6(%arg0: i32, %arg1: i32) -> (i32, i32, i32) {
    %c0_i32 = arith.constant 0 : i32
    %c0_i32_0 = arith.constant 0 : i32
    %c0_i32_1 = arith.constant 0 : i32
    %c0_i32_2 = arith.constant 0 : i32
    return %c0_i32, %c0_i32_0, %c0_i32_1 : i32, i32, i32
  }
  func.func @transform_7(%arg0: i32, %arg1: i32) -> (i32, i32, i32) {
    %c0_i32 = arith.constant 0 : i32
    %c0_i32_0 = arith.constant 0 : i32
    %c0_i32_1 = arith.constant 0 : i32
    %c0_i32_2 = arith.constant 0 : i32
    return %c0_i32, %c0_i32_0, %c0_i32_1 : i32, i32, i32
  }
  func.func @transform_8(%arg0: i32, %arg1: i32) -> (i32, i32) {
    %c0_i32 = arith.constant 0 : i32
    %c0_i32_0 = arith.constant 0 : i32
    %c0_i32_1 = arith.constant 0 : i32
    return %c0_i32, %c0_i32_0 : i32, i32
  }
  func.func @transform_9(%arg0: i32, %arg1: i32) -> (i32, i32, i32) {
    %c0_i32 = arith.constant 0 : i32
    %c0_i32_0 = arith.constant 0 : i32
    return %arg0, %arg1, %c0_i32 : i32, i32, i32
  }
}

</mosaic_0001>

<bundles_post_ra>
// kernel: tpu_custom_call.1
= control target key start
LH: loop header
LB: loop body
LE: loop exit
PB: predicated region body
PF: predicated region fallthrough
CT: control target
= control target key end

     0   :  { %s3058_s0 = inlined_call_operand.hbm [shape: bf16[2,8,32], index: 0, kind: input, shape index: {}]   ;;  %s3059_s1 = inlined_call_operand.vmem [shape: bf16[4,8,32], index: 1, kind: input, shape index: {}]   ;;  %s3060_s2 = inlined_call_operand.hbm [shape: f32[4,1,8], index: 2, kind: input, shape index: {}]   ;;  %s3061_s3 = inlined_call_operand.vmem [shape: bf16[4,8,32], index: 3, kind: input, shape index: {}]   ;;  %s3062_s4 = inlined_call_operand.vmem [shape: f32[4,8,1], index: 4, kind: input, shape index: {}]   ;;  %s3063_s5 = inlined_call_operand.vmem [shape: bf16[4,8,32], index: 5, kind: input, shape index: {}]   ;;  %s3064_s6 = inlined_call_operand.vmem [shape: f32[4,1,8], index: 6, kind: input, shape index: {}]   ;;  %s3065_s7 = inlined_call_operand.hbm [shape: bf16[4,8,32], index: 7, kind: input, shape index: {}]   ;;  %s3066_s8 = inlined_call_operand.vmem [shape: f32[1,32], index: 8, kind: input, shape index: {}]   ;;  %s3067_s9 = inlined_call_operand.hbm [shape: f32[2,8,32], index: 9, kind: output, shape index: {}]  }
   0x1   :  { %3075 = sst [smem:[#allocation19_spill]] %s3066_s8 }
   0x2   :  { %3076 = sst [smem:[#allocation20_spill]] %s3067_s9 }
   0x3   :  { %14 = vsyncpa [#allocation8], 0 }
   0x4   :  { %16 = vsyncpa [#allocation8 + $0x1], 0 }
   0x5   :  { %17 = vsyncpa [#allocation11], 0 }
   0x6   :  { %18 = vsyncpa [#allocation9], 0 }
   0x7   :  { %20 = vsyncpa [#allocation9 + $0x1], 0  ;;  %s2562_s30 = smov 0   ;;  %s2564_s10 = smov 0  }
   0x8   :  { %s2566_s11 = smov 0   ;;  %s2568_s12 = smov 0  }
   0x9   :  { %s2570_s13 = smov 0   ;;  %s2572_s14 = smov 0  }
   0xa LB: > { %3077 = sst [smem:[#allocation17_spill]] %s2478_s30  ;;  %s1952_s15 = sadd.s32 4294967295, %s2498_s14   ;;  %s2498_s14 = sphi %s2572_s14, %s26_s14   ;;  %s2494_s13 = sphi %s2570_s13, %s3100_s13   ;;  %s2490_s12 = sphi %s2568_s12, %s3099_s12   ;;  %s2486_s11 = sphi %s2566_s11, %s3098_s11   ;;  %s2482_s10 = sphi %s2564_s10, %s3097_s10   ;;  %s2478_s30 = sphi %s2562_s30, %s3096_s30  }
   0xb   : > { %s1953_s16 = sadd.s32 4294967294, %s2498_s14   ;;  %p58_p0 = scmp.ne.s32.totalorder %s2482_s10, %s2478_s30 }
   0xc   : > { %p2596_p1 = scmp.eq.s32.totalorder %s1952_s15, 0  ;;  %p2600_p2 = scmp.eq.s32.totalorder %s1952_s15, 1 }
   0xd   : > { %p258_p3 = scmp.eq.s32.totalorder %s1953_s16, 1  ;;  %p1954_p5 = scmp.ge.s32.totalorder %s2498_s14, 1 }
   0xe   : > { %s3078_s17 = scalar_select %p2596_p1, 1, 0 }
   0xf   : > { %p2606_p4 = por %p2596_p1, %p58_p0  ;;  %p2611_p6 = por %p258_p3, %p58_p0 }
  0x10   : > { %p265_p7 = scmp.lt.s32.totalorder %s2498_s14, 3  ;;  %s2500_s22 = smov [#allocation10]  }
  0x11   : > { %s3080_s19 = scalar_select %p2606_p4, 1, 0 }
  0x12   : > { %s3081_s20 = scalar_select %p2611_p6, 1, 0 }
  0x13   : > { %p2616_p8 = pnand %p1954_p5, %p265_p7  ;;  %s280_s23 = sshll.u32 %s2500_s22, 4  ;;  %s2620_s23 = int_to_ptr.vmem [resolvable:$true] %s280_s23 }
  0x14   : > { %3082 = sst [smem:[#allocation18_spill]] %s3081_s20  ;;  %s2501_s25 = smov [#allocation12]  }
  0x15   : > { %p2221_p9 = pneg %p2616_p8  ;;  %s305_s26 = sshll.u32 %s2501_s25, 4  ;;  %s2631_s26 = int_to_ptr.vmem [resolvable:$true] %s305_s26 }
  0x16   : > { %s2326_s29 = scalar_lea.hbm %s3060_s2, 64 }
  0x17   : > { %p2627_p11 = pnand %p2221_p9, %p2596_p1  ;;  %p2327_p12 = scmp.ne.s32.totalorder %s3060_s2, %s2326_s29 }
  0x18   : > { %p2333_p5 = scmp.lt.u32.totalorder %s2326_s29, %s3060_s2 }
  0x19   : > { %p2328_p13 = pneg %p2627_p11 }
  0x1b   : > { %p2329_p0 = pnand %p2328_p13, %p2327_p12 }
  0x1d   : > { %p2330_p3 = pneg %p2329_p0 }
  0x1f   : > { %p2335_p7 = pnand %p2333_p5, %p2330_p3 }
  0x21   : > { %2338 = shalt.err (!%p2335_p7)
}
  0x22   : > { %s2339_s25 = scalar_lea.vmem %s2620_s23, 64  ;;  %p2347_p1 = scmp.lt.s32.totalorder %s2620_s23, %s2620_s23 }
  0x23   : > { %p2340_p9 = scmp.ne.s32.totalorder %s2620_s23, %s2339_s25  ;;  %p2348_p12 = scmp.lt.s32.totalorder %s2339_s25, %s2339_s25 }
  0x25   : > { %p2342_p10 = pnand %p2340_p9, %p2328_p13  ;;  %p2349_p0 = por %p2348_p12, %p2347_p1 }
  0x27   : > { %p2343_p6 = pneg %p2342_p10 }
  0x29   : > { %p2350_p4 = pnand %p2349_p0, %p2343_p6 }
  0x2b   : > { %2353 = shalt.err (!%p2350_p4)
}
  0x2c   : > { %s2502_s20 = smov 16   ;;  %s2503_s27 = smov 1  }
  0x2d   : > { %2224 = dma.hbm_to_vmem [thread:$0]  (!%p2627_p11), %s3060_s2, 64, %s2620_s23, [#allocation11], %s2502_s20, %s2502_s20, %s2503_s27  }
  0x2e   : > { %s2354_s22 = scalar_lea.hbm %s3065_s7, 256 }
  0x2f   : > { %p2355_p1 = scmp.ne.s32.totalorder %s3065_s7, %s2354_s22  ;;  %p2361_p10 = scmp.lt.u32.totalorder %s2354_s22, %s3065_s7 }
  0x31   : > { %p2357_p4 = pnand %p2355_p1, %p2328_p13 }
  0x33   : > { %p2358_p6 = pneg %p2357_p4 }
  0x35   : > { %p2363_p3 = pnand %p2361_p10, %p2358_p6 }
  0x37   : > { %2366 = shalt.err (!%p2363_p3)
}
  0x38   : > { %s2367_s23 = scalar_lea.vmem %s2631_s26, 256  ;;  %p2375_p12 = scmp.lt.s32.totalorder %s2631_s26, %s2631_s26 }
  0x39   : > { %p2368_p5 = scmp.ne.s32.totalorder %s2631_s26, %s2367_s23  ;;  %p2376_p0 = scmp.lt.s32.totalorder %s2367_s23, %s2367_s23 }
  0x3b   : > { %p2370_p7 = pnand %p2368_p5, %p2328_p13  ;;  %p2377_p1 = por %p2376_p0, %p2375_p12 }
  0x3d   : > { %p2371_p9 = pneg %p2370_p7 }
  0x3f   : > { %p2378_p4 = pnand %p2377_p1, %p2371_p9 }
  0x41   : > { %2381 = shalt.err (!%p2378_p4)
}
  0x42   : > { %s2504_s8 = smov 64   ;;  %s2505_s9 = smov 4  }
  0x43   : > { %2227 = dma.hbm_to_vmem [thread:$0]  (!%p2627_p11), %s3065_s7, 256, %s2631_s26, [#allocation11], %s2504_s8, %s2504_s8, %s2505_s9  }
  0x44   : > { %s38_s27 = sadd.s32 1, %s2494_s13  ;;  %s45_s28 = sadd.s32 1, %s2486_s11 }
  0x45   : > { %p40_p13 = scmp.ge.s32.totalorder %s38_s27, 2  ;;  %p52_p6 = scmp.ne.s32.totalorder %s2486_s11, %s2482_s10 }
  0x46   : > { %p53_p10 = scmp.eq.s32.totalorder %s2498_s14, 0  ;;  %p2238_p3 = scmp.lt.s32.totalorder %s2498_s14, 2 }
  0x47   : > { %s3102_s27 = smov (%p40_p13, %s38_s27), 0  ;;  %p2695_p7 = por %p2600_p2, %p52_p6 }
  0x48   : > { %p54_p5 = por %p53_p10, %p52_p6  ;;  %s42_s24 = ssub.s32 %s2494_s13, %s3102_s27 }
  0x49   : > { %s3085_s29 = scalar_select %p2695_p7, 1, 0 }
  0x4a   : > { %s322_s15 = sand.u32 1, %s2486_s11   ;;  %p43_p9 = scmp.eq.s32.totalorder %s42_s24, 0 }
  0x4b   : > { %s1958_s26 = sshll.u32 %s322_s15, 2  ;;  %s1959_s16 = sshll.u32 %s2494_s13, 6 }
  0x4c   : > { %s2704_s22 = scalar_select %p43_p9, %s2486_s11, %s45_s28  }
  0x4d   : > { %s2709_s8 = scalar_lea.hbm %s3058_s0, %s1959_s16  ;;  %s326_s18 = scalar_lea.vmem [#allocation7], %s1958_s26 }
  0x4e   : > { %s333_s9 = sshll.u32 %s326_s18, 4  ;;  %p2713_p2 = pnand %p2238_p3, %p54_p5  ;;  %s2717_s9 = int_to_ptr.vmem [resolvable:$true] %s333_s9 }
  0x4f   : > { %s323_s20 = scalar_lea.sflag [#allocation8], %s322_s15  ;;  %s2382_s28 = scalar_lea.hbm %s2709_s8, 64 }
  0x50   : > { %p2383_p11 = scmp.ne.s32.totalorder %s2709_s8, %s2382_s28  ;;  %p2384_p12 = pneg %p2713_p2 }
  0x51   : > { %s2387_s16 = scalar_lea.hbm %s3058_s0, 128  ;;  %p2388_p4 = scmp.lt.u32.totalorder %s2709_s8, %s3058_s0 }
  0x52   : > { %p2385_p0 = pnand %p2384_p12, %p2383_p11  ;;  %p2389_p13 = scmp.lt.u32.totalorder %s2387_s16, %s2382_s28 }
  0x53   : > { %p2391_p10 = scmp.lt.u32.totalorder %s2382_s28, %s2709_s8 }
  0x54   : > { %p2386_p1 = pneg %p2385_p0  ;;  %p2390_p6 = por %p2389_p13, %p2388_p4 }
  0x56   : > { %p2392_p3 = por %p2391_p10, %p2390_p6 }
  0x58   : > { %p2393_p5 = pnand %p2392_p3, %p2386_p1 }
  0x5a   : > { %2396 = shalt.err (!%p2393_p5)
}
  0x5b   : > { %s2397_s15 = scalar_lea.vmem %s2717_s9, 64  ;;  %s2506_s18 = smov [#allocation7]  }
  0x5c   : > { %p2398_p9 = scmp.ne.s32.totalorder %s2717_s9, %s2397_s15  ;;  %s2402_s24 = sshll.u32 %s2506_s18, 4  ;;  %s2403_s24 = int_to_ptr.vmem [resolvable:$false] %s2402_s24 }
  0x5d   : > { %s2404_s26 = scalar_lea.vmem %s2403_s24, 128  ;;  %p2405_p7 = scmp.lt.s32.totalorder %s2717_s9, %s2403_s24 }
  0x5e   : > { %p2400_p11 = pnand %p2398_p9, %p2384_p12  ;;  %p2406_p4 = scmp.lt.s32.totalorder %s2404_s26, %s2397_s15 }
  0x60   : > { %p2401_p0 = pneg %p2400_p11  ;;  %p2407_p13 = por %p2406_p4, %p2405_p7 }
  0x62   : > { %p2408_p6 = pnand %p2407_p13, %p2401_p0 }
  0x64   : > { %2411 = shalt.err (!%p2408_p6)
}
  0x65   : > { %2231 = dma.hbm_to_vmem [thread:$0]  (!%p2713_p2), %s2709_s8, 64, %s2717_s9, %s323_s20  }
  0x66   : > { %342 = sbr.rel (%p2616_p8) target bundleno = 1412 (0x584), region = 56  ;;  %s2747_s28 = sand.u32 (!%p2616_p8), 1, %s2482_s10  }
  0x67   : > { %s1961_s16 = sshll.u32 (!%p2616_p8), %s2747_s28, 2  ;;  %s345_s25 = scalar_lea.sflag (!%p2616_p8), [#allocation8], %s2747_s28 }
  0x68   : > { %s2751_s23 = scalar_lea.vmem (!%p2616_p8), [#allocation7], %s1961_s16  ;;  %p3087_p7 = scmp.ne.s32.totalorder (!%p2616_p8), %s3080_s19, 0 }
  0x6d   : > { %2465 = dma.done.wait (%p3087_p7), %s345_s25, 64  }
  0x6e   : > { %2467 = vsyncadd (%p3087_p7), %s345_s25, 4294967232  ;;  %p3088_p2 = scmp.ne.s32.totalorder %s3078_s17, 0 }
  0x70   : > { %2469 = dma.done.wait (%p3088_p2), [#allocation11], 320  }
  0x71   : > { %2471 = vsyncadd (%p3088_p2), [#allocation11], 4294966976  ;;  %v2507_v0 = vmov 0.0   ;;  %vm2508_vm0 = vmmov 0   ;;  %v2509_v1 = vmov 0   ;;  %vm404_vm1 = vcmask 261120  }
  0x72   : > { %2065 = vmatprep.subr.bf16.mxu0 %v2507_v0  ;;  %2071 = vmatprep.subr.bf16.mxu1 %v2507_v0  ;;  %v396_v2 = vld [vmem:[%s2751_s23] sm:$0xf]  ;;  %v1976_v8 = vld [vmem:[%s3062_s4 + $0x10] sm:$0xff]  ;;  %v1969_v9 = vld [vmem:[%s3062_s4 + $0x8] sm:$0xff]  ;;  %vm1077_vm2 = vcmask 64512   ;;  %vm452_vm3 = vcmask 60416  }
  0x73   : > { %2067 = vmatprep.mubr.msk.bf16.mxu0 %vm2508_vm0, %v2507_v0  ;;  %2073 = vmatprep.mubr.msk.bf16.mxu1 %vm2508_vm0, %v2507_v0  ;;  %v454_v3 = vld [vmem:[%s3063_s5] sm:$0xf]  ;;  %v409_v4 = vsel %vm404_vm1, %v396_v2, 0  ;;  %v1971_v7 = vld [vmem:[%s3063_s5 + $0x4] sm:$0xf]  ;;  %v1983_v12 = vld [vmem:[%s3062_s4 + $0x18] sm:$0xff] }
  0x74   : > { %2300 = vset.pattern.permute.xlu0 %v2509_v1  ;;  %2301 = vset.pattern.permute.xlu1 %v2509_v1  ;;  %v463_v5 = vsel %vm404_vm1, %v454_v3, 0  ;;  %v398_v6 = vld [vmem:[%s3062_s4] sm:$0xff]  ;;  %v573_v11 = vsel %vm404_vm1, %v1971_v7, 0  ;;  %v1978_v13 = vld [vmem:[%s3063_s5 + $0x8] sm:$0xf]  ;;  %1078 = vst.msk [vmem:[#allocation6] sm:$0xff] %vm1077_vm2, %v2507_v0 }
  0x75   : > { %2066 = vmatpush3.bf16.xpose.msra.mxu0 %v409_v4  ;;  %2072 = vmatpush3.bf16.xpose.msra.mxu1 %v463_v5  ;;  %v397_v10 = vld [vmem:[%s3061_s3] sm:$0xf]  ;;  %v1968_v14 = vld [vmem:[%s3061_s3 + $0x4] sm:$0xf]  ;;  %v684_v15 = vsel %vm404_vm1, %v1978_v13, 0  ;;  %1079 = vst.msk [vmem:[#allocation6 + $0x8] sm:$0xff] %vm1077_vm2, %v2507_v0 }
  0x76   : > { %2077 = vmatprep.subr.bf16.mxu0 %v2507_v0  ;;  %2083 = vmatprep.subr.bf16.mxu1 %v2507_v0  ;;  %v1985_v16 = vld [vmem:[%s3063_s5 + $0xc] sm:$0xf]  ;;  %v1975_v17 = vld [vmem:[%s3061_s3 + $0x8] sm:$0xf]  ;;  %v846_v19 = vld [vmem:[%s3059_s1] sm:$0xf] }
  0x77   : > { %401 = vperm.xlu0 %2300, %v398_v6   ;;  %624 = vperm.xlu1 %2301, %v1976_v8   ;;  %v795_v18 = vsel %vm404_vm1, %v1985_v16, 0  ;;  %v1991_v20 = vld [vmem:[%s3059_s1 + $0x4] sm:$0xf]  ;;  %v1982_v21 = vld [vmem:[%s3061_s3 + $0xc] sm:$0xf]  ;;  %v859_v22 = vsel %vm404_vm1, %v846_v19, 0 }
  0x78   : > { %v914_v23 = vsel %vm404_vm1, %v1991_v20, 0  ;;  %v1994_v24 = vld [vmem:[%s3059_s1 + $0x8] sm:$0xf]  ;;  %v1997_v25 = vld [vmem:[%s3059_s1 + $0xc] sm:$0xf]  ;;  %1080 = vst.msk [vmem:[#allocation6 + $0x10] sm:$0xff] %vm1077_vm2, %v2507_v0 }
  0x79   : > { %v845_v26 = vld [vmem:[%s2751_s23] sm:$0xf]  ;;  %v969_v27 = vsel %vm404_vm1, %v1994_v24, 0  ;;  %v1024_v28 = vsel %vm404_vm1, %v1997_v25, 0  ;;  %1081 = vst.msk [vmem:[#allocation6 + $0x18] sm:$0xff] %vm1077_vm2, %v2507_v0  ;;  %vm1093_vm4 = vcmask 1043456  }
  0x7a   : > { %v1966_v29 = vld [vmem:[%s3064_s6] ss:$0 sm:$0xff]  ;;  %v1973_v43 = vld [vmem:[%s3064_s6 + $0x1] ss:$0 sm:$0xff]  ;;  %v1980_v59 = vld [vmem:[%s3064_s6 + $0x2] ss:$0 sm:$0xff] }
  0x7b   : > { %513 = vperm.xlu0 %2300, %v1969_v9   ;;  %735 = vperm.xlu1 %2301, %v1983_v12   ;;  %v1987_v12 = vld [vmem:[%s3064_s6 + $0x3] ss:$0 sm:$0xff]  ;;  %vm1068_vm5 = vcmask 7168   ;;  %s1964_s17 = sshll.u32 %s2747_s28, 3  ;;  %s3089_s8 = sld [smem:[#allocation19_spill]] }
  0x7c   : > { %2068 = vmatmul.mubr.msk.bf16.vlgmr.msra.gmra.mrb[0].mxu0 %vm404_vm1, %v397_v10  ;;  %2074 = vmatmul.mubr.msk.bf16.vlgmr.msra.gmra.mrb[0].mxu1 %vm404_vm1, %v396_v2  ;;  %1073 = vst.msk [vmem:[#allocation5] sm:$0xff] %vm1068_vm5, %v2507_v0  ;;  %1074 = vst.msk [vmem:[#allocation5 + $0x8] sm:$0xff] %vm1068_vm5, %v2507_v0  ;;  %s2014_s9 = sshll.u32 %s2490_s12, 7  ;;  %s390_s30 = scalar_lea.vmem [#allocation13], %s1964_s17 }
  0x7d   : > { %2078 = vmatpush3.bf16.xpose.msra.mxu0 %v409_v4  ;;  %2084 = vmatpush3.bf16.xpose.msra.mxu1 %v573_v11  ;;  %1075 = vst.msk [vmem:[#allocation5 + $0x10] sm:$0xff] %vm1068_vm5, %v2507_v0  ;;  %1076 = vst.msk [vmem:[#allocation5 + $0x18] sm:$0xff] %vm1068_vm5, %v2507_v0  ;;  %s1852_s23 = sshll.u32 %s390_s30, 4  ;;  %s3090_s18 = sld [smem:[#allocation20_spill]]  ;;  %s3010_s23 = int_to_ptr.vmem [resolvable:$true] %s1852_s23 }
  0x7e   : > { %2079 = vmatprep.mubr.msk.bf16.mxu0 %vm2508_vm0, %v2507_v0  ;;  %2085 = vmatprep.mubr.msk.bf16.mxu1 %vm2508_vm0, %v2507_v0  ;;  %s1838_s12 = scalar_lea.sflag [#allocation9], %s2747_s28  ;;  %s2412_s26 = scalar_lea.vmem %s3010_s23, 128 }
  0x7f   : > { %2089 = vmatprep.subr.bf16.mxu0 %v2507_v0  ;;  %2095 = vmatprep.subr.bf16.mxu1 %v2507_v0  ;;  %p2413_p8 = scmp.ne.s32.totalorder %s3010_s23, %s2412_s26  ;;  %p3091_p12 = scmp.ne.s32.totalorder %s3085_s29, 0 }
  0x80   : > { %s2511_s16 = smov [#allocation13]  }
  0x81   : > { %p2414_p1 = pnand %p2413_p8, %p3091_p12  ;;  %s2416_s25 = sshll.u32 %s2511_s16, 4  ;;  %s2417_s25 = int_to_ptr.vmem [resolvable:$false] %s2416_s25 }
  0x82   : > { %s2418_s17 = scalar_lea.vmem %s2417_s25, 256  ;;  %p2419_p3 = scmp.lt.s32.totalorder %s3010_s23, %s2417_s25 }
  0x83   : > { %s3008_s24 = scalar_lea.hbm %s3090_s18, %s2014_s9  ;;  %p2415_p10 = pneg %p2414_p1 }
  0x84   : > { %2080 = vmatmul.mubr.msk.bf16.vlgmr.msra.gmra.mrb[4].mxu0 %vm404_vm1, %v1968_v14  ;;  %2086 = vmatmul.mubr.msk.bf16.vlgmr.msra.gmra.mrb[4].mxu1 %vm404_vm1, %v396_v2  ;;  %p2420_p5 = scmp.lt.s32.totalorder %s2418_s17, %s2412_s26 }
  0x85   : > { %2090 = vmatpush3.bf16.xpose.msra.mxu0 %v409_v4  ;;  %2096 = vmatpush3.bf16.xpose.msra.mxu1 %v684_v15 }
  0x86   : > { %2091 = vmatprep.mubr.msk.bf16.mxu0 %vm2508_vm0, %v2507_v0  ;;  %2097 = vmatprep.mubr.msk.bf16.mxu1 %vm2508_vm0, %v2507_v0  ;;  %p2421_p9 = por %p2420_p5, %p2419_p3 }
  0x87   : > { %2101 = vmatprep.subr.bf16.mxu0 %v2507_v0  ;;  %2107 = vmatprep.subr.bf16.mxu1 %v2507_v0 }
  0x88   : > { %p2422_p11 = pnand %p2421_p9, %p2415_p10 }
  0x8c   : > { %2092 = vmatmul.mubr.msk.bf16.vlgmr.msra.gmra.mrb[8].mxu0 %vm404_vm1, %v1975_v17  ;;  %2098 = vmatmul.mubr.msk.bf16.vlgmr.msra.gmra.mrb[8].mxu1 %vm404_vm1, %v396_v2 }
  0x8d   : > { %2102 = vmatpush3.bf16.xpose.msra.mxu0 %v409_v4  ;;  %2108 = vmatpush3.bf16.xpose.msra.mxu1 %v795_v18 }
  0x8e   : > { %2103 = vmatprep.mubr.msk.bf16.mxu0 %vm2508_vm0, %v2507_v0  ;;  %2109 = vmatprep.mubr.msk.bf16.mxu1 %vm2508_vm0, %v2507_v0 }
  0x8f   : > { %2113 = vmatprep.subr.bf16.mxu0 %v2507_v0  ;;  %2119 = vmatprep.subr.bf16.mxu1 %v2507_v0 }
  0x94   : > { %2104 = vmatmul.mubr.msk.bf16.vlgmr.msra.gmra.mrb[12].mxu0 %vm404_vm1, %v1982_v21  ;;  %2110 = vmatmul.mubr.msk.bf16.vlgmr.msra.gmra.mrb[12].mxu1 %vm404_vm1, %v396_v2 }
  0x95   : > { %2114 = vmatpush3.bf16.xpose.msra.mxu0 %v859_v22  ;;  %2120 = vmatpush3.bf16.xpose.msra.mxu1 %v914_v23 }
  0x96   : > { %2115 = vmatprep.mubr.msk.bf16.mxu0 %vm2508_vm0, %v2507_v0  ;;  %2121 = vmatprep.mubr.msk.bf16.mxu1 %vm2508_vm0, %v2507_v0 }
  0x97   : > { %2125 = vmatprep.subr.bf16.mxu0 %v2507_v0  ;;  %2131 = vmatprep.subr.bf16.mxu1 %v2507_v0 }
  0x9c   : > { %2116 = vmatmul.mubr.msk.bf16.vlgmr.msra.gmra.mrb[16].mxu0 %vm404_vm1, %v845_v26  ;;  %2122 = vmatmul.mubr.msk.bf16.vlgmr.msra.gmra.mrb[16].mxu1 %vm404_vm1, %v845_v26 }
  0x9d   : > { %2126 = vmatpush3.bf16.xpose.msra.mxu0 %v969_v27  ;;  %2132 = vmatpush3.bf16.xpose.msra.mxu1 %v1024_v28  ;;  %v1992_v27 = vld [vmem:[#allocation10 + $0x1] ss:$0 sm:$0xff] }
  0x9e   : > { %2127 = vmatprep.mubr.msk.bf16.mxu0 %vm2508_vm0, %v2507_v0  ;;  %2133 = vmatprep.mubr.msk.bf16.mxu1 %vm2508_vm0, %v2507_v0 }
  0x9f   : > { %2137 = vmatprep.subr.bf16.mxu0 %v2507_v0  ;;  %2143 = vmatprep.subr.bf16.mxu1 %v2507_v0 }
  0xa4   : > { %2128 = vmatmul.mubr.msk.bf16.vlgmr.msra.gmra.mrb[20].mxu0 %vm404_vm1, %v845_v26  ;;  %2134 = vmatmul.mubr.msk.bf16.vlgmr.msra.gmra.mrb[20].mxu1 %vm404_vm1, %v845_v26  ;;  %v1989_v26 = vld [vmem:[#allocation10] ss:$0 sm:$0xff] }
  0xa5   : > { %2139 = vmatprep.mubr.msk.bf16.mxu0 %vm2508_vm0, %v2507_v0  ;;  %2145 = vmatprep.mubr.msk.bf16.mxu1 %vm2508_vm0, %v2507_v0 }
  0xf6   : > { %v402_v30 = vpop.permute.xlu0 %401  ;;  %v625_v60 = vpop.permute.xlu1 %624 }
  0xfa   : > { %v514_v44 = vpop.permute.xlu0 %513  ;;  %v736_v13 = vpop.permute.xlu1 %735 }
 0x14f   : > { %v445_v31 = vpop.f32.mrb[0].mxu0  ;;  %v499_v32 = vpop.f32.mrb[0].mxu1 }
 0x150   : > { %v500_v33 = vadd.f32 %v1966_v29, %v499_v32  ;;  %v446_v34 = vadd.f32 %v445_v31, %v402_v30  ;;  %v2069_v35 = vpop.f32.mrb[1].mxu0  ;;  %v2075_v36 = vpop.f32.mrb[1].mxu1 }
 0x151   : > { %v448_v37 = vpop.f32.mrb[2].mxu0  ;;  %v502_v38 = vpop.f32.mrb[2].mxu1 }
 0x152   : > { %v505_v39 = vpack.c.bf16 %v500_v33, %v500_v33  ;;  %v451_v40 = vpack.c.bf16 %v446_v34, %v446_v34  ;;  %v2070_v41 = vpop.f32.mrb[3].mxu0  ;;  %v2076_v42 = vpop.f32.mrb[3].mxu1 }
 0x154   : > { %506 = vst.msk [vmem:[#allocation3] sm:$0xf] %vm452_vm3, %v505_v39  ;;  %453 = vst.msk [vmem:[#allocation2] sm:$0xf] %vm452_vm3, %v451_v40 }
 0x157   : > { %v553_v45 = vpop.f32.mrb[4].mxu0  ;;  %v609_v46 = vpop.f32.mrb[4].mxu1 }
 0x158   : > { %v610_v47 = vadd.f32 %v1973_v43, %v609_v46  ;;  %v554_v48 = vadd.f32 %v553_v45, %v514_v44  ;;  %v2081_v49 = vpop.f32.mrb[5].mxu0  ;;  %v2087_v50 = vpop.f32.mrb[5].mxu1  ;;  %v1995_v45 = vld [vmem:[#allocation10 + $0x2] ss:$0 sm:$0xff]  ;;  %v1998_v46 = vld [vmem:[#allocation10 + $0x3] ss:$0 sm:$0xff] }
 0x159   : > { %v556_v51 = vpop.f32.mrb[6].mxu0  ;;  %v612_v52 = vpop.f32.mrb[6].mxu1 }
 0x15a   : > { %v615_v53 = vpack.c.bf16 %v610_v47, %v610_v47  ;;  %v559_v54 = vpack.c.bf16 %v554_v48, %v554_v48  ;;  %v2082_v55 = vpop.f32.mrb[7].mxu0  ;;  %v2088_v56 = vpop.f32.mrb[7].mxu1 }
 0x15b   : > { %v1082_v57 = vld [vmem:[#allocation2] sm:$0xf] }
 0x15c   : > { %617 = vst.msk [vmem:[#allocation3 + $0x4] sm:$0xf] %vm452_vm3, %v615_v53  ;;  %561 = vst.msk [vmem:[#allocation2 + $0x4] sm:$0xf] %vm452_vm3, %v559_v54  ;;  %v1095_v58 = vsel %vm1093_vm4, %v1082_v57, 0 }
 0x15d   : > { %2138 = vmatpush3.bf16.msra.mxu0 %v1095_v58 }
 0x15e   : > { %2149 = vmatprep.subr.bf16.mxu0 %v2507_v0 }
 0x15f   : > { %v664_v61 = vpop.f32.mrb[8].mxu0  ;;  %v720_v62 = vpop.f32.mrb[8].mxu1 }
 0x160   : > { %v721_v63 = vadd.f32 %v1980_v59, %v720_v62  ;;  %v665_v1 = vadd.f32 %v664_v61, %v625_v60  ;;  %v2093_v2 = vpop.f32.mrb[9].mxu0  ;;  %v2099_v3 = vpop.f32.mrb[9].mxu1  ;;  %v1086_v60 = vld [vmem:[#allocation3] sm:$0xf] }
 0x161   : > { %v667_v4 = vpop.f32.mrb[10].mxu0  ;;  %v723_v5 = vpop.f32.mrb[10].mxu1  ;;  %v2510_v3 = vmov -inf  }
 0x162   : > { %v726_v6 = vpack.c.bf16 %v721_v63, %v721_v63  ;;  %v670_v7 = vpack.c.bf16 %v665_v1, %v665_v1  ;;  %v2094_v8 = vpop.f32.mrb[11].mxu0  ;;  %v2100_v9 = vpop.f32.mrb[11].mxu1  ;;  %v1403_v1 = vsel %vm1093_vm4, %v1086_v60, 0  ;;  %1070 = vst.msk [vmem:[#allocation4 + $0x8] sm:$0xff] %vm1068_vm5, %v2510_v3  ;;  %1069 = vst.msk [vmem:[#allocation4] sm:$0xff] %vm1068_vm5, %v2510_v3 }
 0x163   : > { %v1083_v10 = vld [vmem:[#allocation2 + $0x4] sm:$0xf]  ;;  %v1087_v61 = vld [vmem:[#allocation3 + $0x4] sm:$0xf]  ;;  %1071 = vst.msk [vmem:[#allocation4 + $0x10] sm:$0xff] %vm1068_vm5, %v2510_v3  ;;  %1072 = vst.msk [vmem:[#allocation4 + $0x18] sm:$0xff] %vm1068_vm5, %v2510_v3 }
 0x164   : > { %728 = vst.msk [vmem:[#allocation3 + $0x8] sm:$0xf] %vm452_vm3, %v726_v6  ;;  %672 = vst.msk [vmem:[#allocation2 + $0x8] sm:$0xf] %vm452_vm3, %v670_v7  ;;  %v1141_v11 = vsel %vm1093_vm4, %v1083_v10, 0  ;;  %v1449_v2 = vsel %vm1093_vm4, %v1087_v61, 0 }
 0x165   : > { %2144 = vmatpush3.bf16.msra.mxu1 %v1141_v11 }
 0x166   : > { %2155 = vmatprep.subr.bf16.mxu1 %v2507_v0 }
 0x167   : > { %v775_v14 = vpop.f32.mrb[12].mxu0  ;;  %v831_v15 = vpop.f32.mrb[12].mxu1 }
 0x168   : > { %v832_v16 = vadd.f32 %v1987_v12, %v831_v15  ;;  %v776_v17 = vadd.f32 %v775_v14, %v736_v13  ;;  %v2105_v18 = vpop.f32.mrb[13].mxu0  ;;  %v2111_v19 = vpop.f32.mrb[13].mxu1 }
 0x169   : > { %v778_v20 = vpop.f32.mrb[14].mxu0  ;;  %v834_v21 = vpop.f32.mrb[14].mxu1 }
 0x16a   : > { %v837_v22 = vpack.c.bf16 %v832_v16, %v832_v16  ;;  %v781_v23 = vpack.c.bf16 %v776_v17, %v776_v17  ;;  %v2106_v24 = vpop.f32.mrb[15].mxu0  ;;  %v2112_v25 = vpop.f32.mrb[15].mxu1 }
 0x16b   : > { %v1084_v40 = vld [vmem:[#allocation2 + $0x8] sm:$0xf]  ;;  %v2942_v25 = vld [vmem:[#allocation4] sm:$0xff] }
 0x16c   : > { %839 = vst.msk [vmem:[#allocation3 + $0xc] sm:$0xf] %vm452_vm3, %v837_v22  ;;  %783 = vst.msk [vmem:[#allocation2 + $0xc] sm:$0xf] %vm452_vm3, %v781_v23  ;;  %v1187_v47 = vsel %vm1093_vm4, %v1084_v40, 0  ;;  %v1276_v24 = vld [vmem:[#allocation4 + $0x8] sm:$0xff] }
 0x16f   : > { %v895_v28 = vpop.f32.mrb[16].mxu0  ;;  %v950_v29 = vpop.f32.mrb[16].mxu1 }
 0x170   : > { %v896_v30 = vadd.f32 %v1989_v26, %v895_v28  ;;  %v951_v31 = vadd.f32 %v1992_v27, %v950_v29  ;;  %v2117_v32 = vpop.f32.mrb[17].mxu0  ;;  %v2123_v33 = vpop.f32.mrb[17].mxu1 }
 0x171   : > { %v898_v34 = vpop.f32.mrb[18].mxu0  ;;  %v953_v35 = vpop.f32.mrb[18].mxu1  ;;  %v1277_v32 = vld [vmem:[#allocation4 + $0x10] sm:$0xff] }
 0x172   : > { %v901_v36 = vmul.f32 0.35355338, %v896_v30  ;;  %v956_v37 = vmul.f32 0.35355338, %v951_v31  ;;  %v2118_v38 = vpop.f32.mrb[19].mxu0  ;;  %v2124_v39 = vpop.f32.mrb[19].mxu1 }
 0x173   : > { %v1085_v41 = vld [vmem:[#allocation2 + $0xc] sm:$0xf]  ;;  %v1278_v35 = vld [vmem:[#allocation4 + $0x18] sm:$0xff] }
 0x174   : > { %v902_v42 = vpack.c.bf16 %v901_v36, %v901_v36  ;;  %v957_v43 = vpack.c.bf16 %v956_v37, %v956_v37  ;;  %v1233_v44 = vsel %vm1093_vm4, %v1085_v41, 0 }
 0x176   : > { %2140 = vmatmul.mubr.msk.bf16.vlgmr.msra.gmra.mrb[24].mxu0 %vm1077_vm2, %v902_v42  ;;  %2146 = vmatmul.mubr.msk.bf16.vlgmr.msra.gmra.mrb[24].mxu1 %vm1077_vm2, %v957_v43 }
 0x177   : > { %2150 = vmatpush3.bf16.msra.mxu0 %v1187_v47  ;;  %2156 = vmatpush3.bf16.msra.mxu1 %v1233_v44  ;;  %v1005_v48 = vpop.f32.mrb[20].mxu0  ;;  %v1060_v49 = vpop.f32.mrb[20].mxu1 }
 0x178   : > { %v1006_v50 = vadd.f32 %v1995_v45, %v1005_v48  ;;  %v1061_v51 = vadd.f32 %v1998_v46, %v1060_v49  ;;  %v2129_v52 = vpop.f32.mrb[21].mxu0  ;;  %v2135_v53 = vpop.f32.mrb[21].mxu1  ;;  %2151 = vmatprep.mubr.msk.bf16.mxu0 %vm2508_vm0, %v2507_v0  ;;  %2157 = vmatprep.mubr.msk.bf16.mxu1 %vm2508_vm0, %v2507_v0 }
 0x179   : > { %v1008_v54 = vpop.f32.mrb[22].mxu0  ;;  %v1063_v55 = vpop.f32.mrb[22].mxu1  ;;  %2161 = vmatprep.subr.bf16.mxu0 %v2507_v0  ;;  %2167 = vmatprep.subr.bf16.mxu1 %v2507_v0  ;;  %v1088_v53 = vld [vmem:[#allocation3 + $0x8] sm:$0xf] }
 0x17a   : > { %v1011_v56 = vmul.f32 0.35355338, %v1006_v50  ;;  %v1066_v57 = vmul.f32 0.35355338, %v1061_v51  ;;  %v2130_v58 = vpop.f32.mrb[23].mxu0  ;;  %v2136_v59 = vpop.f32.mrb[23].mxu1 }
 0x17b   : > { %v1495_v60 = vsel %vm1093_vm4, %v1088_v53, 0 }
 0x17c   : > { %v1012_v62 = vpack.c.bf16 %v1011_v56, %v1011_v56  ;;  %v1067_v63 = vpack.c.bf16 %v1066_v57, %v1066_v57  ;;  %v1089_v57 = vld [vmem:[#allocation3 + $0xc] sm:$0xf] }
 0x17e   : > { %2152 = vmatmul.mubr.msk.bf16.vlgmr.msra.gmra.mrb[28].mxu0 %vm1077_vm2, %v1012_v62  ;;  %2158 = vmatmul.mubr.msk.bf16.vlgmr.msra.gmra.mrb[28].mxu1 %vm1077_vm2, %v1067_v63  ;;  %v1541_v62 = vsel %vm1093_vm4, %v1089_v57, 0  ;;  %v1369_v57 = vld [vmem:[#allocation6 + $0x10] sm:$0xff] }
 0x17f   : > { %2162 = vmatpush3.bf16.msra.mxu0 %v1403_v1  ;;  %2168 = vmatpush3.bf16.msra.mxu1 %v1449_v2 }
 0x180   : > { %2163 = vmatprep.mubr.msk.bf16.mxu0 %vm2508_vm0, %v2507_v0  ;;  %2169 = vmatprep.mubr.msk.bf16.mxu1 %vm2508_vm0, %v2507_v0 }
 0x181   : > { %2173 = vmatprep.subr.bf16.mxu0 %v2507_v0  ;;  %2179 = vmatprep.subr.bf16.mxu1 %v2507_v0 }
 0x249   : > { %v1131_v4 = vpop.f32.mrb[24].mxu0  ;;  %v1177_v5 = vpop.f32.mrb[24].mxu1 }
 0x24a   : > { %v2141_v6 = vpop.f32.mrb[25].mxu0  ;;  %v2147_v7 = vpop.f32.mrb[25].mxu1  ;;  %v1282_v8 = vsel %vm1077_vm2, %v1177_v5, -inf  ;;  %v1279_v9 = vsel %vm1077_vm2, %v1131_v4, -inf }
 0x24b   : > { %1283 = vmax.xlane.f32.xlu1 %v1282_v8  ;;  %v1180_v10 = vpop.f32.mrb[26].mxu1  ;;  %1280 = vmax.xlane.f32.xlu0 %v1279_v9  ;;  %v1134_v11 = vpop.f32.mrb[26].mxu0 }
 0x24c   : > { %v2142_v12 = vpop.f32.mrb[27].mxu0  ;;  %v2148_v13 = vpop.f32.mrb[27].mxu1 }
 0x24d   : > { %v1637_v13 = vld [vmem:[#allocation12 + $0x4] sm:$0xf] }
 0x251   : > { %v1223_v14 = vpop.f32.mrb[28].mxu0  ;;  %v1269_v15 = vpop.f32.mrb[28].mxu1 }
 0x252   : > { %v2153_v16 = vpop.f32.mrb[29].mxu0  ;;  %v1285_v17 = vsel %vm1077_vm2, %v1223_v14, -inf  ;;  %v2159_v18 = vpop.f32.mrb[29].mxu1  ;;  %v1288_v23 = vsel %vm1077_vm2, %v1269_v15, -inf }
 0x253   : > { %1286 = vmax.xlane.f32.xlu0 %v1285_v17  ;;  %v1226_v19 = vpop.f32.mrb[30].mxu0  ;;  %v1272_v20 = vpop.f32.mrb[30].mxu1  ;;  %v1340_v16 = vld [vmem:[#allocation5 + $0x8] sm:$0xff] }
 0x254   : > { %v2154_v21 = vpop.f32.mrb[31].mxu0  ;;  %v2160_v22 = vpop.f32.mrb[31].mxu1 }
 0x257   : > { %1289 = vmax.xlane.f32.xlu0 %v1288_v23  ;;  %v1341_v23 = vld [vmem:[#allocation5 + $0x10] sm:$0xff] }
 0x2d8   : > { %v1284_v26 = vpop.xlane.xlu1 %1283  ;;  %v1281_v27 = vpop.xlane.xlu0 %1280 }
 0x2d9   : > { %v1292_v28 = vmax.f32 %v1276_v24, %v1284_v26  ;;  %v2945_v29 = vmax.f32 %v2942_v25, %v1281_v27  ;;  %v1342_v26 = vld [vmem:[#allocation5 + $0x18] sm:$0xff] }
 0x2db   : > { %v1296_v30 = vsub.f32 %v1276_v24, %v1292_v28  ;;  %1592 = vst.msk [vmem:[#allocation4 + $0x8] sm:$0xff] %vm1068_vm5, %v1292_v28  ;;  %v1295_v31 = vsub.f32 %v2942_v25, %v2945_v29  ;;  %1591 = vst.msk [vmem:[#allocation4] sm:$0xff] %vm1068_vm5, %v2945_v29  ;;  %1309 = vperm.xlu1 %2301, %v2945_v29   ;;  %1314 = vperm.xlu0 %2300, %v1292_v28  }
 0x2dd   : > { %v1301_v61 = vmul.f32 1.442695, %v1296_v30  ;;  %v1299_v9 = vmul.f32 1.442695, %v1295_v31 }
 0x2e0   : > { %v1287_v33 = vpop.xlane.xlu0 %1286 }
 0x2e1   : > { %v1293_v34 = vmax.f32 %v1277_v32, %v1287_v33 }
 0x2e3   : > { %v1297_v36 = vsub.f32 %v1277_v32, %v1293_v34  ;;  %1593 = vst.msk [vmem:[#allocation4 + $0x10] sm:$0xff] %vm1068_vm5, %v1293_v34  ;;  %1319 = vperm.xlu1 %2301, %v1293_v34  }
 0x2e4   : > { %v1290_v37 = vpop.xlane.xlu0 %1289 }
 0x2e5   : > { %v1294_v38 = vmax.f32 %v1278_v35, %v1290_v37  ;;  %v1303_v1 = vmul.f32 1.442695, %v1297_v36  ;;  %v1635_v37 = vld [vmem:[#allocation12] sm:$0xf] }
 0x2e7   : > { %v1298_v39 = vsub.f32 %v1278_v35, %v1294_v38  ;;  %1594 = vst.msk [vmem:[#allocation4 + $0x18] sm:$0xff] %vm1068_vm5, %v1294_v38  ;;  %1324 = vperm.xlu1 %2301, %v1294_v38   ;;  %v1688_v38 = vsel %vm1093_vm4, %v1635_v37, 0 }
 0x35a   : > { %v1310_v40 = vpop.permute.xlu1 %1309  ;;  %v1315_v41 = vpop.permute.xlu0 %1314 }
 0x35b   : > { %v1327_v42 = vsub.f32 %v1131_v4, %v1310_v40  ;;  %v1328_v43 = vsub.f32 %v1177_v5, %v1315_v41  ;;  %v1305_v5 = vmul.f32 1.442695, %v1298_v39 }
 0x35d   : > { %v1331_v44 = vmul.f32 1.442695, %v1327_v42  ;;  %v1333_v45 = vmul.f32 1.442695, %v1328_v43  ;;  %v1367_v42 = vld [vmem:[#allocation6] sm:$0xff] }
 0x35f   : > { %2302 = vpow2.f32 %v1331_v44  ;;  %v1368_v44 = vld [vmem:[#allocation6 + $0x8] sm:$0xff] }
 0x360   : > { %2304 = vpow2.f32 %v1333_v45 }
 0x362   : > { %v1320_v46 = vpop.permute.xlu1 %1319 }
 0x363   : > { %v1329_v47 = vsub.f32 %v1223_v14, %v1320_v46  ;;  %v1642_v14 = vsel %vm1093_vm4, %v1637_v13, 0 }
 0x365   : > { %v1335_v48 = vmul.f32 1.442695, %v1329_v47 }
 0x366   : > { %v1325_v49 = vpop.permute.xlu1 %1324 }
 0x367   : > { %2306 = vpow2.f32 %v1335_v48  ;;  %v1330_v50 = vsub.f32 %v1269_v15, %v1325_v49  ;;  %v1339_v15 = vld [vmem:[#allocation5] sm:$0xff] }
 0x369   : > { %v2303_v51 = vpop.eup %2302  ;;  %v1337_v52 = vmul.f32 1.442695, %v1330_v50 }
 0x36a   : > { %v2305_v54 = vpop.eup %2304  ;;  %v1347_v55 = vsel %vm1077_vm2, %v2303_v51, 0.0  ;;  %v1395_v56 = vpack.c.bf16 %v2303_v51, %v2303_v51 }
 0x36b   : > { %2308 = vpow2.f32 %v1337_v52  ;;  %1348 = vadd.xlane.f32.xlu1 %v1347_v55  ;;  %v1350_v58 = vsel %vm1077_vm2, %v2305_v54, 0.0  ;;  %v1396_v59 = vpack.c.bf16 %v2305_v54, %v2305_v54 }
 0x36c   : > { %1351 = vadd.xlane.f32.xlu0 %v1350_v58  ;;  %2164 = vmatmul.mubr.msk.bf16.vlgmr.msra.gmra.mrb[32].mxu0 %vm1077_vm2, %v1395_v56  ;;  %2310 = vpow2.f32 %v1301_v61 }
 0x36d   : > { %2170 = vmatmul.mubr.msk.bf16.vlgmr.msra.gmra.mrb[32].mxu1 %vm1077_vm2, %v1396_v59  ;;  %2174 = vmatpush3.bf16.msra.mxu0 %v1495_v60  ;;  %2312 = vpow2.f32 %v1303_v1  ;;  %v1370_v60 = vld [vmem:[#allocation6 + $0x18] sm:$0xff] }
 0x36e   : > { %2180 = vmatpush3.bf16.msra.mxu1 %v1541_v62  ;;  %2175 = vmatprep.mubr.msk.bf16.mxu0 %vm2508_vm0, %v2507_v0  ;;  %2314 = vpow2.f32 %v1305_v5 }
 0x36f   : > { %2181 = vmatprep.mubr.msk.bf16.mxu1 %vm2508_vm0, %v2507_v0  ;;  %2185 = vmatprep.subr.bf16.mxu0 %v2507_v0  ;;  %2316 = vpow2.f32 %v1299_v9 }
 0x370   : > { %2191 = vmatprep.subr.bf16.mxu1 %v2507_v0 }
 0x371   : > { %v2307_v63 = vpop.eup %2306 }
 0x372   : > { %v1353_v2 = vsel %vm1077_vm2, %v2307_v63, 0.0  ;;  %v1397_v3 = vpack.c.bf16 %v2307_v63, %v2307_v63 }
 0x373   : > { %1354 = vadd.xlane.f32.xlu0 %v1353_v2 }
 0x374   : > { %2176 = vmatmul.mubr.msk.bf16.vlgmr.msra.gmra.mrb[36].mxu0 %vm1077_vm2, %v1397_v3 }
 0x375   : > { %v2309_v4 = vpop.eup %2308  ;;  %2187 = vmatprep.mubr.msk.bf16.mxu0 %vm2508_vm0, %v2507_v0  ;;  %2186 = vmatpush3.bf16.msra.mxu0 %v1642_v14 }
 0x376   : > { %v1356_v6 = vsel %vm1077_vm2, %v2309_v4, 0.0  ;;  %v1398_v7 = vpack.c.bf16 %v2309_v4, %v2309_v4  ;;  %v2311_v8 = vpop.eup %2310  ;;  %2197 = vmatprep.subr.bf16.mxu0 %v2507_v0 }
 0x377   : > { %1357 = vadd.xlane.f32.xlu0 %v1356_v6  ;;  %v2313_v10 = vpop.eup %2312  ;;  %v1344_v19 = vmul.f32 %v2311_v8, %v1340_v16  ;;  %v1731_v16 = vld [vmem:[#allocation12 + $0x8] sm:$0xf] }
 0x378   : > { %2182 = vmatmul.mubr.msk.bf16.vlgmr.msra.gmra.mrb[36].mxu1 %vm1077_vm2, %v1398_v7  ;;  %v2315_v11 = vpop.eup %2314  ;;  %v1345_v24 = vmul.f32 %v2313_v10, %v1341_v23 }
 0x379   : > { %2193 = vmatprep.mubr.msk.bf16.mxu1 %vm2508_vm0, %v2507_v0  ;;  %v2317_v12 = vpop.eup %2316  ;;  %v1346_v29 = vmul.f32 %v2315_v11, %v1342_v26  ;;  %2192 = vmatpush3.bf16.msra.mxu1 %v1688_v38 }
 0x37a   : > { %v1343_v17 = vmul.f32 %v2317_v12, %v1339_v15  ;;  %2203 = vmatprep.subr.bf16.mxu1 %v2507_v0 }
 0x37c   : > { %1378 = vperm.xlu1 %2301, %v2311_v8  }
 0x380   : > { %1383 = vperm.xlu1 %2301, %v2313_v10  }
 0x384   : > { %1388 = vperm.xlu1 %2301, %v2315_v11  }
 0x38d   : > { %1373 = vperm.xlu0 %2300, %v2317_v12   ;;  %v1780_v12 = vld [vmem:[#allocation12 + $0xc] sm:$0xf] }
 0x3f8   : > { %v1349_v18 = vpop.xlane.xlu1 %1348 }
 0x3f9   : > { %v1359_v20 = vadd.f32 %v1349_v18, %v1343_v17  ;;  %v1352_v21 = vpop.xlane.xlu0 %1351 }
 0x3fa   : > { %v1360_v22 = vadd.f32 %v1352_v21, %v1344_v19  ;;  %v1785_v19 = vsel %vm1093_vm4, %v1780_v12, 0  ;;  %v1736_v21 = vsel %vm1093_vm4, %v1731_v16, 0 }
 0x3fb   : > { %1363 = vst.msk [vmem:[#allocation5] sm:$0xff] %vm1068_vm5, %v1359_v20 }
 0x3fc   : > { %1364 = vst.msk [vmem:[#allocation5 + $0x8] sm:$0xff] %vm1068_vm5, %v1360_v22  ;;  %v1379_v41 = vpop.permute.xlu1 %1378 }
 0x3fd   : > { %v1392_v46 = vmul.f32 %v1379_v41, %v1368_v44  ;;  %v2012_v44 = vld [vmem:[%s3089_s8] ss:$0 sm:$0xff] }
 0x400   : > { %v1355_v25 = vpop.xlane.xlu0 %1354  ;;  %v1384_v47 = vpop.permute.xlu1 %1383 }
 0x401   : > { %v1361_v27 = vadd.f32 %v1355_v25, %v1345_v24  ;;  %v1393_v59 = vmul.f32 %v1384_v47, %v1369_v57 }
 0x402   : > { %v1595_v28 = vld [vmem:[#allocation5] sm:$0xff] }
 0x403   : > { %1365 = vst.msk [vmem:[#allocation5 + $0x10] sm:$0xff] %vm1068_vm5, %v1361_v27  ;;  %2318 = vrcp.f32 %v1595_v28  ;;  %v1596_v30 = vld [vmem:[#allocation5 + $0x8] sm:$0xff] }
 0x404   : > { %v1358_v31 = vpop.xlane.xlu0 %1357  ;;  %2320 = vrcp.f32 %v1596_v30  ;;  %v1389_v61 = vpop.permute.xlu1 %1388 }
 0x405   : > { %v1362_v32 = vadd.f32 %v1358_v31, %v1346_v29  ;;  %v1394_v3 = vmul.f32 %v1389_v61, %v1370_v60 }
 0x407   : > { %1366 = vst.msk [vmem:[#allocation5 + $0x18] sm:$0xff] %vm1068_vm5, %v1362_v32 }
 0x40a   : > { %v1597_v33 = vld [vmem:[#allocation5 + $0x10] sm:$0xff] }
 0x40b   : > { %2322 = vrcp.f32 %v1597_v33 }
 0x40c   : > { %v1374_v43 = vpop.permute.xlu0 %1373 }
 0x40d   : > { %v2319_v34 = vpop.eup %2318  ;;  %v1391_v45 = vmul.f32 %v1374_v43, %v1367_v42 }
 0x40e   : > { %v2321_v35 = vpop.eup %2320  ;;  %1609 = vperm.xlu1 %2301, %v2319_v34   ;;  %v1598_v36 = vld [vmem:[#allocation5 + $0x18] sm:$0xff] }
 0x40f   : > { %1614 = vperm.xlu0 %2300, %v2321_v35   ;;  %2324 = vrcp.f32 %v1598_v36 }
 0x415   : > { %v2323_v39 = vpop.eup %2322 }
 0x416   : > { %1619 = vperm.xlu0 %2300, %v2323_v39  }
 0x419   : > { %v2325_v40 = vpop.eup %2324 }
 0x41a   : > { %1624 = vperm.xlu1 %2301, %v2325_v40  }
 0x43f   : > { %v1439_v48 = vpop.f32.mrb[32].mxu0 }
 0x440   : > { %v1583_v49 = vadd.f32 %v1439_v48, %v1391_v45  ;;  %v1485_v50 = vpop.f32.mrb[32].mxu1  ;;  %v2165_v51 = vpop.f32.mrb[33].mxu0 }
 0x441   : > { %v1584_v52 = vadd.f32 %v1485_v50, %v1392_v46  ;;  %v2171_v53 = vpop.f32.mrb[33].mxu1  ;;  %v1442_v54 = vpop.f32.mrb[34].mxu0 }
 0x442   : > { %1587 = vst.msk [vmem:[#allocation6] sm:$0xff] %vm1077_vm2, %v1583_v49  ;;  %v1488_v55 = vpop.f32.mrb[34].mxu1  ;;  %v2166_v56 = vpop.f32.mrb[35].mxu0 }
 0x443   : > { %1588 = vst.msk [vmem:[#allocation6 + $0x8] sm:$0xff] %vm1077_vm2, %v1584_v52  ;;  %v2172_v58 = vpop.f32.mrb[35].mxu1 }
 0x447   : > { %v1531_v62 = vpop.f32.mrb[36].mxu0 }
 0x448   : > { %v1585_v63 = vadd.f32 %v1531_v62, %v1393_v59  ;;  %v2177_v1 = vpop.f32.mrb[37].mxu0 }
 0x449   : > { %v1534_v2 = vpop.f32.mrb[38].mxu0  ;;  %v1603_v11 = vld [vmem:[#allocation6] sm:$0xff] }
 0x44a   : > { %1589 = vst.msk [vmem:[#allocation6 + $0x10] sm:$0xff] %vm1077_vm2, %v1585_v63  ;;  %v2178_v4 = vpop.f32.mrb[39].mxu0  ;;  %v1604_v14 = vld [vmem:[#allocation6 + $0x8] sm:$0xff] }
 0x44b   : > { %v1577_v5 = vpop.f32.mrb[36].mxu1 }
 0x44c   : > { %v1586_v6 = vadd.f32 %v1577_v5, %v1394_v3  ;;  %v2183_v7 = vpop.f32.mrb[37].mxu1 }
 0x44d   : > { %v1580_v8 = vpop.f32.mrb[38].mxu1 }
 0x44e   : > { %1590 = vst.msk [vmem:[#allocation6 + $0x18] sm:$0xff] %vm1077_vm2, %v1586_v6  ;;  %v2184_v9 = vpop.f32.mrb[39].mxu1 }
 0x451   : > { %v1605_v23 = vld [vmem:[#allocation6 + $0x10] sm:$0xff] }
 0x455   : > { %v1606_v26 = vld [vmem:[#allocation6 + $0x18] sm:$0xff] }
 0x48d   : > { %v1610_v10 = vpop.permute.xlu1 %1609 }
 0x48e   : > { %v1627_v13 = vmul.f32 %v1610_v10, %v1603_v11  ;;  %v1615_v15 = vpop.permute.xlu0 %1614 }
 0x48f   : > { %v1628_v17 = vmul.f32 %v1615_v15, %v1604_v14 }
 0x490   : > { %v1631_v18 = vpack.c.bf16 %v1627_v13, %v1627_v13 }
 0x491   : > { %v1632_v20 = vpack.c.bf16 %v1628_v17, %v1628_v17 }
 0x492   : > { %2194 = vmatmul.mubr.msk.bf16.vlgmr.msra.gmra.mrb[40].mxu1 %vm1077_vm2, %v1631_v18 }
 0x493   : > { %2188 = vmatmul.mubr.msk.bf16.vlgmr.msra.gmra.mrb[40].mxu0 %vm1077_vm2, %v1632_v20  ;;  %2204 = vmatpush3.bf16.msra.mxu1 %v1785_v19 }
 0x494   : > { %2198 = vmatpush3.bf16.msra.mxu0 %v1736_v21  ;;  %2199 = vmatprep.mubr.msk.bf16.mxu0 %vm2508_vm0, %v2507_v0 }
 0x495   : > { %v1620_v22 = vpop.permute.xlu0 %1619  ;;  %2205 = vmatprep.mubr.msk.bf16.mxu1 %vm2508_vm0, %v2507_v0 }
 0x496   : > { %v1629_v24 = vmul.f32 %v1620_v22, %v1605_v23 }
 0x498   : > { %v1633_v25 = vpack.c.bf16 %v1629_v24, %v1629_v24 }
 0x499   : > { %v1625_v27 = vpop.permute.xlu1 %1624 }
 0x49a   : > { %v1630_v28 = vmul.f32 %v1625_v27, %v1606_v26 }
 0x49b   : > { %2200 = vmatmul.mubr.msk.bf16.vlgmr.msra.gmra.mrb[44].mxu0 %vm1077_vm2, %v1633_v25 }
 0x49c   : > { %v1634_v29 = vpack.c.bf16 %v1630_v28, %v1630_v28 }
 0x49e   : > { %2206 = vmatmul.mubr.msk.bf16.vlgmr.msra.gmra.mrb[44].mxu1 %vm1077_vm2, %v1634_v29 }
 0x565   : > { %v1724_v30 = vpop.f32.mrb[40].mxu1 }
 0x566   : > { %v1678_v31 = vpop.f32.mrb[40].mxu0  ;;  %v2195_v32 = vpop.f32.mrb[41].mxu1 }
 0x567   : > { %v1725_v33 = vadd.f32 %v1724_v30, %v1678_v31  ;;  %v2189_v34 = vpop.f32.mrb[41].mxu0  ;;  %v1727_v35 = vpop.f32.mrb[42].mxu1 }
 0x568   : > { %v1681_v36 = vpop.f32.mrb[42].mxu0  ;;  %v2196_v0 = vpop.f32.mrb[43].mxu1 }
 0x569   : > { %v2190_v37 = vpop.f32.mrb[43].mxu0 }
 0x56e   : > { %v1772_v38 = vpop.f32.mrb[44].mxu0 }
 0x56f   : > { %v1778_v39 = vadd.f32 %v1772_v38, %v1725_v33  ;;  %v2201_v40 = vpop.f32.mrb[45].mxu0 }
 0x570   : > { %v1775_v41 = vpop.f32.mrb[46].mxu0 }
 0x571   : > { %v2202_v42 = vpop.f32.mrb[47].mxu0  ;;  %v1821_v43 = vpop.f32.mrb[44].mxu1 }
 0x572   : > { %v1827_v45 = vadd.f32 %v1821_v43, %v1778_v39  ;;  %v2207_v46 = vpop.f32.mrb[45].mxu1 }
 0x573   : > { %v1824_v47 = vpop.f32.mrb[46].mxu1 }
 0x574   : > { %v1835_v48 = vadd.f32 %v2012_v44, %v1827_v45  ;;  %v2208_v49 = vpop.f32.mrb[47].mxu1 }
 0x576   : > { %1836 = vst.msk [vmem:[%s390_s30] sm:$0xff] %vm404_vm1, %v1835_v48 }
 0x577   : > { %2425 = shalt.err (!%p2422_p11)
}
 0x578   : > { %s2426_s28 = scalar_lea.hbm %s3008_s24, 128  ;;  %s2430_s8 = scalar_lea.hbm %s3090_s18, 256 }
 0x579   : > { %p2427_p0 = scmp.ne.s32.totalorder %s3008_s24, %s2426_s28  ;;  %p2431_p6 = scmp.lt.u32.totalorder %s3008_s24, %s3090_s18 }
 0x57a   : > { %p2432_p7 = scmp.lt.u32.totalorder %s2430_s8, %s2426_s28  ;;  %p2434_p8 = scmp.lt.u32.totalorder %s2426_s28, %s3008_s24 }
 0x57b   : > { %p2428_p4 = pnand %p2427_p0, %p3091_p12 }
 0x57c   : > { %p2433_p2 = por %p2432_p7, %p2431_p6 }
 0x57d   : > { %p2429_p13 = pneg %p2428_p4 }
 0x57e   : > { %p2435_p1 = por %p2434_p8, %p2433_p2 }
 0x580   : > { %p2436_p10 = pnand %p2435_p1, %p2429_p13 }
 0x582   : > { %2439 = shalt.err (!%p2436_p10)
}
 0x583   : > { %2219 = dma.vmem_to_hbm [thread:$0]  (%p3091_p12), %s3010_s23, 128, %s3008_s24, %s1838_s12  }
 0x584 PF: > { %s3092_s20 = sld [smem:[#allocation17_spill]]  ;;  %s3093_s15 = sld [smem:[#allocation18_spill]] }
 0x585   : > { %p3095_p5 = scmp.ge.s32.totalorder %s2498_s14, 2 }
 0x58a   : > { %s1864_s26 = sand.u32 1, %s3092_s20   ;;  %p3094_p3 = scmp.ne.s32.totalorder %s3093_s15, 0 }
 0x58b   : > { %s1865_s16 = scalar_lea.sflag [#allocation9], %s1864_s26 }
 0x58c   : > { %p2233_p9 = pnand %p3095_p5, %p3094_p3 }
 0x58e   : > { %2473 = dma.done.wait (!%p2233_p9), %s1865_s16, 128  }
 0x58f   : > { %2475 = vsyncadd (!%p2233_p9), %s1865_s16, 4294967168  ;;  %s26_s14 = sadd.s32 1, %s2498_s14   ;;  %s3096_s30 = smov %s2482_s10 }
 0x590   : > { %p23_p11 = scmp.ge.s32.totalorder %s26_s14, 4   ;;  %s3097_s10 = smov %s2486_s11 }
 0x591   : > { %s3098_s11 = smov %s2704_s22  ;;  %s3099_s12 = smov %s2494_s13 }
 0x592   : > { %s3100_s13 = smov %s3102_s27  ;;  %25 = sbr.rel (!%p23_p11) target bundleno = 10 (0xa), region = 141 }
 0x599   :  { %1870 = vsyncpa [#allocation8], 1 }
 0x59a   :  { %1872 = vsyncpa [#allocation8 + $0x1], 1 }
 0x59b   :  { %1873 = vsyncpa [#allocation11], 1 }
 0x59c   :  { %1874 = vsyncpa [#allocation9], 1 }
 0x59d   :  { %1876 = vsyncpa [#allocation9 + $0x1], 1 }

// kernel: tpu_custom_call.1
= control target key start
LH: loop header
LB: loop body
LE: loop exit
PB: predicated region body
PF: predicated region fallthrough
CT: control target
= control target key end

     0   :  { %s3058_s0 = inlined_call_operand.hbm [shape: bf16[2,8,32], index: 0, kind: input, shape index: {}]   ;;  %s3059_s1 = inlined_call_operand.vmem [shape: bf16[4,8,32], index: 1, kind: input, shape index: {}]   ;;  %s3060_s2 = inlined_call_operand.hbm [shape: f32[4,1,8], index: 2, kind: input, shape index: {}]   ;;  %s3061_s3 = inlined_call_operand.vmem [shape: bf16[4,8,32], index: 3, kind: input, shape index: {}]   ;;  %s3062_s4 = inlined_call_operand.vmem [shape: f32[4,8,1], index: 4, kind: input, shape index: {}]   ;;  %s3063_s5 = inlined_call_operand.vmem [shape: bf16[4,8,32], index: 5, kind: input, shape index: {}]   ;;  %s3064_s6 = inlined_call_operand.vmem [shape: f32[4,1,8], index: 6, kind: input, shape index: {}]   ;;  %s3065_s7 = inlined_call_operand.hbm [shape: bf16[4,8,32], index: 7, kind: input, shape index: {}]   ;;  %s3066_s8 = inlined_call_operand.vmem [shape: f32[1,32], index: 8, kind: input, shape index: {}]   ;;  %s3067_s9 = inlined_call_operand.hbm [shape: f32[2,8,32], index: 9, kind: output, shape index: {}]  }
   0x1   :  { %3075 = sst [smem:[#allocation19_spill]] %s3066_s8 }
   0x2   :  { %3076 = sst [smem:[#allocation20_spill]] %s3067_s9 }
   0x3   :  { %14 = vsyncpa [#allocation8], 0 }
   0x4   :  { %16 = vsyncpa [#allocation8 + $0x1], 0 }
   0x5   :  { %17 = vsyncpa [#allocation11], 0 }
   0x6   :  { %18 = vsyncpa [#allocation9], 0 }
   0x7   :  { %20 = vsyncpa [#allocation9 + $0x1], 0  ;;  %s2562_s30 = smov 0   ;;  %s2564_s10 = smov 0  }
   0x8   :  { %s2566_s11 = smov 0   ;;  %s2568_s12 = smov 0  }
   0x9   :  { %s2570_s13 = smov 0   ;;  %s2572_s14 = smov 0  }
   0xa LB: > { %3077 = sst [smem:[#allocation17_spill]] %s2478_s30  ;;  %s1952_s15 = sadd.s32 4294967295, %s2498_s14   ;;  %s2498_s14 = sphi %s2572_s14, %s26_s14   ;;  %s2494_s13 = sphi %s2570_s13, %s3100_s13   ;;  %s2490_s12 = sphi %s2568_s12, %s3099_s12   ;;  %s2486_s11 = sphi %s2566_s11, %s3098_s11   ;;  %s2482_s10 = sphi %s2564_s10, %s3097_s10   ;;  %s2478_s30 = sphi %s2562_s30, %s3096_s30  }
   0xb   : > { %s1953_s16 = sadd.s32 4294967294, %s2498_s14   ;;  %p58_p0 = scmp.ne.s32.totalorder %s2482_s10, %s2478_s30 }
   0xc   : > { %p2596_p1 = scmp.eq.s32.totalorder %s1952_s15, 0  ;;  %p2600_p2 = scmp.eq.s32.totalorder %s1952_s15, 1 }
   0xd   : > { %p258_p3 = scmp.eq.s32.totalorder %s1953_s16, 1  ;;  %p1954_p5 = scmp.ge.s32.totalorder %s2498_s14, 1 }
   0xe   : > { %s3078_s17 = scalar_select %p2596_p1, 1, 0 }
   0xf   : > { %p2606_p4 = por %p2596_p1, %p58_p0  ;;  %p2611_p6 = por %p258_p3, %p58_p0 }
  0x10   : > { %p265_p7 = scmp.lt.s32.totalorder %s2498_s14, 3  ;;  %s2500_s22 = smov [#allocation10]  }
  0x11   : > { %s3080_s19 = scalar_select %p2606_p4, 1, 0 }
  0x12   : > { %s3081_s20 = scalar_select %p2611_p6, 1, 0 }
  0x13   : > { %p2616_p8 = pnand %p1954_p5, %p265_p7  ;;  %s280_s23 = sshll.u32 %s2500_s22, 4  ;;  %s2620_s23 = int_to_ptr.vmem [resolvable:$true] %s280_s23 }
  0x14   : > { %3082 = sst [smem:[#allocation18_spill]] %s3081_s20  ;;  %s2501_s25 = smov [#allocation12]  }
  0x15   : > { %p2221_p9 = pneg %p2616_p8  ;;  %s305_s26 = sshll.u32 %s2501_s25, 4  ;;  %s2631_s26 = int_to_ptr.vmem [resolvable:$true] %s305_s26 }
  0x16   : > { %s2326_s29 = scalar_lea.hbm %s3060_s2, 64 }
  0x17   : > { %p2627_p11 = pnand %p2221_p9, %p2596_p1  ;;  %p2327_p12 = scmp.ne.s32.totalorder %s3060_s2, %s2326_s29 }
  0x18   : > { %p2333_p5 = scmp.lt.u32.totalorder %s2326_s29, %s3060_s2 }
  0x19   : > { %p2328_p13 = pneg %p2627_p11 }
  0x1b   : > { %p2329_p0 = pnand %p2328_p13, %p2327_p12 }
  0x1d   : > { %p2330_p3 = pneg %p2329_p0 }
  0x1f   : > { %p2335_p7 = pnand %p2333_p5, %p2330_p3 }
  0x21   : > { %2338 = shalt.err (!%p2335_p7)
}
  0x22   : > { %s2339_s25 = scalar_lea.vmem %s2620_s23, 64  ;;  %p2347_p1 = scmp.lt.s32.totalorder %s2620_s23, %s2620_s23 }
  0x23   : > { %p2340_p9 = scmp.ne.s32.totalorder %s2620_s23, %s2339_s25  ;;  %p2348_p12 = scmp.lt.s32.totalorder %s2339_s25, %s2339_s25 }
  0x25   : > { %p2342_p10 = pnand %p2340_p9, %p2328_p13  ;;  %p2349_p0 = por %p2348_p12, %p2347_p1 }
  0x27   : > { %p2343_p6 = pneg %p2342_p10 }
  0x29   : > { %p2350_p4 = pnand %p2349_p0, %p2343_p6 }
  0x2b   : > { %2353 = shalt.err (!%p2350_p4)
}
  0x2c   : > { %s2502_s20 = smov 16   ;;  %s2503_s27 = smov 1  }
  0x2d   : > { %2224 = dma.hbm_to_vmem [thread:$0]  (!%p2627_p11), %s3060_s2, 64, %s2620_s23, [#allocation11], %s2502_s20, %s2502_s20, %s2503_s27  }
  0x2e   : > { %s2354_s22 = scalar_lea.hbm %s3065_s7, 256 }
  0x2f   : > { %p2355_p1 = scmp.ne.s32.totalorder %s3065_s7, %s2354_s22  ;;  %p2361_p10 = scmp.lt.u32.totalorder %s2354_s22, %s3065_s7 }
  0x31   : > { %p2357_p4 = pnand %p2355_p1, %p2328_p13 }
  0x33   : > { %p2358_p6 = pneg %p2357_p4 }
  0x35   : > { %p2363_p3 = pnand %p2361_p10, %p2358_p6 }
  0x37   : > { %2366 = shalt.err (!%p2363_p3)
}
  0x38   : > { %s2367_s23 = scalar_lea.vmem %s2631_s26, 256  ;;  %p2375_p12 = scmp.lt.s32.totalorder %s2631_s26, %s2631_s26 }
  0x39   : > { %p2368_p5 = scmp.ne.s32.totalorder %s2631_s26, %s2367_s23  ;;  %p2376_p0 = scmp.lt.s32.totalorder %s2367_s23, %s2367_s23 }
  0x3b   : > { %p2370_p7 = pnand %p2368_p5, %p2328_p13  ;;  %p2377_p1 = por %p2376_p0, %p2375_p12 }
  0x3d   : > { %p2371_p9 = pneg %p2370_p7 }
  0x3f   : > { %p2378_p4 = pnand %p2377_p1, %p2371_p9 }
  0x41   : > { %2381 = shalt.err (!%p2378_p4)
}
  0x42   : > { %s2504_s8 = smov 64   ;;  %s2505_s9 = smov 4  }
  0x43   : > { %2227 = dma.hbm_to_vmem [thread:$0]  (!%p2627_p11), %s3065_s7, 256, %s2631_s26, [#allocation11], %s2504_s8, %s2504_s8, %s2505_s9  }
  0x44   : > { %s38_s27 = sadd.s32 1, %s2494_s13  ;;  %s45_s28 = sadd.s32 1, %s2486_s11 }
  0x45   : > { %p40_p13 = scmp.ge.s32.totalorder %s38_s27, 2  ;;  %p52_p6 = scmp.ne.s32.totalorder %s2486_s11, %s2482_s10 }
  0x46   : > { %p53_p10 = scmp.eq.s32.totalorder %s2498_s14, 0  ;;  %p2238_p3 = scmp.lt.s32.totalorder %s2498_s14, 2 }
  0x47   : > { %s3102_s27 = smov (%p40_p13, %s38_s27), 0  ;;  %p2695_p7 = por %p2600_p2, %p52_p6 }
  0x48   : > { %p54_p5 = por %p53_p10, %p52_p6  ;;  %s42_s24 = ssub.s32 %s2494_s13, %s3102_s27 }
  0x49   : > { %s3085_s29 = scalar_select %p2695_p7, 1, 0 }
  0x4a   : > { %s322_s15 = sand.u32 1, %s2486_s11   ;;  %p43_p9 = scmp.eq.s32.totalorder %s42_s24, 0 }
  0x4b   : > { %s1958_s26 = sshll.u32 %s322_s15, 2  ;;  %s1959_s16 = sshll.u32 %s2494_s13, 6 }
  0x4c   : > { %s2704_s22 = scalar_select %p43_p9, %s2486_s11, %s45_s28  }
  0x4d   : > { %s2709_s8 = scalar_lea.hbm %s3058_s0, %s1959_s16  ;;  %s326_s18 = scalar_lea.vmem [#allocation7], %s1958_s26 }
  0x4e   : > { %s333_s9 = sshll.u32 %s326_s18, 4  ;;  %p2713_p2 = pnand %p2238_p3, %p54_p5  ;;  %s2717_s9 = int_to_ptr.vmem [resolvable:$true] %s333_s9 }
  0x4f   : > { %s323_s20 = scalar_lea.sflag [#allocation8], %s322_s15  ;;  %s2382_s28 = scalar_lea.hbm %s2709_s8, 64 }
  0x50   : > { %p2383_p11 = scmp.ne.s32.totalorder %s2709_s8, %s2382_s28  ;;  %p2384_p12 = pneg %p2713_p2 }
  0x51   : > { %s2387_s16 = scalar_lea.hbm %s3058_s0, 128  ;;  %p2388_p4 = scmp.lt.u32.totalorder %s2709_s8, %s3058_s0 }
  0x52   : > { %p2385_p0 = pnand %p2384_p12, %p2383_p11  ;;  %p2389_p13 = scmp.lt.u32.totalorder %s2387_s16, %s2382_s28 }
  0x53   : > { %p2391_p10 = scmp.lt.u32.totalorder %s2382_s28, %s2709_s8 }
  0x54   : > { %p2386_p1 = pneg %p2385_p0  ;;  %p2390_p6 = por %p2389_p13, %p2388_p4 }
  0x56   : > { %p2392_p3 = por %p2391_p10, %p2390_p6 }
  0x58   : > { %p2393_p5 = pnand %p2392_p3, %p2386_p1 }
  0x5a   : > { %2396 = shalt.err (!%p2393_p5)
}
  0x5b   : > { %s2397_s15 = scalar_lea.vmem %s2717_s9, 64  ;;  %s2506_s18 = smov [#allocation7]  }
  0x5c   : > { %p2398_p9 = scmp.ne.s32.totalorder %s2717_s9, %s2397_s15  ;;  %s2402_s24 = sshll.u32 %s2506_s18, 4  ;;  %s2403_s24 = int_to_ptr.vmem [resolvable:$false] %s2402_s24 }
  0x5d   : > { %s2404_s26 = scalar_lea.vmem %s2403_s24, 128  ;;  %p2405_p7 = scmp.lt.s32.totalorder %s2717_s9, %s2403_s24 }
  0x5e   : > { %p2400_p11 = pnand %p2398_p9, %p2384_p12  ;;  %p2406_p4 = scmp.lt.s32.totalorder %s2404_s26, %s2397_s15 }
  0x60   : > { %p2401_p0 = pneg %p2400_p11  ;;  %p2407_p13 = por %p2406_p4, %p2405_p7 }
  0x62   : > { %p2408_p6 = pnand %p2407_p13, %p2401_p0 }
  0x64   : > { %2411 = shalt.err (!%p2408_p6)
}
  0x65   : > { %2231 = dma.hbm_to_vmem [thread:$0]  (!%p2713_p2), %s2709_s8, 64, %s2717_s9, %s323_s20  }
  0x66   : > { %342 = sbr.rel (%p2616_p8) target bundleno = 1412 (0x584), region = 56  ;;  %s2747_s28 = sand.u32 (!%p2616_p8), 1, %s2482_s10  }
  0x67   : > { %s1961_s16 = sshll.u32 (!%p2616_p8), %s2747_s28, 2  ;;  %s345_s25 = scalar_lea.sflag (!%p2616_p8), [#allocation8], %s2747_s28 }
  0x68   : > { %s2751_s23 = scalar_lea.vmem (!%p2616_p8), [#allocation7], %s1961_s16  ;;  %p3087_p7 = scmp.ne.s32.totalorder (!%p2616_p8), %s3080_s19, 0 }
  0x6d   : > { %2465 = dma.done.wait (%p3087_p7), %s345_s25, 64  }
  0x6e   : > { %2467 = vsyncadd (%p3087_p7), %s345_s25, 4294967232  ;;  %p3088_p2 = scmp.ne.s32.totalorder %s3078_s17, 0 }
  0x70   : > { %2469 = dma.done.wait (%p3088_p2), [#allocation11], 320  }
  0x71   : > { %2471 = vsyncadd (%p3088_p2), [#allocation11], 4294966976  ;;  %v2507_v0 = vmov 0.0   ;;  %vm2508_vm0 = vmmov 0   ;;  %v2509_v1 = vmov 0   ;;  %vm404_vm1 = vcmask 261120  }
  0x72   : > { %2065 = vmatprep.subr.bf16.mxu0 %v2507_v0  ;;  %2071 = vmatprep.subr.bf16.mxu1 %v2507_v0  ;;  %v396_v2 = vld [vmem:[%s2751_s23] sm:$0xf]  ;;  %v1976_v8 = vld [vmem:[%s3062_s4 + $0x10] sm:$0xff]  ;;  %v1969_v9 = vld [vmem:[%s3062_s4 + $0x8] sm:$0xff]  ;;  %vm1077_vm2 = vcmask 64512   ;;  %vm452_vm3 = vcmask 60416  }
  0x73   : > { %2067 = vmatprep.mubr.msk.bf16.mxu0 %vm2508_vm0, %v2507_v0  ;;  %2073 = vmatprep.mubr.msk.bf16.mxu1 %vm2508_vm0, %v2507_v0  ;;  %v454_v3 = vld [vmem:[%s3063_s5] sm:$0xf]  ;;  %v409_v4 = vsel %vm404_vm1, %v396_v2, 0  ;;  %v1971_v7 = vld [vmem:[%s3063_s5 + $0x4] sm:$0xf]  ;;  %v1983_v12 = vld [vmem:[%s3062_s4 + $0x18] sm:$0xff] }
  0x74   : > { %2300 = vset.pattern.permute.xlu0 %v2509_v1  ;;  %2301 = vset.pattern.permute.xlu1 %v2509_v1  ;;  %v463_v5 = vsel %vm404_vm1, %v454_v3, 0  ;;  %v398_v6 = vld [vmem:[%s3062_s4] sm:$0xff]  ;;  %v573_v11 = vsel %vm404_vm1, %v1971_v7, 0  ;;  %v1978_v13 = vld [vmem:[%s3063_s5 + $0x8] sm:$0xf]  ;;  %1078 = vst.msk [vmem:[#allocation6] sm:$0xff] %vm1077_vm2, %v2507_v0 }
  0x75   : > { %2066 = vmatpush3.bf16.xpose.msra.mxu0 %v409_v4  ;;  %2072 = vmatpush3.bf16.xpose.msra.mxu1 %v463_v5  ;;  %v397_v10 = vld [vmem:[%s3061_s3] sm:$0xf]  ;;  %v1968_v14 = vld [vmem:[%s3061_s3 + $0x4] sm:$0xf]  ;;  %v684_v15 = vsel %vm404_vm1, %v1978_v13, 0  ;;  %1079 = vst.msk [vmem:[#allocation6 + $0x8] sm:$0xff] %vm1077_vm2, %v2507_v0 }
  0x76   : > { %2077 = vmatprep.subr.bf16.mxu0 %v2507_v0  ;;  %2083 = vmatprep.subr.bf16.mxu1 %v2507_v0  ;;  %v1985_v16 = vld [vmem:[%s3063_s5 + $0xc] sm:$0xf]  ;;  %v1975_v17 = vld [vmem:[%s3061_s3 + $0x8] sm:$0xf]  ;;  %v846_v19 = vld [vmem:[%s3059_s1] sm:$0xf] }
  0x77   : > { %401 = vperm.xlu0 %2300, %v398_v6   ;;  %624 = vperm.xlu1 %2301, %v1976_v8   ;;  %v795_v18 = vsel %vm404_vm1, %v1985_v16, 0  ;;  %v1991_v20 = vld [vmem:[%s3059_s1 + $0x4] sm:$0xf]  ;;  %v1982_v21 = vld [vmem:[%s3061_s3 + $0xc] sm:$0xf]  ;;  %v859_v22 = vsel %vm404_vm1, %v846_v19, 0 }
  0x78   : > { %v914_v23 = vsel %vm404_vm1, %v1991_v20, 0  ;;  %v1994_v24 = vld [vmem:[%s3059_s1 + $0x8] sm:$0xf]  ;;  %v1997_v25 = vld [vmem:[%s3059_s1 + $0xc] sm:$0xf]  ;;  %1080 = vst.msk [vmem:[#allocation6 + $0x10] sm:$0xff] %vm1077_vm2, %v2507_v0 }
  0x79   : > { %v845_v26 = vld [vmem:[%s2751_s23] sm:$0xf]  ;;  %v969_v27 = vsel %vm404_vm1, %v1994_v24, 0  ;;  %v1024_v28 = vsel %vm404_vm1, %v1997_v25, 0  ;;  %1081 = vst.msk [vmem:[#allocation6 + $0x18] sm:$0xff] %vm1077_vm2, %v2507_v0  ;;  %vm1093_vm4 = vcmask 1043456  }
  0x7a   : > { %v1966_v29 = vld [vmem:[%s3064_s6] ss:$0 sm:$0xff]  ;;  %v1973_v43 = vld [vmem:[%s3064_s6 + $0x1] ss:$0 sm:$0xff]  ;;  %v1980_v59 = vld [vmem:[%s3064_s6 + $0x2] ss:$0 sm:$0xff] }
  0x7b   : > { %513 = vperm.xlu0 %2300, %v1969_v9   ;;  %735 = vperm.xlu1 %2301, %v1983_v12   ;;  %v1987_v12 = vld [vmem:[%s3064_s6 + $0x3] ss:$0 sm:$0xff]  ;;  %vm1068_vm5 = vcmask 7168   ;;  %s1964_s17 = sshll.u32 %s2747_s28, 3  ;;  %s3089_s8 = sld [smem:[#allocation19_spill]] }
  0x7c   : > { %2068 = vmatmul.mubr.msk.bf16.vlgmr.msra.gmra.mrb[0].mxu0 %vm404_vm1, %v397_v10  ;;  %2074 = vmatmul.mubr.msk.bf16.vlgmr.msra.gmra.mrb[0].mxu1 %vm404_vm1, %v396_v2  ;;  %1073 = vst.msk [vmem:[#allocation5] sm:$0xff] %vm1068_vm5, %v2507_v0  ;;  %1074 = vst.msk [vmem:[#allocation5 + $0x8] sm:$0xff] %vm1068_vm5, %v2507_v0  ;;  %s2014_s9 = sshll.u32 %s2490_s12, 7  ;;  %s390_s30 = scalar_lea.vmem [#allocation13], %s1964_s17 }
  0x7d   : > { %2078 = vmatpush3.bf16.xpose.msra.mxu0 %v409_v4  ;;  %2084 = vmatpush3.bf16.xpose.msra.mxu1 %v573_v11  ;;  %1075 = vst.msk [vmem:[#allocation5 + $0x10] sm:$0xff] %vm1068_vm5, %v2507_v0  ;;  %1076 = vst.msk [vmem:[#allocation5 + $0x18] sm:$0xff] %vm1068_vm5, %v2507_v0  ;;  %s1852_s23 = sshll.u32 %s390_s30, 4  ;;  %s3090_s18 = sld [smem:[#allocation20_spill]]  ;;  %s3010_s23 = int_to_ptr.vmem [resolvable:$true] %s1852_s23 }
  0x7e   : > { %2079 = vmatprep.mubr.msk.bf16.mxu0 %vm2508_vm0, %v2507_v0  ;;  %2085 = vmatprep.mubr.msk.bf16.mxu1 %vm2508_vm0, %v2507_v0  ;;  %s1838_s12 = scalar_lea.sflag [#allocation9], %s2747_s28  ;;  %s2412_s26 = scalar_lea.vmem %s3010_s23, 128 }
  0x7f   : > { %2089 = vmatprep.subr.bf16.mxu0 %v2507_v0  ;;  %2095 = vmatprep.subr.bf16.mxu1 %v2507_v0  ;;  %p2413_p8 = scmp.ne.s32.totalorder %s3010_s23, %s2412_s26  ;;  %p3091_p12 = scmp.ne.s32.totalorder %s3085_s29, 0 }
  0x80   : > { %s2511_s16 = smov [#allocation13]  }
  0x81   : > { %p2414_p1 = pnand %p2413_p8, %p3091_p12  ;;  %s2416_s25 = sshll.u32 %s2511_s16, 4  ;;  %s2417_s25 = int_to_ptr.vmem [resolvable:$false] %s2416_s25 }
  0x82   : > { %s2418_s17 = scalar_lea.vmem %s2417_s25, 256  ;;  %p2419_p3 = scmp.lt.s32.totalorder %s3010_s23, %s2417_s25 }
  0x83   : > { %s3008_s24 = scalar_lea.hbm %s3090_s18, %s2014_s9  ;;  %p2415_p10 = pneg %p2414_p1 }
  0x84   : > { %2080 = vmatmul.mubr.msk.bf16.vlgmr.msra.gmra.mrb[4].mxu0 %vm404_vm1, %v1968_v14  ;;  %2086 = vmatmul.mubr.msk.bf16.vlgmr.msra.gmra.mrb[4].mxu1 %vm404_vm1, %v396_v2  ;;  %p2420_p5 = scmp.lt.s32.totalorder %s2418_s17, %s2412_s26 }
  0x85   : > { %2090 = vmatpush3.bf16.xpose.msra.mxu0 %v409_v4  ;;  %2096 = vmatpush3.bf16.xpose.msra.mxu1 %v684_v15 }
  0x86   : > { %2091 = vmatprep.mubr.msk.bf16.mxu0 %vm2508_vm0, %v2507_v0  ;;  %2097 = vmatprep.mubr.msk.bf16.mxu1 %vm2508_vm0, %v2507_v0  ;;  %p2421_p9 = por %p2420_p5, %p2419_p3 }
  0x87   : > { %2101 = vmatprep.subr.bf16.mxu0 %v2507_v0  ;;  %2107 = vmatprep.subr.bf16.mxu1 %v2507_v0 }
  0x88   : > { %p2422_p11 = pnand %p2421_p9, %p2415_p10 }
  0x8c   : > { %2092 = vmatmul.mubr.msk.bf16.vlgmr.msra.gmra.mrb[8].mxu0 %vm404_vm1, %v1975_v17  ;;  %2098 = vmatmul.mubr.msk.bf16.vlgmr.msra.gmra.mrb[8].mxu1 %vm404_vm1, %v396_v2 }
  0x8d   : > { %2102 = vmatpush3.bf16.xpose.msra.mxu0 %v409_v4  ;;  %2108 = vmatpush3.bf16.xpose.msra.mxu1 %v795_v18 }
  0x8e   : > { %2103 = vmatprep.mubr.msk.bf16.mxu0 %vm2508_vm0, %v2507_v0  ;;  %2109 = vmatprep.mubr.msk.bf16.mxu1 %vm2508_vm0, %v2507_v0 }
  0x8f   : > { %2113 = vmatprep.subr.bf16.mxu0 %v2507_v0  ;;  %2119 = vmatprep.subr.bf16.mxu1 %v2507_v0 }
  0x94   : > { %2104 = vmatmul.mubr.msk.bf16.vlgmr.msra.gmra.mrb[12].mxu0 %vm404_vm1, %v1982_v21  ;;  %2110 = vmatmul.mubr.msk.bf16.vlgmr.msra.gmra.mrb[12].mxu1 %vm404_vm1, %v396_v2 }
  0x95   : > { %2114 = vmatpush3.bf16.xpose.msra.mxu0 %v859_v22  ;;  %2120 = vmatpush3.bf16.xpose.msra.mxu1 %v914_v23 }
  0x96   : > { %2115 = vmatprep.mubr.msk.bf16.mxu0 %vm2508_vm0, %v2507_v0  ;;  %2121 = vmatprep.mubr.msk.bf16.mxu1 %vm2508_vm0, %v2507_v0 }
  0x97   : > { %2125 = vmatprep.subr.bf16.mxu0 %v2507_v0  ;;  %2131 = vmatprep.subr.bf16.mxu1 %v2507_v0 }
  0x9c   : > { %2116 = vmatmul.mubr.msk.bf16.vlgmr.msra.gmra.mrb[16].mxu0 %vm404_vm1, %v845_v26  ;;  %2122 = vmatmul.mubr.msk.bf16.vlgmr.msra.gmra.mrb[16].mxu1 %vm404_vm1, %v845_v26 }
  0x9d   : > { %2126 = vmatpush3.bf16.xpose.msra.mxu0 %v969_v27  ;;  %2132 = vmatpush3.bf16.xpose.msra.mxu1 %v1024_v28  ;;  %v1992_v27 = vld [vmem:[#allocation10 + $0x1] ss:$0 sm:$0xff] }
  0x9e   : > { %2127 = vmatprep.mubr.msk.bf16.mxu0 %vm2508_vm0, %v2507_v0  ;;  %2133 = vmatprep.mubr.msk.bf16.mxu1 %vm2508_vm0, %v2507_v0 }
  0x9f   : > { %2137 = vmatprep.subr.bf16.mxu0 %v2507_v0  ;;  %2143 = vmatprep.subr.bf16.mxu1 %v2507_v0 }
  0xa4   : > { %2128 = vmatmul.mubr.msk.bf16.vlgmr.msra.gmra.mrb[20].mxu0 %vm404_vm1, %v845_v26  ;;  %2134 = vmatmul.mubr.msk.bf16.vlgmr.msra.gmra.mrb[20].mxu1 %vm404_vm1, %v845_v26  ;;  %v1989_v26 = vld [vmem:[#allocation10] ss:$0 sm:$0xff] }
  0xa5   : > { %2139 = vmatprep.mubr.msk.bf16.mxu0 %vm2508_vm0, %v2507_v0  ;;  %2145 = vmatprep.mubr.msk.bf16.mxu1 %vm2508_vm0, %v2507_v0 }
  0xf6   : > { %v402_v30 = vpop.permute.xlu0 %401  ;;  %v625_v60 = vpop.permute.xlu1 %624 }
  0xfa   : > { %v514_v44 = vpop.permute.xlu0 %513  ;;  %v736_v13 = vpop.permute.xlu1 %735 }
 0x14f   : > { %v445_v31 = vpop.f32.mrb[0].mxu0  ;;  %v499_v32 = vpop.f32.mrb[0].mxu1 }
 0x150   : > { %v500_v33 = vadd.f32 %v1966_v29, %v499_v32  ;;  %v446_v34 = vadd.f32 %v445_v31, %v402_v30  ;;  %v2069_v35 = vpop.f32.mrb[1].mxu0  ;;  %v2075_v36 = vpop.f32.mrb[1].mxu1 }
 0x151   : > { %v448_v37 = vpop.f32.mrb[2].mxu0  ;;  %v502_v38 = vpop.f32.mrb[2].mxu1 }
 0x152   : > { %v505_v39 = vpack.c.bf16 %v500_v33, %v500_v33  ;;  %v451_v40 = vpack.c.bf16 %v446_v34, %v446_v34  ;;  %v2070_v41 = vpop.f32.mrb[3].mxu0  ;;  %v2076_v42 = vpop.f32.mrb[3].mxu1 }
 0x154   : > { %506 = vst.msk [vmem:[#allocation3] sm:$0xf] %vm452_vm3, %v505_v39  ;;  %453 = vst.msk [vmem:[#allocation2] sm:$0xf] %vm452_vm3, %v451_v40 }
 0x157   : > { %v553_v45 = vpop.f32.mrb[4].mxu0  ;;  %v609_v46 = vpop.f32.mrb[4].mxu1 }
 0x158   : > { %v610_v47 = vadd.f32 %v1973_v43, %v609_v46  ;;  %v554_v48 = vadd.f32 %v553_v45, %v514_v44  ;;  %v2081_v49 = vpop.f32.mrb[5].mxu0  ;;  %v2087_v50 = vpop.f32.mrb[5].mxu1  ;;  %v1995_v45 = vld [vmem:[#allocation10 + $0x2] ss:$0 sm:$0xff]  ;;  %v1998_v46 = vld [vmem:[#allocation10 + $0x3] ss:$0 sm:$0xff] }
 0x159   : > { %v556_v51 = vpop.f32.mrb[6].mxu0  ;;  %v612_v52 = vpop.f32.mrb[6].mxu1 }
 0x15a   : > { %v615_v53 = vpack.c.bf16 %v610_v47, %v610_v47  ;;  %v559_v54 = vpack.c.bf16 %v554_v48, %v554_v48  ;;  %v2082_v55 = vpop.f32.mrb[7].mxu0  ;;  %v2088_v56 = vpop.f32.mrb[7].mxu1 }
 0x15b   : > { %v1082_v57 = vld [vmem:[#allocation2] sm:$0xf] }
 0x15c   : > { %617 = vst.msk [vmem:[#allocation3 + $0x4] sm:$0xf] %vm452_vm3, %v615_v53  ;;  %561 = vst.msk [vmem:[#allocation2 + $0x4] sm:$0xf] %vm452_vm3, %v559_v54  ;;  %v1095_v58 = vsel %vm1093_vm4, %v1082_v57, 0 }
 0x15d   : > { %2138 = vmatpush3.bf16.msra.mxu0 %v1095_v58 }
 0x15e   : > { %2149 = vmatprep.subr.bf16.mxu0 %v2507_v0 }
 0x15f   : > { %v664_v61 = vpop.f32.mrb[8].mxu0  ;;  %v720_v62 = vpop.f32.mrb[8].mxu1 }
 0x160   : > { %v721_v63 = vadd.f32 %v1980_v59, %v720_v62  ;;  %v665_v1 = vadd.f32 %v664_v61, %v625_v60  ;;  %v2093_v2 = vpop.f32.mrb[9].mxu0  ;;  %v2099_v3 = vpop.f32.mrb[9].mxu1  ;;  %v1086_v60 = vld [vmem:[#allocation3] sm:$0xf] }
 0x161   : > { %v667_v4 = vpop.f32.mrb[10].mxu0  ;;  %v723_v5 = vpop.f32.mrb[10].mxu1  ;;  %v2510_v3 = vmov -inf  }
 0x162   : > { %v726_v6 = vpack.c.bf16 %v721_v63, %v721_v63  ;;  %v670_v7 = vpack.c.bf16 %v665_v1, %v665_v1  ;;  %v2094_v8 = vpop.f32.mrb[11].mxu0  ;;  %v2100_v9 = vpop.f32.mrb[11].mxu1  ;;  %v1403_v1 = vsel %vm1093_vm4, %v1086_v60, 0  ;;  %1070 = vst.msk [vmem:[#allocation4 + $0x8] sm:$0xff] %vm1068_vm5, %v2510_v3  ;;  %1069 = vst.msk [vmem:[#allocation4] sm:$0xff] %vm1068_vm5, %v2510_v3 }
 0x163   : > { %v1083_v10 = vld [vmem:[#allocation2 + $0x4] sm:$0xf]  ;;  %v1087_v61 = vld [vmem:[#allocation3 + $0x4] sm:$0xf]  ;;  %1071 = vst.msk [vmem:[#allocation4 + $0x10] sm:$0xff] %vm1068_vm5, %v2510_v3  ;;  %1072 = vst.msk [vmem:[#allocation4 + $0x18] sm:$0xff] %vm1068_vm5, %v2510_v3 }
 0x164   : > { %728 = vst.msk [vmem:[#allocation3 + $0x8] sm:$0xf] %vm452_vm3, %v726_v6  ;;  %672 = vst.msk [vmem:[#allocation2 + $0x8] sm:$0xf] %vm452_vm3, %v670_v7  ;;  %v1141_v11 = vsel %vm1093_vm4, %v1083_v10, 0  ;;  %v1449_v2 = vsel %vm1093_vm4, %v1087_v61, 0 }
 0x165   : > { %2144 = vmatpush3.bf16.msra.mxu1 %v1141_v11 }
 0x166   : > { %2155 = vmatprep.subr.bf16.mxu1 %v2507_v0 }
 0x167   : > { %v775_v14 = vpop.f32.mrb[12].mxu0  ;;  %v831_v15 = vpop.f32.mrb[12].mxu1 }
 0x168   : > { %v832_v16 = vadd.f32 %v1987_v12, %v831_v15  ;;  %v776_v17 = vadd.f32 %v775_v14, %v736_v13  ;;  %v2105_v18 = vpop.f32.mrb[13].mxu0  ;;  %v2111_v19 = vpop.f32.mrb[13].mxu1 }
 0x169   : > { %v778_v20 = vpop.f32.mrb[14].mxu0  ;;  %v834_v21 = vpop.f32.mrb[14].mxu1 }
 0x16a   : > { %v837_v22 = vpack.c.bf16 %v832_v16, %v832_v16  ;;  %v781_v23 = vpack.c.bf16 %v776_v17, %v776_v17  ;;  %v2106_v24 = vpop.f32.mrb[15].mxu0  ;;  %v2112_v25 = vpop.f32.mrb[15].mxu1 }
 0x16b   : > { %v1084_v40 = vld [vmem:[#allocation2 + $0x8] sm:$0xf]  ;;  %v2942_v25 = vld [vmem:[#allocation4] sm:$0xff] }
 0x16c   : > { %839 = vst.msk [vmem:[#allocation3 + $0xc] sm:$0xf] %vm452_vm3, %v837_v22  ;;  %783 = vst.msk [vmem:[#allocation2 + $0xc] sm:$0xf] %vm452_vm3, %v781_v23  ;;  %v1187_v47 = vsel %vm1093_vm4, %v1084_v40, 0  ;;  %v1276_v24 = vld [vmem:[#allocation4 + $0x8] sm:$0xff] }
 0x16f   : > { %v895_v28 = vpop.f32.mrb[16].mxu0  ;;  %v950_v29 = vpop.f32.mrb[16].mxu1 }
 0x170   : > { %v896_v30 = vadd.f32 %v1989_v26, %v895_v28  ;;  %v951_v31 = vadd.f32 %v1992_v27, %v950_v29  ;;  %v2117_v32 = vpop.f32.mrb[17].mxu0  ;;  %v2123_v33 = vpop.f32.mrb[17].mxu1 }
 0x171   : > { %v898_v34 = vpop.f32.mrb[18].mxu0  ;;  %v953_v35 = vpop.f32.mrb[18].mxu1  ;;  %v1277_v32 = vld [vmem:[#allocation4 + $0x10] sm:$0xff] }
 0x172   : > { %v901_v36 = vmul.f32 0.35355338, %v896_v30  ;;  %v956_v37 = vmul.f32 0.35355338, %v951_v31  ;;  %v2118_v38 = vpop.f32.mrb[19].mxu0  ;;  %v2124_v39 = vpop.f32.mrb[19].mxu1 }
 0x173   : > { %v1085_v41 = vld [vmem:[#allocation2 + $0xc] sm:$0xf]  ;;  %v1278_v35 = vld [vmem:[#allocation4 + $0x18] sm:$0xff] }
 0x174   : > { %v902_v42 = vpack.c.bf16 %v901_v36, %v901_v36  ;;  %v957_v43 = vpack.c.bf16 %v956_v37, %v956_v37  ;;  %v1233_v44 = vsel %vm1093_vm4, %v1085_v41, 0 }
 0x176   : > { %2140 = vmatmul.mubr.msk.bf16.vlgmr.msra.gmra.mrb[24].mxu0 %vm1077_vm2, %v902_v42  ;;  %2146 = vmatmul.mubr.msk.bf16.vlgmr.msra.gmra.mrb[24].mxu1 %vm1077_vm2, %v957_v43 }
 0x177   : > { %2150 = vmatpush3.bf16.msra.mxu0 %v1187_v47  ;;  %2156 = vmatpush3.bf16.msra.mxu1 %v1233_v44  ;;  %v1005_v48 = vpop.f32.mrb[20].mxu0  ;;  %v1060_v49 = vpop.f32.mrb[20].mxu1 }
 0x178   : > { %v1006_v50 = vadd.f32 %v1995_v45, %v1005_v48  ;;  %v1061_v51 = vadd.f32 %v1998_v46, %v1060_v49  ;;  %v2129_v52 = vpop.f32.mrb[21].mxu0  ;;  %v2135_v53 = vpop.f32.mrb[21].mxu1  ;;  %2151 = vmatprep.mubr.msk.bf16.mxu0 %vm2508_vm0, %v2507_v0  ;;  %2157 = vmatprep.mubr.msk.bf16.mxu1 %vm2508_vm0, %v2507_v0 }
 0x179   : > { %v1008_v54 = vpop.f32.mrb[22].mxu0  ;;  %v1063_v55 = vpop.f32.mrb[22].mxu1  ;;  %2161 = vmatprep.subr.bf16.mxu0 %v2507_v0  ;;  %2167 = vmatprep.subr.bf16.mxu1 %v2507_v0  ;;  %v1088_v53 = vld [vmem:[#allocation3 + $0x8] sm:$0xf] }
 0x17a   : > { %v1011_v56 = vmul.f32 0.35355338, %v1006_v50  ;;  %v1066_v57 = vmul.f32 0.35355338, %v1061_v51  ;;  %v2130_v58 = vpop.f32.mrb[23].mxu0  ;;  %v2136_v59 = vpop.f32.mrb[23].mxu1 }
 0x17b   : > { %v1495_v60 = vsel %vm1093_vm4, %v1088_v53, 0 }
 0x17c   : > { %v1012_v62 = vpack.c.bf16 %v1011_v56, %v1011_v56  ;;  %v1067_v63 = vpack.c.bf16 %v1066_v57, %v1066_v57  ;;  %v1089_v57 = vld [vmem:[#allocation3 + $0xc] sm:$0xf] }
 0x17e   : > { %2152 = vmatmul.mubr.msk.bf16.vlgmr.msra.gmra.mrb[28].mxu0 %vm1077_vm2, %v1012_v62  ;;  %2158 = vmatmul.mubr.msk.bf16.vlgmr.msra.gmra.mrb[28].mxu1 %vm1077_vm2, %v1067_v63  ;;  %v1541_v62 = vsel %vm1093_vm4, %v1089_v57, 0  ;;  %v1369_v57 = vld [vmem:[#allocation6 + $0x10] sm:$0xff] }
 0x17f   : > { %2162 = vmatpush3.bf16.msra.mxu0 %v1403_v1  ;;  %2168 = vmatpush3.bf16.msra.mxu1 %v1449_v2 }
 0x180   : > { %2163 = vmatprep.mubr.msk.bf16.mxu0 %vm2508_vm0, %v2507_v0  ;;  %2169 = vmatprep.mubr.msk.bf16.mxu1 %vm2508_vm0, %v2507_v0 }
 0x181   : > { %2173 = vmatprep.subr.bf16.mxu0 %v2507_v0  ;;  %2179 = vmatprep.subr.bf16.mxu1 %v2507_v0 }
 0x249   : > { %v1131_v4 = vpop.f32.mrb[24].mxu0  ;;  %v1177_v5 = vpop.f32.mrb[24].mxu1 }
 0x24a   : > { %v2141_v6 = vpop.f32.mrb[25].mxu0  ;;  %v2147_v7 = vpop.f32.mrb[25].mxu1  ;;  %v1282_v8 = vsel %vm1077_vm2, %v1177_v5, -inf  ;;  %v1279_v9 = vsel %vm1077_vm2, %v1131_v4, -inf }
 0x24b   : > { %1283 = vmax.xlane.f32.xlu1 %v1282_v8  ;;  %v1180_v10 = vpop.f32.mrb[26].mxu1  ;;  %1280 = vmax.xlane.f32.xlu0 %v1279_v9  ;;  %v1134_v11 = vpop.f32.mrb[26].mxu0 }
 0x24c   : > { %v2142_v12 = vpop.f32.mrb[27].mxu0  ;;  %v2148_v13 = vpop.f32.mrb[27].mxu1 }
 0x24d   : > { %v1637_v13 = vld [vmem:[#allocation12 + $0x4] sm:$0xf] }
 0x251   : > { %v1223_v14 = vpop.f32.mrb[28].mxu0  ;;  %v1269_v15 = vpop.f32.mrb[28].mxu1 }
 0x252   : > { %v2153_v16 = vpop.f32.mrb[29].mxu0  ;;  %v1285_v17 = vsel %vm1077_vm2, %v1223_v14, -inf  ;;  %v2159_v18 = vpop.f32.mrb[29].mxu1  ;;  %v1288_v23 = vsel %vm1077_vm2, %v1269_v15, -inf }
 0x253   : > { %1286 = vmax.xlane.f32.xlu0 %v1285_v17  ;;  %v1226_v19 = vpop.f32.mrb[30].mxu0  ;;  %v1272_v20 = vpop.f32.mrb[30].mxu1  ;;  %v1340_v16 = vld [vmem:[#allocation5 + $0x8] sm:$0xff] }
 0x254   : > { %v2154_v21 = vpop.f32.mrb[31].mxu0  ;;  %v2160_v22 = vpop.f32.mrb[31].mxu1 }
 0x257   : > { %1289 = vmax.xlane.f32.xlu0 %v1288_v23  ;;  %v1341_v23 = vld [vmem:[#allocation5 + $0x10] sm:$0xff] }
 0x2d8   : > { %v1284_v26 = vpop.xlane.xlu1 %1283  ;;  %v1281_v27 = vpop.xlane.xlu0 %1280 }
 0x2d9   : > { %v1292_v28 = vmax.f32 %v1276_v24, %v1284_v26  ;;  %v2945_v29 = vmax.f32 %v2942_v25, %v1281_v27  ;;  %v1342_v26 = vld [vmem:[#allocation5 + $0x18] sm:$0xff] }
 0x2db   : > { %v1296_v30 = vsub.f32 %v1276_v24, %v1292_v28  ;;  %1592 = vst.msk [vmem:[#allocation4 + $0x8] sm:$0xff] %vm1068_vm5, %v1292_v28  ;;  %v1295_v31 = vsub.f32 %v2942_v25, %v2945_v29  ;;  %1591 = vst.msk [vmem:[#allocation4] sm:$0xff] %vm1068_vm5, %v2945_v29  ;;  %1309 = vperm.xlu1 %2301, %v2945_v29   ;;  %1314 = vperm.xlu0 %2300, %v1292_v28  }
 0x2dd   : > { %v1301_v61 = vmul.f32 1.442695, %v1296_v30  ;;  %v1299_v9 = vmul.f32 1.442695, %v1295_v31 }
 0x2e0   : > { %v1287_v33 = vpop.xlane.xlu0 %1286 }
 0x2e1   : > { %v1293_v34 = vmax.f32 %v1277_v32, %v1287_v33 }
 0x2e3   : > { %v1297_v36 = vsub.f32 %v1277_v32, %v1293_v34  ;;  %1593 = vst.msk [vmem:[#allocation4 + $0x10] sm:$0xff] %vm1068_vm5, %v1293_v34  ;;  %1319 = vperm.xlu1 %2301, %v1293_v34  }
 0x2e4   : > { %v1290_v37 = vpop.xlane.xlu0 %1289 }
 0x2e5   : > { %v1294_v38 = vmax.f32 %v1278_v35, %v1290_v37  ;;  %v1303_v1 = vmul.f32 1.442695, %v1297_v36  ;;  %v1635_v37 = vld [vmem:[#allocation12] sm:$0xf] }
 0x2e7   : > { %v1298_v39 = vsub.f32 %v1278_v35, %v1294_v38  ;;  %1594 = vst.msk [vmem:[#allocation4 + $0x18] sm:$0xff] %vm1068_vm5, %v1294_v38  ;;  %1324 = vperm.xlu1 %2301, %v1294_v38   ;;  %v1688_v38 = vsel %vm1093_vm4, %v1635_v37, 0 }
 0x35a   : > { %v1310_v40 = vpop.permute.xlu1 %1309  ;;  %v1315_v41 = vpop.permute.xlu0 %1314 }
 0x35b   : > { %v1327_v42 = vsub.f32 %v1131_v4, %v1310_v40  ;;  %v1328_v43 = vsub.f32 %v1177_v5, %v1315_v41  ;;  %v1305_v5 = vmul.f32 1.442695, %v1298_v39 }
 0x35d   : > { %v1331_v44 = vmul.f32 1.442695, %v1327_v42  ;;  %v1333_v45 = vmul.f32 1.442695, %v1328_v43  ;;  %v1367_v42 = vld [vmem:[#allocation6] sm:$0xff] }
 0x35f   : > { %2302 = vpow2.f32 %v1331_v44  ;;  %v1368_v44 = vld [vmem:[#allocation6 + $0x8] sm:$0xff] }
 0x360   : > { %2304 = vpow2.f32 %v1333_v45 }
 0x362   : > { %v1320_v46 = vpop.permute.xlu1 %1319 }
 0x363   : > { %v1329_v47 = vsub.f32 %v1223_v14, %v1320_v46  ;;  %v1642_v14 = vsel %vm1093_vm4, %v1637_v13, 0 }
 0x365   : > { %v1335_v48 = vmul.f32 1.442695, %v1329_v47 }
 0x366   : > { %v1325_v49 = vpop.permute.xlu1 %1324 }
 0x367   : > { %2306 = vpow2.f32 %v1335_v48  ;;  %v1330_v50 = vsub.f32 %v1269_v15, %v1325_v49  ;;  %v1339_v15 = vld [vmem:[#allocation5] sm:$0xff] }
 0x369   : > { %v2303_v51 = vpop.eup %2302  ;;  %v1337_v52 = vmul.f32 1.442695, %v1330_v50 }
 0x36a   : > { %v2305_v54 = vpop.eup %2304  ;;  %v1347_v55 = vsel %vm1077_vm2, %v2303_v51, 0.0  ;;  %v1395_v56 = vpack.c.bf16 %v2303_v51, %v2303_v51 }
 0x36b   : > { %2308 = vpow2.f32 %v1337_v52  ;;  %1348 = vadd.xlane.f32.xlu1 %v1347_v55  ;;  %v1350_v58 = vsel %vm1077_vm2, %v2305_v54, 0.0  ;;  %v1396_v59 = vpack.c.bf16 %v2305_v54, %v2305_v54 }
 0x36c   : > { %1351 = vadd.xlane.f32.xlu0 %v1350_v58  ;;  %2164 = vmatmul.mubr.msk.bf16.vlgmr.msra.gmra.mrb[32].mxu0 %vm1077_vm2, %v1395_v56  ;;  %2310 = vpow2.f32 %v1301_v61 }
 0x36d   : > { %2170 = vmatmul.mubr.msk.bf16.vlgmr.msra.gmra.mrb[32].mxu1 %vm1077_vm2, %v1396_v59  ;;  %2174 = vmatpush3.bf16.msra.mxu0 %v1495_v60  ;;  %2312 = vpow2.f32 %v1303_v1  ;;  %v1370_v60 = vld [vmem:[#allocation6 + $0x18] sm:$0xff] }
 0x36e   : > { %2180 = vmatpush3.bf16.msra.mxu1 %v1541_v62  ;;  %2175 = vmatprep.mubr.msk.bf16.mxu0 %vm2508_vm0, %v2507_v0  ;;  %2314 = vpow2.f32 %v1305_v5 }
 0x36f   : > { %2181 = vmatprep.mubr.msk.bf16.mxu1 %vm2508_vm0, %v2507_v0  ;;  %2185 = vmatprep.subr.bf16.mxu0 %v2507_v0  ;;  %2316 = vpow2.f32 %v1299_v9 }
 0x370   : > { %2191 = vmatprep.subr.bf16.mxu1 %v2507_v0 }
 0x371   : > { %v2307_v63 = vpop.eup %2306 }
 0x372   : > { %v1353_v2 = vsel %vm1077_vm2, %v2307_v63, 0.0  ;;  %v1397_v3 = vpack.c.bf16 %v2307_v63, %v2307_v63 }
 0x373   : > { %1354 = vadd.xlane.f32.xlu0 %v1353_v2 }
 0x374   : > { %2176 = vmatmul.mubr.msk.bf16.vlgmr.msra.gmra.mrb[36].mxu0 %vm1077_vm2, %v1397_v3 }
 0x375   : > { %v2309_v4 = vpop.eup %2308  ;;  %2187 = vmatprep.mubr.msk.bf16.mxu0 %vm2508_vm0, %v2507_v0  ;;  %2186 = vmatpush3.bf16.msra.mxu0 %v1642_v14 }
 0x376   : > { %v1356_v6 = vsel %vm1077_vm2, %v2309_v4, 0.0  ;;  %v1398_v7 = vpack.c.bf16 %v2309_v4, %v2309_v4  ;;  %v2311_v8 = vpop.eup %2310  ;;  %2197 = vmatprep.subr.bf16.mxu0 %v2507_v0 }
 0x377   : > { %1357 = vadd.xlane.f32.xlu0 %v1356_v6  ;;  %v2313_v10 = vpop.eup %2312  ;;  %v1344_v19 = vmul.f32 %v2311_v8, %v1340_v16  ;;  %v1731_v16 = vld [vmem:[#allocation12 + $0x8] sm:$0xf] }
 0x378   : > { %2182 = vmatmul.mubr.msk.bf16.vlgmr.msra.gmra.mrb[36].mxu1 %vm1077_vm2, %v1398_v7  ;;  %v2315_v11 = vpop.eup %2314  ;;  %v1345_v24 = vmul.f32 %v2313_v10, %v1341_v23 }
 0x379   : > { %2193 = vmatprep.mubr.msk.bf16.mxu1 %vm2508_vm0, %v2507_v0  ;;  %v2317_v12 = vpop.eup %2316  ;;  %v1346_v29 = vmul.f32 %v2315_v11, %v1342_v26  ;;  %2192 = vmatpush3.bf16.msra.mxu1 %v1688_v38 }
 0x37a   : > { %v1343_v17 = vmul.f32 %v2317_v12, %v1339_v15  ;;  %2203 = vmatprep.subr.bf16.mxu1 %v2507_v0 }
 0x37c   : > { %1378 = vperm.xlu1 %2301, %v2311_v8  }
 0x380   : > { %1383 = vperm.xlu1 %2301, %v2313_v10  }
 0x384   : > { %1388 = vperm.xlu1 %2301, %v2315_v11  }
 0x38d   : > { %1373 = vperm.xlu0 %2300, %v2317_v12   ;;  %v1780_v12 = vld [vmem:[#allocation12 + $0xc] sm:$0xf] }
 0x3f8   : > { %v1349_v18 = vpop.xlane.xlu1 %1348 }
 0x3f9   : > { %v1359_v20 = vadd.f32 %v1349_v18, %v1343_v17  ;;  %v1352_v21 = vpop.xlane.xlu0 %1351 }
 0x3fa   : > { %v1360_v22 = vadd.f32 %v1352_v21, %v1344_v19  ;;  %v1785_v19 = vsel %vm1093_vm4, %v1780_v12, 0  ;;  %v1736_v21 = vsel %vm1093_vm4, %v1731_v16, 0 }
 0x3fb   : > { %1363 = vst.msk [vmem:[#allocation5] sm:$0xff] %vm1068_vm5, %v1359_v20 }
 0x3fc   : > { %1364 = vst.msk [vmem:[#allocation5 + $0x8] sm:$0xff] %vm1068_vm5, %v1360_v22  ;;  %v1379_v41 = vpop.permute.xlu1 %1378 }
 0x3fd   : > { %v1392_v46 = vmul.f32 %v1379_v41, %v1368_v44  ;;  %v2012_v44 = vld [vmem:[%s3089_s8] ss:$0 sm:$0xff] }
 0x400   : > { %v1355_v25 = vpop.xlane.xlu0 %1354  ;;  %v1384_v47 = vpop.permute.xlu1 %1383 }
 0x401   : > { %v1361_v27 = vadd.f32 %v1355_v25, %v1345_v24  ;;  %v1393_v59 = vmul.f32 %v1384_v47, %v1369_v57 }
 0x402   : > { %v1595_v28 = vld [vmem:[#allocation5] sm:$0xff] }
 0x403   : > { %1365 = vst.msk [vmem:[#allocation5 + $0x10] sm:$0xff] %vm1068_vm5, %v1361_v27  ;;  %2318 = vrcp.f32 %v1595_v28  ;;  %v1596_v30 = vld [vmem:[#allocation5 + $0x8] sm:$0xff] }
 0x404   : > { %v1358_v31 = vpop.xlane.xlu0 %1357  ;;  %2320 = vrcp.f32 %v1596_v30  ;;  %v1389_v61 = vpop.permute.xlu1 %1388 }
 0x405   : > { %v1362_v32 = vadd.f32 %v1358_v31, %v1346_v29  ;;  %v1394_v3 = vmul.f32 %v1389_v61, %v1370_v60 }
 0x407   : > { %1366 = vst.msk [vmem:[#allocation5 + $0x18] sm:$0xff] %vm1068_vm5, %v1362_v32 }
 0x40a   : > { %v1597_v33 = vld [vmem:[#allocation5 + $0x10] sm:$0xff] }
 0x40b   : > { %2322 = vrcp.f32 %v1597_v33 }
 0x40c   : > { %v1374_v43 = vpop.permute.xlu0 %1373 }
 0x40d   : > { %v2319_v34 = vpop.eup %2318  ;;  %v1391_v45 = vmul.f32 %v1374_v43, %v1367_v42 }
 0x40e   : > { %v2321_v35 = vpop.eup %2320  ;;  %1609 = vperm.xlu1 %2301, %v2319_v34   ;;  %v1598_v36 = vld [vmem:[#allocation5 + $0x18] sm:$0xff] }
 0x40f   : > { %1614 = vperm.xlu0 %2300, %v2321_v35   ;;  %2324 = vrcp.f32 %v1598_v36 }
 0x415   : > { %v2323_v39 = vpop.eup %2322 }
 0x416   : > { %1619 = vperm.xlu0 %2300, %v2323_v39  }
 0x419   : > { %v2325_v40 = vpop.eup %2324 }
 0x41a   : > { %1624 = vperm.xlu1 %2301, %v2325_v40  }
 0x43f   : > { %v1439_v48 = vpop.f32.mrb[32].mxu0 }
 0x440   : > { %v1583_v49 = vadd.f32 %v1439_v48, %v1391_v45  ;;  %v1485_v50 = vpop.f32.mrb[32].mxu1  ;;  %v2165_v51 = vpop.f32.mrb[33].mxu0 }
 0x441   : > { %v1584_v52 = vadd.f32 %v1485_v50, %v1392_v46  ;;  %v2171_v53 = vpop.f32.mrb[33].mxu1  ;;  %v1442_v54 = vpop.f32.mrb[34].mxu0 }
 0x442   : > { %1587 = vst.msk [vmem:[#allocation6] sm:$0xff] %vm1077_vm2, %v1583_v49  ;;  %v1488_v55 = vpop.f32.mrb[34].mxu1  ;;  %v2166_v56 = vpop.f32.mrb[35].mxu0 }
 0x443   : > { %1588 = vst.msk [vmem:[#allocation6 + $0x8] sm:$0xff] %vm1077_vm2, %v1584_v52  ;;  %v2172_v58 = vpop.f32.mrb[35].mxu1 }
 0x447   : > { %v1531_v62 = vpop.f32.mrb[36].mxu0 }
 0x448   : > { %v1585_v63 = vadd.f32 %v1531_v62, %v1393_v59  ;;  %v2177_v1 = vpop.f32.mrb[37].mxu0 }
 0x449   : > { %v1534_v2 = vpop.f32.mrb[38].mxu0  ;;  %v1603_v11 = vld [vmem:[#allocation6] sm:$0xff] }
 0x44a   : > { %1589 = vst.msk [vmem:[#allocation6 + $0x10] sm:$0xff] %vm1077_vm2, %v1585_v63  ;;  %v2178_v4 = vpop.f32.mrb[39].mxu0  ;;  %v1604_v14 = vld [vmem:[#allocation6 + $0x8] sm:$0xff] }
 0x44b   : > { %v1577_v5 = vpop.f32.mrb[36].mxu1 }
 0x44c   : > { %v1586_v6 = vadd.f32 %v1577_v5, %v1394_v3  ;;  %v2183_v7 = vpop.f32.mrb[37].mxu1 }
 0x44d   : > { %v1580_v8 = vpop.f32.mrb[38].mxu1 }
 0x44e   : > { %1590 = vst.msk [vmem:[#allocation6 + $0x18] sm:$0xff] %vm1077_vm2, %v1586_v6  ;;  %v2184_v9 = vpop.f32.mrb[39].mxu1 }
 0x451   : > { %v1605_v23 = vld [vmem:[#allocation6 + $0x10] sm:$0xff] }
 0x455   : > { %v1606_v26 = vld [vmem:[#allocation6 + $0x18] sm:$0xff] }
 0x48d   : > { %v1610_v10 = vpop.permute.xlu1 %1609 }
 0x48e   : > { %v1627_v13 = vmul.f32 %v1610_v10, %v1603_v11  ;;  %v1615_v15 = vpop.permute.xlu0 %1614 }
 0x48f   : > { %v1628_v17 = vmul.f32 %v1615_v15, %v1604_v14 }
 0x490   : > { %v1631_v18 = vpack.c.bf16 %v1627_v13, %v1627_v13 }
 0x491   : > { %v1632_v20 = vpack.c.bf16 %v1628_v17, %v1628_v17 }
 0x492   : > { %2194 = vmatmul.mubr.msk.bf16.vlgmr.msra.gmra.mrb[40].mxu1 %vm1077_vm2, %v1631_v18 }
 0x493   : > { %2188 = vmatmul.mubr.msk.bf16.vlgmr.msra.gmra.mrb[40].mxu0 %vm1077_vm2, %v1632_v20  ;;  %2204 = vmatpush3.bf16.msra.mxu1 %v1785_v19 }
 0x494   : > { %2198 = vmatpush3.bf16.msra.mxu0 %v1736_v21  ;;  %2199 = vmatprep.mubr.msk.bf16.mxu0 %vm2508_vm0, %v2507_v0 }
 0x495   : > { %v1620_v22 = vpop.permute.xlu0 %1619  ;;  %2205 = vmatprep.mubr.msk.bf16.mxu1 %vm2508_vm0, %v2507_v0 }
 0x496   : > { %v1629_v24 = vmul.f32 %v1620_v22, %v1605_v23 }
 0x498   : > { %v1633_v25 = vpack.c.bf16 %v1629_v24, %v1629_v24 }
 0x499   : > { %v1625_v27 = vpop.permute.xlu1 %1624 }
 0x49a   : > { %v1630_v28 = vmul.f32 %v1625_v27, %v1606_v26 }
 0x49b   : > { %2200 = vmatmul.mubr.msk.bf16.vlgmr.msra.gmra.mrb[44].mxu0 %vm1077_vm2, %v1633_v25 }
 0x49c   : > { %v1634_v29 = vpack.c.bf16 %v1630_v28, %v1630_v28 }
 0x49e   : > { %2206 = vmatmul.mubr.msk.bf16.vlgmr.msra.gmra.mrb[44].mxu1 %vm1077_vm2, %v1634_v29 }
 0x565   : > { %v1724_v30 = vpop.f32.mrb[40].mxu1 }
 0x566   : > { %v1678_v31 = vpop.f32.mrb[40].mxu0  ;;  %v2195_v32 = vpop.f32.mrb[41].mxu1 }
 0x567   : > { %v1725_v33 = vadd.f32 %v1724_v30, %v1678_v31  ;;  %v2189_v34 = vpop.f32.mrb[41].mxu0  ;;  %v1727_v35 = vpop.f32.mrb[42].mxu1 }
 0x568   : > { %v1681_v36 = vpop.f32.mrb[42].mxu0  ;;  %v2196_v0 = vpop.f32.mrb[43].mxu1 }
 0x569   : > { %v2190_v37 = vpop.f32.mrb[43].mxu0 }
 0x56e   : > { %v1772_v38 = vpop.f32.mrb[44].mxu0 }
 0x56f   : > { %v1778_v39 = vadd.f32 %v1772_v38, %v1725_v33  ;;  %v2201_v40 = vpop.f32.mrb[45].mxu0 }
 0x570   : > { %v1775_v41 = vpop.f32.mrb[46].mxu0 }
 0x571   : > { %v2202_v42 = vpop.f32.mrb[47].mxu0  ;;  %v1821_v43 = vpop.f32.mrb[44].mxu1 }
 0x572   : > { %v1827_v45 = vadd.f32 %v1821_v43, %v1778_v39  ;;  %v2207_v46 = vpop.f32.mrb[45].mxu1 }
 0x573   : > { %v1824_v47 = vpop.f32.mrb[46].mxu1 }
 0x574   : > { %v1835_v48 = vadd.f32 %v2012_v44, %v1827_v45  ;;  %v2208_v49 = vpop.f32.mrb[47].mxu1 }
 0x576   : > { %1836 = vst.msk [vmem:[%s390_s30] sm:$0xff] %vm404_vm1, %v1835_v48 }
 0x577   : > { %2425 = shalt.err (!%p2422_p11)
}
 0x578   : > { %s2426_s28 = scalar_lea.hbm %s3008_s24, 128  ;;  %s2430_s8 = scalar_lea.hbm %s3090_s18, 256 }
 0x579   : > { %p2427_p0 = scmp.ne.s32.totalorder %s3008_s24, %s2426_s28  ;;  %p2431_p6 = scmp.lt.u32.totalorder %s3008_s24, %s3090_s18 }
 0x57a   : > { %p2432_p7 = scmp.lt.u32.totalorder %s2430_s8, %s2426_s28  ;;  %p2434_p8 = scmp.lt.u32.totalorder %s2426_s28, %s3008_s24 }
 0x57b   : > { %p2428_p4 = pnand %p2427_p0, %p3091_p12 }
 0x57c   : > { %p2433_p2 = por %p2432_p7, %p2431_p6 }
 0x57d   : > { %p2429_p13 = pneg %p2428_p4 }
 0x57e   : > { %p2435_p1 = por %p2434_p8, %p2433_p2 }
 0x580   : > { %p2436_p10 = pnand %p2435_p1, %p2429_p13 }
 0x582   : > { %2439 = shalt.err (!%p2436_p10)
}
 0x583   : > { %2219 = dma.vmem_to_hbm [thread:$0]  (%p3091_p12), %s3010_s23, 128, %s3008_s24, %s1838_s12  }
 0x584 PF: > { %s3092_s20 = sld [smem:[#allocation17_spill]]  ;;  %s3093_s15 = sld [smem:[#allocation18_spill]] }
 0x585   : > { %p3095_p5 = scmp.ge.s32.totalorder %s2498_s14, 2 }
 0x58a   : > { %s1864_s26 = sand.u32 1, %s3092_s20   ;;  %p3094_p3 = scmp.ne.s32.totalorder %s3093_s15, 0 }
 0x58b   : > { %s1865_s16 = scalar_lea.sflag [#allocation9], %s1864_s26 }
 0x58c   : > { %p2233_p9 = pnand %p3095_p5, %p3094_p3 }
 0x58e   : > { %2473 = dma.done.wait (!%p2233_p9), %s1865_s16, 128  }
 0x58f   : > { %2475 = vsyncadd (!%p2233_p9), %s1865_s16, 4294967168  ;;  %s26_s14 = sadd.s32 1, %s2498_s14   ;;  %s3096_s30 = smov %s2482_s10 }
 0x590   : > { %p23_p11 = scmp.ge.s32.totalorder %s26_s14, 4   ;;  %s3097_s10 = smov %s2486_s11 }
 0x591   : > { %s3098_s11 = smov %s2704_s22  ;;  %s3099_s12 = smov %s2494_s13 }
 0x592   : > { %s3100_s13 = smov %s3102_s27  ;;  %25 = sbr.rel (!%p23_p11) target bundleno = 10 (0xa), region = 141 }
 0x599   :  { %1870 = vsyncpa [#allocation8], 1 }
 0x59a   :  { %1872 = vsyncpa [#allocation8 + $0x1], 1 }
 0x59b   :  { %1873 = vsyncpa [#allocation11], 1 }
 0x59c   :  { %1874 = vsyncpa [#allocation9], 1 }
 0x59d   :  { %1876 = vsyncpa [#allocation9 + $0x1], 1 }

</bundles_post_ra>
